<compile_context>
chip_gen: v6e
topology: v6e:2x2x1
jax: 0.10.0
libtpu: 0.0.40
codegen_flags: <defaults>
</compile_context>

<pallas_src>
import jax
import jax.numpy as jnp
from jax import lax
from jax.experimental import pallas as pl
from jax.experimental.pallas import tpu as pltpu

KH = KW = 5
PAD = 2
EPS = 1e-5
LANES = 128


def dwconv_bn_kernel(x_ref, w_ref, gamma_ref, beta_ref, o_ref, xp_ref, s1_ref, s2_ref):
    # x_ref     : (N, H, W, Cb)            input block (VMEM)
    # w_ref     : (KH*KW, Cb)              depthwise filter taps (channel on lanes)
    # gamma_ref : (1, Cb), beta_ref: (1, Cb)
    # o_ref     : (N, H, W, Cb)            output block
    # xp_ref    : (N, H+2P, W+2P, Cb)      VMEM scratch: spatially padded input
    # s1_ref    : (1, Cb), s2_ref: (1, Cb) per-channel sum / sum-of-squares accumulators
    N, H, W, Cb = x_ref.shape
    Hp, Wp = H + 2 * PAD, W + 2 * PAD

    taps = w_ref[...]                           # (25, Cb)
    s1_ref[...] = jnp.zeros_like(s1_ref)        # scratch persists across grid steps
    s2_ref[...] = jnp.zeros_like(s2_ref)

    zrow = jnp.zeros((PAD, Wp, Cb), jnp.float32)
    zcol = jnp.zeros((H, PAD, Cb), jnp.float32)

    for n in range(N):                          # N is static (== 1 for this module)
        # --- in-VMEM spatial zero padding: memset the halo only, copy interior rows ---
        xp_ref[n, 0:PAD, :, :] = zrow
        xp_ref[n, Hp - PAD:Hp, :, :] = zrow
        xp_ref[n, PAD:PAD + H, 0:PAD, :] = zcol
        xp_ref[n, PAD:PAD + H, PAD + W:Wp, :] = zcol

        @pl.loop(0, H)
        def _copy_row(h):
            xp_ref[n, h + PAD, PAD:PAD + W, :] = x_ref[n, h, :, :]

        # --- streamed 5x5 depthwise conv + fused BN statistics, one output row at a time ---
        # NOTE: the kw = 1..4 tap slices are sublane-misaligned windows; Mosaic handles the
        # shifted vld (XLU rotate) - verified preferable to spilling a full-image accumulator.
        @pl.loop(0, H)
        def _conv_row(h):
            acc = None
            for kh in range(KH):
                for kw in range(KW):
                    xs = xp_ref[n, h + kh, kw:kw + W, :]            # (W, Cb)
                    term = xs * taps[kh * KW + kw, :]
                    acc = term if acc is None else acc + term
            o_ref[n, h, :, :] = acc                                 # unnormalized conv row
            s1_ref[...] += jnp.sum(acc, axis=0, keepdims=True)
            s2_ref[...] += jnp.sum(acc * acc, axis=0, keepdims=True)

    # --- BatchNorm (training mode): batch stats, then one scale/shift RMW pass over o_ref ---
    inv_cnt = 1.0 / float(N * H * W)
    mean = s1_ref[...] * inv_cnt                                    # (1, Cb)
    var = s2_ref[...] * inv_cnt - mean * mean
    inv = lax.rsqrt(var + EPS)
    scale = gamma_ref[...] * inv                                    # (1, Cb)
    shift = beta_ref[...] - mean * scale
    scale_b = jnp.broadcast_to(scale, (W, Cb))                      # hoisted sublane bcast
    shift_b = jnp.broadcast_to(shift, (W, Cb))

    for n in range(N):
        @pl.loop(0, H)
        def _norm_row(h):
            row = o_ref[n, h, :, :]
            o_ref[n, h, :, :] = (row * scale_b + shift_b).astype(o_ref.dtype)


def _target_config():
    """Per-generation channel-block count and grid semantics."""
    try:
        kind = jax.devices()[0].device_kind.lower()
    except Exception:
        return 1, ("arbitrary",)
    if "v7" in kind or "7x" in kind:
        # 2 TensorCores: one channel block per core (BN stats are per-channel -> exact split).
        core_parallel = getattr(pltpu, "CORE_PARALLEL", "parallel")
        return 2, (core_parallel,)
    if "v5 lite" in kind or "v5e" in kind or "v5lite" in kind:
        return 3, ("parallel",)     # pipeline the exposed in/out DMA (slow HBM)
    if "v6" in kind:
        return 2, ("parallel",)     # modest DMA/compute overlap
    return 1, ("arbitrary",)        # v4/v5p/unknown: single step, lowest overhead


def dwconv_bn(x_nchw, w_oihw, gamma, beta):
    """x_nchw: (N, C, H, W) f32; w_oihw: (C, 1, KH, KW); gamma/beta: (C,)."""
    N, C, H, W = x_nchw.shape
    n_blk, dims = _target_config()

    if n_blk > 1:
        unit = n_blk * LANES
        Cp = ((C + unit - 1) // unit) * unit       # 672 -> 768 only when splitting channels
    else:
        Cp = C
    pad_c = Cp - C
    Cb = Cp // n_blk

    x_nhwc = jnp.transpose(x_nchw, (0, 2, 3, 1))
    w_taps = jnp.transpose(w_oihw.reshape(C, KH * KW), (1, 0))       # (25, C)
    gamma2 = gamma.reshape(1, C)
    beta2 = beta.reshape(1, C)
    if pad_c:
        x_nhwc = jnp.pad(x_nhwc, ((0, 0), (0, 0), (0, 0), (0, pad_c)))
        w_taps = jnp.pad(w_taps, ((0, 0), (0, pad_c)))
        gamma2 = jnp.pad(gamma2, ((0, 0), (0, pad_c)))
        beta2 = jnp.pad(beta2, ((0, 0), (0, pad_c)))

    grid_spec = pltpu.PrefetchScalarGridSpec(
        num_scalar_prefetch=0,
        grid=(n_blk,),
        in_specs=[
            pl.BlockSpec((N, H, W, Cb), lambda c: (0, 0, 0, c)),
            pl.BlockSpec((KH * KW, Cb), lambda c: (0, c)),
            pl.BlockSpec((1, Cb), lambda c: (0, c)),
            pl.BlockSpec((1, Cb), lambda c: (0, c)),
        ],
        out_specs=pl.BlockSpec((N, H, W, Cb), lambda c: (0, 0, 0, c)),
        scratch_shapes=[
            pltpu.VMEM((N, H + 2 * PAD, W + 2 * PAD, Cb), jnp.float32),
            pltpu.VMEM((1, Cb), jnp.float32),
            pltpu.VMEM((1, Cb), jnp.float32),
        ],
    )

    out_nhwc = pl.pallas_call(
        dwconv_bn_kernel,
        out_shape=jax.ShapeDtypeStruct((N, H, W, Cp), jnp.float32),
        grid_spec=grid_spec,
        compiler_params=pltpu.CompilerParams(dimension_semantics=dims),
    )(x_nhwc, w_taps, gamma2, beta2)

    if pad_c:
        out_nhwc = out_nhwc[..., :C]
    return jnp.transpose(out_nhwc, (0, 3, 1, 2))        # back to NCHW (module interface)


def reference(x_nchw, w_oihw, gamma, beta):
    """Pure-JAX reference (depthwise conv + training-mode BN) for verification."""
    C = x_nchw.shape[1]
    y = lax.conv_general_dilated(
        x_nchw, w_oihw, window_strides=(1, 1),
        padding=((PAD, PAD), (PAD, PAD)),
        feature_group_count=C,
        dimension_numbers=("NCHW", "OIHW", "NCHW"))
    mean = jnp.mean(y, axis=(0, 2, 3), keepdims=True)
    var = jnp.mean((y - mean) ** 2, axis=(0, 2, 3), keepdims=True)
    g = gamma.reshape(1, C, 1, 1)
    b = beta.reshape(1, C, 1, 1)
    return (y - mean) / jnp.sqrt(var + EPS) * g + b


if __name__ == "__main__":
    # Shapes implied by the module's forward: x134 = [1, 672, 14, 14].
    N, C, H, W = 1, 672, 14, 14

    key = jax.random.PRNGKey(0)
    kx, kwt, kg, kb = jax.random.split(key, 4)

    x = jax.random.normal(kx, (N, C, H, W), dtype=jnp.float32)
    # Conv2d depthwise weight (out=C, in/groups=1, 5, 5); deterministic synthetic init.
    w = 0.1 * jax.random.normal(kwt, (C, 1, KH, KW), dtype=jnp.float32)
    # BN affine params (PyTorch inits gamma=1, beta=0; perturb slightly to be nontrivial).
    gamma = 1.0 + 0.05 * jax.random.normal(kg, (C,), dtype=jnp.float32)
    beta = 0.05 * jax.random.normal(kb, (C,), dtype=jnp.float32)

    fn = jax.jit(dwconv_bn)
    out = jax.block_until_ready(fn(x, w, gamma, beta))

    ref = jax.block_until_ready(reference(x, w, gamma, beta))
    assert out.shape == (N, C, H, W)
    err = float(jnp.max(jnp.abs(out - ref)))
    assert err < 2e-3, f"mismatch vs reference: {err}"

    print("KERNEL_OK")
</pallas_src>

<mosaic_0001>
module attributes {stable_mosaic.version = 11 : i64} {
  func.func @dwconv_bn_kernel(%arg0: i32, %arg1: memref<1x14x14x672xf32, #tpu.memory_space<vmem>>, %arg2: memref<25x672xf32, #tpu.memory_space<vmem>>, %arg3: memref<1x672xf32, #tpu.memory_space<vmem>>, %arg4: memref<1x672xf32, #tpu.memory_space<vmem>>, %arg5: memref<1x14x14x672xf32, #tpu.memory_space<vmem>>, %arg6: memref<1x18x18x672xf32, #tpu.memory_space<vmem>>, %arg7: memref<1x672xf32, #tpu.memory_space<vmem>>, %arg8: memref<1x672xf32, #tpu.memory_space<vmem>>) attributes {dimension_semantics = [#tpu.dimension_semantics<arbitrary>], iteration_bounds = array<i64: 1>, scalar_prefetch = 0 : i64, scratch_operands = 3 : i64, tpu.core_type = #tpu.core_type<tc>, window_params = [{transform_indices = @transform_0, window_bounds = array<i64: 1, 14, 14, 672>}, {transform_indices = @transform_1, window_bounds = array<i64: 25, 672>}, {transform_indices = @transform_2, window_bounds = array<i64: 1, 672>}, {transform_indices = @transform_3, window_bounds = array<i64: 1, 672>}, {transform_indices = @transform_4, window_bounds = array<i64: 1, 14, 14, 672>}]} {
    %c0 = arith.constant 0 : index
    %c0_0 = arith.constant 0 : index
    %0 = vector.load %arg2[%c0, %c0_0] : memref<25x672xf32, #tpu.memory_space<vmem>>, vector<25x672xf32>
    %cst = arith.constant 0.000000e+00 : f32
    %1 = vector.broadcast %cst : f32 to vector<1x672xf32>
    %c0_1 = arith.constant 0 : index
    %c0_2 = arith.constant 0 : index
    %2 = vector.load %arg7[%c0_1, %c0_2] : memref<1x672xf32, #tpu.memory_space<vmem>>, vector<1x672xf32>
    tpu.vector_store %arg7[%c0_1, %c0_2], %1 {strides = array<i32>} : memref<1x672xf32, #tpu.memory_space<vmem>>, vector<1x672xf32>,
    %cst_3 = arith.constant 0.000000e+00 : f32
    %3 = vector.broadcast %cst_3 : f32 to vector<1x672xf32>
    %c0_4 = arith.constant 0 : index
    %c0_5 = arith.constant 0 : index
    %4 = vector.load %arg8[%c0_4, %c0_5] : memref<1x672xf32, #tpu.memory_space<vmem>>, vector<1x672xf32>
    tpu.vector_store %arg8[%c0_4, %c0_5], %3 {strides = array<i32>} : memref<1x672xf32, #tpu.memory_space<vmem>>, vector<1x672xf32>,
    %cst_6 = arith.constant 0.000000e+00 : f32
    %5 = vector.broadcast %cst_6 : f32 to vector<2x18x672xf32>
    %cst_7 = arith.constant 0.000000e+00 : f32
    %6 = vector.broadcast %cst_7 : f32 to vector<14x2x672xf32>
    %c0_8 = arith.constant 0 : index
    %c0_9 = arith.constant 0 : index
    %c0_10 = arith.constant 0 : index
    %c0_11 = arith.constant 0 : index
    %7 = vector.load %arg6[%c0_8, %c0_9, %c0_10, %c0_11] : memref<1x18x18x672xf32, #tpu.memory_space<vmem>>, vector<1x2x18x672xf32>
    %8 = vector.shape_cast %7 : vector<1x2x18x672xf32> to vector<2x18x672xf32>
    %9 = vector.shape_cast %5 : vector<2x18x672xf32> to vector<1x2x18x672xf32>
    tpu.vector_store %arg6[%c0_8, %c0_9, %c0_10, %c0_11], %9 {strides = array<i32>} : memref<1x18x18x672xf32, #tpu.memory_space<vmem>>, vector<1x2x18x672xf32>,
    %c0_12 = arith.constant 0 : index
    %c16 = arith.constant 16 : index
    %c0_13 = arith.constant 0 : index
    %c0_14 = arith.constant 0 : index
    %10 = vector.load %arg6[%c0_12, %c16, %c0_13, %c0_14] : memref<1x18x18x672xf32, #tpu.memory_space<vmem>>, vector<1x2x18x672xf32>
    %11 = vector.shape_cast %10 : vector<1x2x18x672xf32> to vector<2x18x672xf32>
    %12 = vector.shape_cast %5 : vector<2x18x672xf32> to vector<1x2x18x672xf32>
    tpu.vector_store %arg6[%c0_12, %c16, %c0_13, %c0_14], %12 {strides = array<i32>} : memref<1x18x18x672xf32, #tpu.memory_space<vmem>>, vector<1x2x18x672xf32>,
    %c0_15 = arith.constant 0 : index
    %c2 = arith.constant 2 : index
    %c0_16 = arith.constant 0 : index
    %c0_17 = arith.constant 0 : index
    %13 = vector.load %arg6[%c0_15, %c2, %c0_16, %c0_17] : memref<1x18x18x672xf32, #tpu.memory_space<vmem>>, vector<1x14x2x672xf32>
    %14 = vector.shape_cast %13 : vector<1x14x2x672xf32> to vector<14x2x672xf32>
    %15 = vector.shape_cast %6 : vector<14x2x672xf32> to vector<1x14x2x672xf32>
    tpu.vector_store %arg6[%c0_15, %c2, %c0_16, %c0_17], %15 {strides = array<i32>} : memref<1x18x18x672xf32, #tpu.memory_space<vmem>>, vector<1x14x2x672xf32>,
    %c0_18 = arith.constant 0 : index
    %c2_19 = arith.constant 2 : index
    %c16_20 = arith.constant 16 : index
    %c0_21 = arith.constant 0 : index
    %16 = vector.load %arg6[%c0_18, %c2_19, %c16_20, %c0_21] : memref<1x18x18x672xf32, #tpu.memory_space<vmem>>, vector<1x14x2x672xf32>
    %17 = vector.shape_cast %16 : vector<1x14x2x672xf32> to vector<14x2x672xf32>
    %18 = vector.shape_cast %6 : vector<14x2x672xf32> to vector<1x14x2x672xf32>
    tpu.vector_store %arg6[%c0_18, %c2_19, %c16_20, %c0_21], %18 {strides = array<i32>} : memref<1x18x18x672xf32, #tpu.memory_space<vmem>>, vector<1x14x2x672xf32>,
    %c0_i32 = arith.constant 0 : i32
    %c14_i32 = arith.constant 14 : i32
    %19 = arith.addi %c0_i32, %c14_i32 : i32
    %c1_i32 = arith.constant 1 : i32
    scf.for %arg9 = %c0_i32 to %19 step %c1_i32  : i32 {
      %c1_i32_42 = arith.constant 1 : i32
      %42 = arith.muli %arg9, %c1_i32_42 : i32
      %c0_i32_43 = arith.constant 0 : i32
      %43 = arith.addi %c0_i32_43, %42 : i32
      %c0_44 = arith.constant 0 : index
      %44 = arith.index_cast %43 : i32 to index
      %c0_45 = arith.constant 0 : index
      %c0_46 = arith.constant 0 : index
      %45 = vector.load %arg1[%c0_44, %44, %c0_45, %c0_46] : memref<1x14x14x672xf32, #tpu.memory_space<vmem>>, vector<1x1x14x672xf32>
      %46 = vector.shape_cast %45 : vector<1x1x14x672xf32> to vector<14x672xf32>
      %c2_i32 = arith.constant 2 : i32
      %47 = arith.addi %43, %c2_i32 : i32
      %c0_47 = arith.constant 0 : index
      %48 = arith.index_cast %47 : i32 to index
      %c2_48 = arith.constant 2 : index
      %c0_49 = arith.constant 0 : index
      %49 = vector.load %arg6[%c0_47, %48, %c2_48, %c0_49] : memref<1x18x18x672xf32, #tpu.memory_space<vmem>>, vector<1x1x14x672xf32>
      %50 = vector.shape_cast %49 : vector<1x1x14x672xf32> to vector<14x672xf32>
      %51 = vector.shape_cast %46 : vector<14x672xf32> to vector<1x1x14x672xf32>
      tpu.vector_store %arg6[%c0_47, %48, %c2_48, %c0_49], %51 {strides = array<i32>} : memref<1x18x18x672xf32, #tpu.memory_space<vmem>>, vector<1x1x14x672xf32>,
    }
    %c14_i32_22 = arith.constant 14 : i32
    %c0_i32_23 = arith.constant 0 : i32
    %c14_i32_24 = arith.constant 14 : i32
    %20 = arith.addi %c0_i32_23, %c14_i32_24 : i32
    %c1_i32_25 = arith.constant 1 : i32
    scf.for %arg9 = %c0_i32_23 to %20 step %c1_i32_25  : i32 {
      %c1_i32_42 = arith.constant 1 : i32
      %42 = arith.muli %arg9, %c1_i32_42 : i32
      %c0_i32_43 = arith.constant 0 : i32
      %43 = arith.addi %c0_i32_43, %42 : i32
      %c0_i32_44 = arith.constant 0 : i32
      %44 = arith.addi %43, %c0_i32_44 : i32
      %c0_45 = arith.constant 0 : index
      %45 = arith.index_cast %44 : i32 to index
      %c0_46 = arith.constant 0 : index
      %c0_47 = arith.constant 0 : index
      %46 = vector.load %arg6[%c0_45, %45, %c0_46, %c0_47] : memref<1x18x18x672xf32, #tpu.memory_space<vmem>>, vector<1x1x14x672xf32>
      %47 = vector.shape_cast %46 : vector<1x1x14x672xf32> to vector<14x672xf32>
      %48 = vector.extract_strided_slice %0 {offsets = [0, 0], sizes = [1, 672], strides = [1, 1]} : vector<25x672xf32> to vector<1x672xf32>
      %49 = vector.shape_cast %48 : vector<1x672xf32> to vector<672xf32>
      %50 = vector.shape_cast %49 : vector<672xf32> to vector<1x672xf32>
      %51 = vector.broadcast %50 : vector<1x672xf32> to vector<14x672xf32>
      %52 = arith.mulf %47, %51 : vector<14x672xf32>
      %c0_i32_48 = arith.constant 0 : i32
      %53 = arith.addi %43, %c0_i32_48 : i32
      %c0_49 = arith.constant 0 : index
      %54 = arith.index_cast %53 : i32 to index
      %c1 = arith.constant 1 : index
      %c0_50 = arith.constant 0 : index
      %55 = vector.load %arg6[%c0_49, %54, %c1, %c0_50] : memref<1x18x18x672xf32, #tpu.memory_space<vmem>>, vector<1x1x14x672xf32>
      %56 = vector.shape_cast %55 : vector<1x1x14x672xf32> to vector<14x672xf32>
      %57 = vector.extract_strided_slice %0 {offsets = [1, 0], sizes = [1, 672], strides = [1, 1]} : vector<25x672xf32> to vector<1x672xf32>
      %58 = vector.shape_cast %57 : vector<1x672xf32> to vector<672xf32>
      %59 = vector.shape_cast %58 : vector<672xf32> to vector<1x672xf32>
      %60 = vector.broadcast %59 : vector<1x672xf32> to vector<14x672xf32>
      %61 = arith.mulf %56, %60 : vector<14x672xf32>
      %62 = arith.addf %52, %61 : vector<14x672xf32>
      %c0_i32_51 = arith.constant 0 : i32
      %63 = arith.addi %43, %c0_i32_51 : i32
      %c0_52 = arith.constant 0 : index
      %64 = arith.index_cast %63 : i32 to index
      %c2_53 = arith.constant 2 : index
      %c0_54 = arith.constant 0 : index
      %65 = vector.load %arg6[%c0_52, %64, %c2_53, %c0_54] : memref<1x18x18x672xf32, #tpu.memory_space<vmem>>, vector<1x1x14x672xf32>
      %66 = vector.shape_cast %65 : vector<1x1x14x672xf32> to vector<14x672xf32>
      %67 = vector.extract_strided_slice %0 {offsets = [2, 0], sizes = [1, 672], strides = [1, 1]} : vector<25x672xf32> to vector<1x672xf32>
      %68 = vector.shape_cast %67 : vector<1x672xf32> to vector<672xf32>
      %69 = vector.shape_cast %68 : vector<672xf32> to vector<1x672xf32>
      %70 = vector.broadcast %69 : vector<1x672xf32> to vector<14x672xf32>
      %71 = arith.mulf %66, %70 : vector<14x672xf32>
      %72 = arith.addf %62, %71 : vector<14x672xf32>
      %c0_i32_55 = arith.constant 0 : i32
      %73 = arith.addi %43, %c0_i32_55 : i32
      %c0_56 = arith.constant 0 : index
      %74 = arith.index_cast %73 : i32 to index
      %c3 = arith.constant 3 : index
      %c0_57 = arith.constant 0 : index
      %75 = vector.load %arg6[%c0_56, %74, %c3, %c0_57] : memref<1x18x18x672xf32, #tpu.memory_space<vmem>>, vector<1x1x14x672xf32>
      %76 = vector.shape_cast %75 : vector<1x1x14x672xf32> to vector<14x672xf32>
      %77 = vector.extract_strided_slice %0 {offsets = [3, 0], sizes = [1, 672], strides = [1, 1]} : vector<25x672xf32> to vector<1x672xf32>
      %78 = vector.shape_cast %77 : vector<1x672xf32> to vector<672xf32>
      %79 = vector.shape_cast %78 : vector<672xf32> to vector<1x672xf32>
      %80 = vector.broadcast %79 : vector<1x672xf32> to vector<14x672xf32>
      %81 = arith.mulf %76, %80 : vector<14x672xf32>
      %82 = arith.addf %72, %81 : vector<14x672xf32>
      %c0_i32_58 = arith.constant 0 : i32
      %83 = arith.addi %43, %c0_i32_58 : i32
      %c0_59 = arith.constant 0 : index
      %84 = arith.index_cast %83 : i32 to index
      %c4 = arith.constant 4 : index
      %c0_60 = arith.constant 0 : index
      %85 = vector.load %arg6[%c0_59, %84, %c4, %c0_60] : memref<1x18x18x672xf32, #tpu.memory_space<vmem>>, vector<1x1x14x672xf32>
      %86 = vector.shape_cast %85 : vector<1x1x14x672xf32> to vector<14x672xf32>
      %87 = vector.extract_strided_slice %0 {offsets = [4, 0], sizes = [1, 672], strides = [1, 1]} : vector<25x672xf32> to vector<1x672xf32>
      %88 = vector.shape_cast %87 : vector<1x672xf32> to vector<672xf32>
      %89 = vector.shape_cast %88 : vector<672xf32> to vector<1x672xf32>
      %90 = vector.broadcast %89 : vector<1x672xf32> to vector<14x672xf32>
      %91 = arith.mulf %86, %90 : vector<14x672xf32>
      %92 = arith.addf %82, %91 : vector<14x672xf32>
      %c1_i32_61 = arith.constant 1 : i32
      %93 = arith.addi %43, %c1_i32_61 : i32
      %c0_62 = arith.constant 0 : index
      %94 = arith.index_cast %93 : i32 to index
      %c0_63 = arith.constant 0 : index
      %c0_64 = arith.constant 0 : index
      %95 = vector.load %arg6[%c0_62, %94, %c0_63, %c0_64] : memref<1x18x18x672xf32, #tpu.memory_space<vmem>>, vector<1x1x14x672xf32>
      %96 = vector.shape_cast %95 : vector<1x1x14x672xf32> to vector<14x672xf32>
      %97 = vector.extract_strided_slice %0 {offsets = [5, 0], sizes = [1, 672], strides = [1, 1]} : vector<25x672xf32> to vector<1x672xf32>
      %98 = vector.shape_cast %97 : vector<1x672xf32> to vector<672xf32>
      %99 = vector.shape_cast %98 : vector<672xf32> to vector<1x672xf32>
      %100 = vector.broadcast %99 : vector<1x672xf32> to vector<14x672xf32>
      %101 = arith.mulf %96, %100 : vector<14x672xf32>
      %102 = arith.addf %92, %101 : vector<14x672xf32>
      %c1_i32_65 = arith.constant 1 : i32
      %103 = arith.addi %43, %c1_i32_65 : i32
      %c0_66 = arith.constant 0 : index
      %104 = arith.index_cast %103 : i32 to index
      %c1_67 = arith.constant 1 : index
      %c0_68 = arith.constant 0 : index
      %105 = vector.load %arg6[%c0_66, %104, %c1_67, %c0_68] : memref<1x18x18x672xf32, #tpu.memory_space<vmem>>, vector<1x1x14x672xf32>
      %106 = vector.shape_cast %105 : vector<1x1x14x672xf32> to vector<14x672xf32>
      %107 = vector.extract_strided_slice %0 {offsets = [6, 0], sizes = [1, 672], strides = [1, 1]} : vector<25x672xf32> to vector<1x672xf32>
      %108 = vector.shape_cast %107 : vector<1x672xf32> to vector<672xf32>
      %109 = vector.shape_cast %108 : vector<672xf32> to vector<1x672xf32>
      %110 = vector.broadcast %109 : vector<1x672xf32> to vector<14x672xf32>
      %111 = arith.mulf %106, %110 : vector<14x672xf32>
      %112 = arith.addf %102, %111 : vector<14x672xf32>
      %c1_i32_69 = arith.constant 1 : i32
      %113 = arith.addi %43, %c1_i32_69 : i32
      %c0_70 = arith.constant 0 : index
      %114 = arith.index_cast %113 : i32 to index
      %c2_71 = arith.constant 2 : index
      %c0_72 = arith.constant 0 : index
      %115 = vector.load %arg6[%c0_70, %114, %c2_71, %c0_72] : memref<1x18x18x672xf32, #tpu.memory_space<vmem>>, vector<1x1x14x672xf32>
      %116 = vector.shape_cast %115 : vector<1x1x14x672xf32> to vector<14x672xf32>
      %117 = vector.extract_strided_slice %0 {offsets = [7, 0], sizes = [1, 672], strides = [1, 1]} : vector<25x672xf32> to vector<1x672xf32>
      %118 = vector.shape_cast %117 : vector<1x672xf32> to vector<672xf32>
      %119 = vector.shape_cast %118 : vector<672xf32> to vector<1x672xf32>
      %120 = vector.broadcast %119 : vector<1x672xf32> to vector<14x672xf32>
      %121 = arith.mulf %116, %120 : vector<14x672xf32>
      %122 = arith.addf %112, %121 : vector<14x672xf32>
      %c1_i32_73 = arith.constant 1 : i32
      %123 = arith.addi %43, %c1_i32_73 : i32
      %c0_74 = arith.constant 0 : index
      %124 = arith.index_cast %123 : i32 to index
      %c3_75 = arith.constant 3 : index
      %c0_76 = arith.constant 0 : index
      %125 = vector.load %arg6[%c0_74, %124, %c3_75, %c0_76] : memref<1x18x18x672xf32, #tpu.memory_space<vmem>>, vector<1x1x14x672xf32>
      %126 = vector.shape_cast %125 : vector<1x1x14x672xf32> to vector<14x672xf32>
      %127 = vector.extract_strided_slice %0 {offsets = [8, 0], sizes = [1, 672], strides = [1, 1]} : vector<25x672xf32> to vector<1x672xf32>
      %128 = vector.shape_cast %127 : vector<1x672xf32> to vector<672xf32>
      %129 = vector.shape_cast %128 : vector<672xf32> to vector<1x672xf32>
      %130 = vector.broadcast %129 : vector<1x672xf32> to vector<14x672xf32>
      %131 = arith.mulf %126, %130 : vector<14x672xf32>
      %132 = arith.addf %122, %131 : vector<14x672xf32>
      %c1_i32_77 = arith.constant 1 : i32
      %133 = arith.addi %43, %c1_i32_77 : i32
      %c0_78 = arith.constant 0 : index
      %134 = arith.index_cast %133 : i32 to index
      %c4_79 = arith.constant 4 : index
      %c0_80 = arith.constant 0 : index
      %135 = vector.load %arg6[%c0_78, %134, %c4_79, %c0_80] : memref<1x18x18x672xf32, #tpu.memory_space<vmem>>, vector<1x1x14x672xf32>
      %136 = vector.shape_cast %135 : vector<1x1x14x672xf32> to vector<14x672xf32>
      %137 = vector.extract_strided_slice %0 {offsets = [9, 0], sizes = [1, 672], strides = [1, 1]} : vector<25x672xf32> to vector<1x672xf32>
      %138 = vector.shape_cast %137 : vector<1x672xf32> to vector<672xf32>
      %139 = vector.shape_cast %138 : vector<672xf32> to vector<1x672xf32>
      %140 = vector.broadcast %139 : vector<1x672xf32> to vector<14x672xf32>
      %141 = arith.mulf %136, %140 : vector<14x672xf32>
      %142 = arith.addf %132, %141 : vector<14x672xf32>
      %c2_i32 = arith.constant 2 : i32
      %143 = arith.addi %43, %c2_i32 : i32
      %c0_81 = arith.constant 0 : index
      %144 = arith.index_cast %143 : i32 to index
      %c0_82 = arith.constant 0 : index
      %c0_83 = arith.constant 0 : index
      %145 = vector.load %arg6[%c0_81, %144, %c0_82, %c0_83] : memref<1x18x18x672xf32, #tpu.memory_space<vmem>>, vector<1x1x14x672xf32>
      %146 = vector.shape_cast %145 : vector<1x1x14x672xf32> to vector<14x672xf32>
      %147 = vector.extract_strided_slice %0 {offsets = [10, 0], sizes = [1, 672], strides = [1, 1]} : vector<25x672xf32> to vector<1x672xf32>
      %148 = vector.shape_cast %147 : vector<1x672xf32> to vector<672xf32>
      %149 = vector.shape_cast %148 : vector<672xf32> to vector<1x672xf32>
      %150 = vector.broadcast %149 : vector<1x672xf32> to vector<14x672xf32>
      %151 = arith.mulf %146, %150 : vector<14x672xf32>
      %152 = arith.addf %142, %151 : vector<14x672xf32>
      %c2_i32_84 = arith.constant 2 : i32
      %153 = arith.addi %43, %c2_i32_84 : i32
      %c0_85 = arith.constant 0 : index
      %154 = arith.index_cast %153 : i32 to index
      %c1_86 = arith.constant 1 : index
      %c0_87 = arith.constant 0 : index
      %155 = vector.load %arg6[%c0_85, %154, %c1_86, %c0_87] : memref<1x18x18x672xf32, #tpu.memory_space<vmem>>, vector<1x1x14x672xf32>
      %156 = vector.shape_cast %155 : vector<1x1x14x672xf32> to vector<14x672xf32>
      %157 = vector.extract_strided_slice %0 {offsets = [11, 0], sizes = [1, 672], strides = [1, 1]} : vector<25x672xf32> to vector<1x672xf32>
      %158 = vector.shape_cast %157 : vector<1x672xf32> to vector<672xf32>
      %159 = vector.shape_cast %158 : vector<672xf32> to vector<1x672xf32>
      %160 = vector.broadcast %159 : vector<1x672xf32> to vector<14x672xf32>
      %161 = arith.mulf %156, %160 : vector<14x672xf32>
      %162 = arith.addf %152, %161 : vector<14x672xf32>
      %c2_i32_88 = arith.constant 2 : i32
      %163 = arith.addi %43, %c2_i32_88 : i32
      %c0_89 = arith.constant 0 : index
      %164 = arith.index_cast %163 : i32 to index
      %c2_90 = arith.constant 2 : index
      %c0_91 = arith.constant 0 : index
      %165 = vector.load %arg6[%c0_89, %164, %c2_90, %c0_91] : memref<1x18x18x672xf32, #tpu.memory_space<vmem>>, vector<1x1x14x672xf32>
      %166 = vector.shape_cast %165 : vector<1x1x14x672xf32> to vector<14x672xf32>
      %167 = vector.extract_strided_slice %0 {offsets = [12, 0], sizes = [1, 672], strides = [1, 1]} : vector<25x672xf32> to vector<1x672xf32>
      %168 = vector.shape_cast %167 : vector<1x672xf32> to vector<672xf32>
      %169 = vector.shape_cast %168 : vector<672xf32> to vector<1x672xf32>
      %170 = vector.broadcast %169 : vector<1x672xf32> to vector<14x672xf32>
      %171 = arith.mulf %166, %170 : vector<14x672xf32>
      %172 = arith.addf %162, %171 : vector<14x672xf32>
      %c2_i32_92 = arith.constant 2 : i32
      %173 = arith.addi %43, %c2_i32_92 : i32
      %c0_93 = arith.constant 0 : index
      %174 = arith.index_cast %173 : i32 to index
      %c3_94 = arith.constant 3 : index
      %c0_95 = arith.constant 0 : index
      %175 = vector.load %arg6[%c0_93, %174, %c3_94, %c0_95] : memref<1x18x18x672xf32, #tpu.memory_space<vmem>>, vector<1x1x14x672xf32>
      %176 = vector.shape_cast %175 : vector<1x1x14x672xf32> to vector<14x672xf32>
      %177 = vector.extract_strided_slice %0 {offsets = [13, 0], sizes = [1, 672], strides = [1, 1]} : vector<25x672xf32> to vector<1x672xf32>
      %178 = vector.shape_cast %177 : vector<1x672xf32> to vector<672xf32>
      %179 = vector.shape_cast %178 : vector<672xf32> to vector<1x672xf32>
      %180 = vector.broadcast %179 : vector<1x672xf32> to vector<14x672xf32>
      %181 = arith.mulf %176, %180 : vector<14x672xf32>
      %182 = arith.addf %172, %181 : vector<14x672xf32>
      %c2_i32_96 = arith.constant 2 : i32
      %183 = arith.addi %43, %c2_i32_96 : i32
      %c0_97 = arith.constant 0 : index
      %184 = arith.index_cast %183 : i32 to index
      %c4_98 = arith.constant 4 : index
      %c0_99 = arith.constant 0 : index
      %185 = vector.load %arg6[%c0_97, %184, %c4_98, %c0_99] : memref<1x18x18x672xf32, #tpu.memory_space<vmem>>, vector<1x1x14x672xf32>
      %186 = vector.shape_cast %185 : vector<1x1x14x672xf32> to vector<14x672xf32>
      %187 = vector.extract_strided_slice %0 {offsets = [14, 0], sizes = [1, 672], strides = [1, 1]} : vector<25x672xf32> to vector<1x672xf32>
      %188 = vector.shape_cast %187 : vector<1x672xf32> to vector<672xf32>
      %189 = vector.shape_cast %188 : vector<672xf32> to vector<1x672xf32>
      %190 = vector.broadcast %189 : vector<1x672xf32> to vector<14x672xf32>
      %191 = arith.mulf %186, %190 : vector<14x672xf32>
      %192 = arith.addf %182, %191 : vector<14x672xf32>
      %c3_i32 = arith.constant 3 : i32
      %193 = arith.addi %43, %c3_i32 : i32
      %c0_100 = arith.constant 0 : index
      %194 = arith.index_cast %193 : i32 to index
      %c0_101 = arith.constant 0 : index
      %c0_102 = arith.constant 0 : index
      %195 = vector.load %arg6[%c0_100, %194, %c0_101, %c0_102] : memref<1x18x18x672xf32, #tpu.memory_space<vmem>>, vector<1x1x14x672xf32>
      %196 = vector.shape_cast %195 : vector<1x1x14x672xf32> to vector<14x672xf32>
      %197 = vector.extract_strided_slice %0 {offsets = [15, 0], sizes = [1, 672], strides = [1, 1]} : vector<25x672xf32> to vector<1x672xf32>
      %198 = vector.shape_cast %197 : vector<1x672xf32> to vector<672xf32>
      %199 = vector.shape_cast %198 : vector<672xf32> to vector<1x672xf32>
      %200 = vector.broadcast %199 : vector<1x672xf32> to vector<14x672xf32>
      %201 = arith.mulf %196, %200 : vector<14x672xf32>
      %202 = arith.addf %192, %201 : vector<14x672xf32>
      %c3_i32_103 = arith.constant 3 : i32
      %203 = arith.addi %43, %c3_i32_103 : i32
      %c0_104 = arith.constant 0 : index
      %204 = arith.index_cast %203 : i32 to index
      %c1_105 = arith.constant 1 : index
      %c0_106 = arith.constant 0 : index
      %205 = vector.load %arg6[%c0_104, %204, %c1_105, %c0_106] : memref<1x18x18x672xf32, #tpu.memory_space<vmem>>, vector<1x1x14x672xf32>
      %206 = vector.shape_cast %205 : vector<1x1x14x672xf32> to vector<14x672xf32>
      %207 = vector.extract_strided_slice %0 {offsets = [16, 0], sizes = [1, 672], strides = [1, 1]} : vector<25x672xf32> to vector<1x672xf32>
      %208 = vector.shape_cast %207 : vector<1x672xf32> to vector<672xf32>
      %209 = vector.shape_cast %208 : vector<672xf32> to vector<1x672xf32>
      %210 = vector.broadcast %209 : vector<1x672xf32> to vector<14x672xf32>
      %211 = arith.mulf %206, %210 : vector<14x672xf32>
      %212 = arith.addf %202, %211 : vector<14x672xf32>
      %c3_i32_107 = arith.constant 3 : i32
      %213 = arith.addi %43, %c3_i32_107 : i32
      %c0_108 = arith.constant 0 : index
      %214 = arith.index_cast %213 : i32 to index
      %c2_109 = arith.constant 2 : index
      %c0_110 = arith.constant 0 : index
      %215 = vector.load %arg6[%c0_108, %214, %c2_109, %c0_110] : memref<1x18x18x672xf32, #tpu.memory_space<vmem>>, vector<1x1x14x672xf32>
      %216 = vector.shape_cast %215 : vector<1x1x14x672xf32> to vector<14x672xf32>
      %217 = vector.extract_strided_slice %0 {offsets = [17, 0], sizes = [1, 672], strides = [1, 1]} : vector<25x672xf32> to vector<1x672xf32>
      %218 = vector.shape_cast %217 : vector<1x672xf32> to vector<672xf32>
      %219 = vector.shape_cast %218 : vector<672xf32> to vector<1x672xf32>
      %220 = vector.broadcast %219 : vector<1x672xf32> to vector<14x672xf32>
      %221 = arith.mulf %216, %220 : vector<14x672xf32>
      %222 = arith.addf %212, %221 : vector<14x672xf32>
      %c3_i32_111 = arith.constant 3 : i32
      %223 = arith.addi %43, %c3_i32_111 : i32
      %c0_112 = arith.constant 0 : index
      %224 = arith.index_cast %223 : i32 to index
      %c3_113 = arith.constant 3 : index
      %c0_114 = arith.constant 0 : index
      %225 = vector.load %arg6[%c0_112, %224, %c3_113, %c0_114] : memref<1x18x18x672xf32, #tpu.memory_space<vmem>>, vector<1x1x14x672xf32>
      %226 = vector.shape_cast %225 : vector<1x1x14x672xf32> to vector<14x672xf32>
      %227 = vector.extract_strided_slice %0 {offsets = [18, 0], sizes = [1, 672], strides = [1, 1]} : vector<25x672xf32> to vector<1x672xf32>
      %228 = vector.shape_cast %227 : vector<1x672xf32> to vector<672xf32>
      %229 = vector.shape_cast %228 : vector<672xf32> to vector<1x672xf32>
      %230 = vector.broadcast %229 : vector<1x672xf32> to vector<14x672xf32>
      %231 = arith.mulf %226, %230 : vector<14x672xf32>
      %232 = arith.addf %222, %231 : vector<14x672xf32>
      %c3_i32_115 = arith.constant 3 : i32
      %233 = arith.addi %43, %c3_i32_115 : i32
      %c0_116 = arith.constant 0 : index
      %234 = arith.index_cast %233 : i32 to index
      %c4_117 = arith.constant 4 : index
      %c0_118 = arith.constant 0 : index
      %235 = vector.load %arg6[%c0_116, %234, %c4_117, %c0_118] : memref<1x18x18x672xf32, #tpu.memory_space<vmem>>, vector<1x1x14x672xf32>
      %236 = vector.shape_cast %235 : vector<1x1x14x672xf32> to vector<14x672xf32>
      %237 = vector.extract_strided_slice %0 {offsets = [19, 0], sizes = [1, 672], strides = [1, 1]} : vector<25x672xf32> to vector<1x672xf32>
      %238 = vector.shape_cast %237 : vector<1x672xf32> to vector<672xf32>
      %239 = vector.shape_cast %238 : vector<672xf32> to vector<1x672xf32>
      %240 = vector.broadcast %239 : vector<1x672xf32> to vector<14x672xf32>
      %241 = arith.mulf %236, %240 : vector<14x672xf32>
      %242 = arith.addf %232, %241 : vector<14x672xf32>
      %c4_i32 = arith.constant 4 : i32
      %243 = arith.addi %43, %c4_i32 : i32
      %c0_119 = arith.constant 0 : index
      %244 = arith.index_cast %243 : i32 to index
      %c0_120 = arith.constant 0 : index
      %c0_121 = arith.constant 0 : index
      %245 = vector.load %arg6[%c0_119, %244, %c0_120, %c0_121] : memref<1x18x18x672xf32, #tpu.memory_space<vmem>>, vector<1x1x14x672xf32>
      %246 = vector.shape_cast %245 : vector<1x1x14x672xf32> to vector<14x672xf32>
      %247 = vector.extract_strided_slice %0 {offsets = [20, 0], sizes = [1, 672], strides = [1, 1]} : vector<25x672xf32> to vector<1x672xf32>
      %248 = vector.shape_cast %247 : vector<1x672xf32> to vector<672xf32>
      %249 = vector.shape_cast %248 : vector<672xf32> to vector<1x672xf32>
      %250 = vector.broadcast %249 : vector<1x672xf32> to vector<14x672xf32>
      %251 = arith.mulf %246, %250 : vector<14x672xf32>
      %252 = arith.addf %242, %251 : vector<14x672xf32>
      %c4_i32_122 = arith.constant 4 : i32
      %253 = arith.addi %43, %c4_i32_122 : i32
      %c0_123 = arith.constant 0 : index
      %254 = arith.index_cast %253 : i32 to index
      %c1_124 = arith.constant 1 : index
      %c0_125 = arith.constant 0 : index
      %255 = vector.load %arg6[%c0_123, %254, %c1_124, %c0_125] : memref<1x18x18x672xf32, #tpu.memory_space<vmem>>, vector<1x1x14x672xf32>
      %256 = vector.shape_cast %255 : vector<1x1x14x672xf32> to vector<14x672xf32>
      %257 = vector.extract_strided_slice %0 {offsets = [21, 0], sizes = [1, 672], strides = [1, 1]} : vector<25x672xf32> to vector<1x672xf32>
      %258 = vector.shape_cast %257 : vector<1x672xf32> to vector<672xf32>
      %259 = vector.shape_cast %258 : vector<672xf32> to vector<1x672xf32>
      %260 = vector.broadcast %259 : vector<1x672xf32> to vector<14x672xf32>
      %261 = arith.mulf %256, %260 : vector<14x672xf32>
      %262 = arith.addf %252, %261 : vector<14x672xf32>
      %c4_i32_126 = arith.constant 4 : i32
      %263 = arith.addi %43, %c4_i32_126 : i32
      %c0_127 = arith.constant 0 : index
      %264 = arith.index_cast %263 : i32 to index
      %c2_128 = arith.constant 2 : index
      %c0_129 = arith.constant 0 : index
      %265 = vector.load %arg6[%c0_127, %264, %c2_128, %c0_129] : memref<1x18x18x672xf32, #tpu.memory_space<vmem>>, vector<1x1x14x672xf32>
      %266 = vector.shape_cast %265 : vector<1x1x14x672xf32> to vector<14x672xf32>
      %267 = vector.extract_strided_slice %0 {offsets = [22, 0], sizes = [1, 672], strides = [1, 1]} : vector<25x672xf32> to vector<1x672xf32>
      %268 = vector.shape_cast %267 : vector<1x672xf32> to vector<672xf32>
      %269 = vector.shape_cast %268 : vector<672xf32> to vector<1x672xf32>
      %270 = vector.broadcast %269 : vector<1x672xf32> to vector<14x672xf32>
      %271 = arith.mulf %266, %270 : vector<14x672xf32>
      %272 = arith.addf %262, %271 : vector<14x672xf32>
      %c4_i32_130 = arith.constant 4 : i32
      %273 = arith.addi %43, %c4_i32_130 : i32
      %c0_131 = arith.constant 0 : index
      %274 = arith.index_cast %273 : i32 to index
      %c3_132 = arith.constant 3 : index
      %c0_133 = arith.constant 0 : index
      %275 = vector.load %arg6[%c0_131, %274, %c3_132, %c0_133] : memref<1x18x18x672xf32, #tpu.memory_space<vmem>>, vector<1x1x14x672xf32>
      %276 = vector.shape_cast %275 : vector<1x1x14x672xf32> to vector<14x672xf32>
      %277 = vector.extract_strided_slice %0 {offsets = [23, 0], sizes = [1, 672], strides = [1, 1]} : vector<25x672xf32> to vector<1x672xf32>
      %278 = vector.shape_cast %277 : vector<1x672xf32> to vector<672xf32>
      %279 = vector.shape_cast %278 : vector<672xf32> to vector<1x672xf32>
      %280 = vector.broadcast %279 : vector<1x672xf32> to vector<14x672xf32>
      %281 = arith.mulf %276, %280 : vector<14x672xf32>
      %282 = arith.addf %272, %281 : vector<14x672xf32>
      %c4_i32_134 = arith.constant 4 : i32
      %283 = arith.addi %43, %c4_i32_134 : i32
      %c0_135 = arith.constant 0 : index
      %284 = arith.index_cast %283 : i32 to index
      %c4_136 = arith.constant 4 : index
      %c0_137 = arith.constant 0 : index
      %285 = vector.load %arg6[%c0_135, %284, %c4_136, %c0_137] : memref<1x18x18x672xf32, #tpu.memory_space<vmem>>, vector<1x1x14x672xf32>
      %286 = vector.shape_cast %285 : vector<1x1x14x672xf32> to vector<14x672xf32>
      %287 = vector.extract_strided_slice %0 {offsets = [24, 0], sizes = [1, 672], strides = [1, 1]} : vector<25x672xf32> to vector<1x672xf32>
      %288 = vector.shape_cast %287 : vector<1x672xf32> to vector<672xf32>
      %289 = vector.shape_cast %288 : vector<672xf32> to vector<1x672xf32>
      %290 = vector.broadcast %289 : vector<1x672xf32> to vector<14x672xf32>
      %291 = arith.mulf %286, %290 : vector<14x672xf32>
      %292 = arith.addf %282, %291 : vector<14x672xf32>
      %c0_138 = arith.constant 0 : index
      %293 = arith.index_cast %43 : i32 to index
      %c0_139 = arith.constant 0 : index
      %c0_140 = arith.constant 0 : index
      %294 = vector.load %arg5[%c0_138, %293, %c0_139, %c0_140] : memref<1x14x14x672xf32, #tpu.memory_space<vmem>>, vector<1x1x14x672xf32>
      %295 = vector.shape_cast %294 : vector<1x1x14x672xf32> to vector<14x672xf32>
      %296 = vector.shape_cast %292 : vector<14x672xf32> to vector<1x1x14x672xf32>
      tpu.vector_store %arg5[%c0_138, %293, %c0_139, %c0_140], %296 {strides = array<i32>} : memref<1x14x14x672xf32, #tpu.memory_space<vmem>>, vector<1x1x14x672xf32>,
      %c0_141 = arith.constant 0 : index
      %c0_142 = arith.constant 0 : index
      %297 = vector.load %arg7[%c0_141, %c0_142] : memref<1x672xf32, #tpu.memory_space<vmem>>, vector<1x672xf32>
      %cst_143 = arith.constant dense<0.000000e+00> : vector<672xf32>
      %298 = vector.multi_reduction <add>, %292, %cst_143 [0] : vector<14x672xf32> to vector<672xf32>
      %299 = vector.shape_cast %298 : vector<672xf32> to vector<1x672xf32>
      %300 = arith.addf %297, %299 : vector<1x672xf32>
      %c0_144 = arith.constant 0 : index
      %c0_145 = arith.constant 0 : index
      %301 = vector.load %arg7[%c0_144, %c0_145] : memref<1x672xf32, #tpu.memory_space<vmem>>, vector<1x672xf32>
      tpu.vector_store %arg7[%c0_144, %c0_145], %300 {strides = array<i32>} : memref<1x672xf32, #tpu.memory_space<vmem>>, vector<1x672xf32>,
      %c0_146 = arith.constant 0 : index
      %c0_147 = arith.constant 0 : index
      %302 = vector.load %arg8[%c0_146, %c0_147] : memref<1x672xf32, #tpu.memory_space<vmem>>, vector<1x672xf32>
      %303 = arith.mulf %292, %292 : vector<14x672xf32>
      %cst_148 = arith.constant dense<0.000000e+00> : vector<672xf32>
      %304 = vector.multi_reduction <add>, %303, %cst_148 [0] : vector<14x672xf32> to vector<672xf32>
      %305 = vector.shape_cast %304 : vector<672xf32> to vector<1x672xf32>
      %306 = arith.addf %302, %305 : vector<1x672xf32>
      %c0_149 = arith.constant 0 : index
      %c0_150 = arith.constant 0 : index
      %307 = vector.load %arg8[%c0_149, %c0_150] : memref<1x672xf32, #tpu.memory_space<vmem>>, vector<1x672xf32>
      tpu.vector_store %arg8[%c0_149, %c0_150], %306 {strides = array<i32>} : memref<1x672xf32, #tpu.memory_space<vmem>>, vector<1x672xf32>,
    }
    %c14_i32_26 = arith.constant 14 : i32
    %c0_27 = arith.constant 0 : index
    %c0_28 = arith.constant 0 : index
    %21 = vector.load %arg7[%c0_27, %c0_28] : memref<1x672xf32, #tpu.memory_space<vmem>>, vector<1x672xf32>
    %cst_29 = arith.constant 0.00510204071 : f32
    %22 = vector.broadcast %cst_29 : f32 to vector<1x672xf32>
    %23 = arith.mulf %21, %22 : vector<1x672xf32>
    %c0_30 = arith.constant 0 : index
    %c0_31 = arith.constant 0 : index
    %24 = vector.load %arg8[%c0_30, %c0_31] : memref<1x672xf32, #tpu.memory_space<vmem>>, vector<1x672xf32>
    %cst_32 = arith.constant 0.00510204071 : f32
    %25 = vector.broadcast %cst_32 : f32 to vector<1x672xf32>
    %26 = arith.mulf %24, %25 : vector<1x672xf32>
    %27 = arith.mulf %23, %23 : vector<1x672xf32>
    %28 = arith.subf %26, %27 : vector<1x672xf32>
    %cst_33 = arith.constant 9.99999974E-6 : f32
    %29 = vector.broadcast %cst_33 : f32 to vector<1x672xf32>
    %30 = arith.addf %28, %29 : vector<1x672xf32>
    %31 = math.rsqrt %30 : vector<1x672xf32>
    %c0_34 = arith.constant 0 : index
    %c0_35 = arith.constant 0 : index
    %32 = vector.load %arg3[%c0_34, %c0_35] : memref<1x672xf32, #tpu.memory_space<vmem>>, vector<1x672xf32>
    %33 = arith.mulf %32, %31 : vector<1x672xf32>
    %c0_36 = arith.constant 0 : index
    %c0_37 = arith.constant 0 : index
    %34 = vector.load %arg4[%c0_36, %c0_37] : memref<1x672xf32, #tpu.memory_space<vmem>>, vector<1x672xf32>
    %35 = arith.mulf %23, %33 : vector<1x672xf32>
    %36 = arith.subf %34, %35 : vector<1x672xf32>
    %37 = vector.shape_cast %33 : vector<1x672xf32> to vector<1x672xf32>
    %38 = vector.broadcast %37 : vector<1x672xf32> to vector<14x672xf32>
    %39 = vector.shape_cast %36 : vector<1x672xf32> to vector<1x672xf32>
    %40 = vector.broadcast %39 : vector<1x672xf32> to vector<14x672xf32>
    %c0_i32_38 = arith.constant 0 : i32
    %c14_i32_39 = arith.constant 14 : i32
    %41 = arith.addi %c0_i32_38, %c14_i32_39 : i32
    %c1_i32_40 = arith.constant 1 : i32
    scf.for %arg9 = %c0_i32_38 to %41 step %c1_i32_40  : i32 {
      %c1_i32_42 = arith.constant 1 : i32
      %42 = arith.muli %arg9, %c1_i32_42 : i32
      %c0_i32_43 = arith.constant 0 : i32
      %43 = arith.addi %c0_i32_43, %42 : i32
      %c0_44 = arith.constant 0 : index
      %44 = arith.index_cast %43 : i32 to index
      %c0_45 = arith.constant 0 : index
      %c0_46 = arith.constant 0 : index
      %45 = vector.load %arg5[%c0_44, %44, %c0_45, %c0_46] : memref<1x14x14x672xf32, #tpu.memory_space<vmem>>, vector<1x1x14x672xf32>
      %46 = vector.shape_cast %45 : vector<1x1x14x672xf32> to vector<14x672xf32>
      %47 = arith.mulf %46, %38 : vector<14x672xf32>
      %48 = arith.addf %47, %40 : vector<14x672xf32>
      %c0_47 = arith.constant 0 : index
      %49 = arith.index_cast %43 : i32 to index
      %c0_48 = arith.constant 0 : index
      %c0_49 = arith.constant 0 : index
      %50 = vector.load %arg5[%c0_47, %49, %c0_48, %c0_49] : memref<1x14x14x672xf32, #tpu.memory_space<vmem>>, vector<1x1x14x672xf32>
      %51 = vector.shape_cast %50 : vector<1x1x14x672xf32> to vector<14x672xf32>
      %52 = vector.shape_cast %48 : vector<14x672xf32> to vector<1x1x14x672xf32>
      tpu.vector_store %arg5[%c0_47, %49, %c0_48, %c0_49], %52 {strides = array<i32>} : memref<1x14x14x672xf32, #tpu.memory_space<vmem>>, vector<1x1x14x672xf32>,
    }
    %c14_i32_41 = arith.constant 14 : i32
    return
  }
  func.func @transform_0(%arg0: i32) -> (i32, i32, i32, i32) {
    %c0_i32 = arith.constant 0 : i32
    %c0_i32_0 = arith.constant 0 : i32
    %c0_i32_1 = arith.constant 0 : i32
    %c0_i32_2 = arith.constant 0 : i32
    return %c0_i32, %c0_i32_0, %c0_i32_1, %arg0 : i32, i32, i32, i32
  }
  func.func @transform_1(%arg0: i32) -> (i32, i32) {
    %c0_i32 = arith.constant 0 : i32
    %c0_i32_0 = arith.constant 0 : i32
    return %c0_i32, %arg0 : i32, i32
  }
  func.func @transform_2(%arg0: i32) -> (i32, i32) {
    %c0_i32 = arith.constant 0 : i32
    %c0_i32_0 = arith.constant 0 : i32
    return %c0_i32, %arg0 : i32, i32
  }
  func.func @transform_3(%arg0: i32) -> (i32, i32) {
    %c0_i32 = arith.constant 0 : i32
    %c0_i32_0 = arith.constant 0 : i32
    return %c0_i32, %arg0 : i32, i32
  }
  func.func @transform_4(%arg0: i32) -> (i32, i32, i32, i32) {
    %c0_i32 = arith.constant 0 : i32
    %c0_i32_0 = arith.constant 0 : i32
    %c0_i32_1 = arith.constant 0 : i32
    %c0_i32_2 = arith.constant 0 : i32
    return %c0_i32, %c0_i32_0, %c0_i32_1, %arg0 : i32, i32, i32, i32
  }
}

</mosaic_0001>

<bundles_post_ra>
// kernel: dwconv_bn.1
= control target key start
LH: loop header
LB: loop body
LE: loop exit
PB: predicated region body
PF: predicated region fallthrough
CT: control target
= control target key end

     0   :  { %v5829_v0 = vlaneseq  ;;  %vm52_vm0 = vcmask 261120   ;;  %vm65_vm1 = vcmask 254976   ;;  %v3688_v4 = vmov 0.0   ;;  %s4126_s11 = smov 0   ;;  %s5824_s0 = inlined_call_operand.vmem [shape: f32[1,14,14,672], index: 0, kind: input, shape index: {}]   ;;  %s5825_s1 = inlined_call_operand.vmem [shape: f32[25,672], index: 1, kind: input, shape index: {}]   ;;  %s5826_s2 = inlined_call_operand.vmem [shape: f32[1,672], index: 2, kind: input, shape index: {}]   ;;  %s5827_s3 = inlined_call_operand.vmem [shape: f32[1,672], index: 3, kind: input, shape index: {}]   ;;  %s5828_s4 = inlined_call_operand.vmem [shape: f32[1,14,14,672], index: 4, kind: output, shape index: {}]  }
   0x1   :  { %v3718_v1 = vld [vmem:[%s5825_s1] sm:$0xff]  ;;  %v3723_v2 = vld [vmem:[%s5825_s1 + $0x8] sm:$0xff]  ;;  %v3728_v3 = vld [vmem:[%s5825_s1 + $0x10] sm:$0xff]  ;;  %47 = vst [vmem:[#allocation2] sm:$0xff] %v3688_v4  ;;  %v5912_v8 = vmov 0 }
   0x2   :  { %5906 = vst [vmem:[#allocation5_spill] sm:$0xff] %v3718_v1  ;;  %5907 = vst [vmem:[#allocation6_spill] sm:$0xff] %v3723_v2  ;;  %v4013_v5 = vld [vmem:[%s5825_s1 + $0x18] sm:$0xff]  ;;  %v4018_v6 = vld [vmem:[%s5825_s1 + $0x20] sm:$0xff]  ;;  %vm4026_vm2 = vcmp.lt.s32.totalorder %v5829_v0, 672 }
   0x3   :  { %5908 = vst [vmem:[#allocation7_spill] sm:$0xff] %v3728_v3  ;;  %48 = vst [vmem:[#allocation2 + $0x8] sm:$0xff] %v3688_v4  ;;  %v4023_v7 = vld [vmem:[%s5825_s1 + $0x28] sm:$0xff]  ;;  %v5913_v8 = vsel %vm4026_vm2, 4294967295, %v5912_v8  ;;  %v4033_v9 = vld [vmem:[%s5825_s1 + $0x30] sm:$0xff] }
   0x4   :  { %49 = vst [vmem:[#allocation2 + $0x10] sm:$0xff] %v3688_v4  ;;  %50 = vst [vmem:[#allocation2 + $0x18] sm:$0xff] %v3688_v4  ;;  %v4038_v10 = vld [vmem:[%s5825_s1 + $0x38] sm:$0xff]  ;;  %v4043_v11 = vld [vmem:[%s5825_s1 + $0x40] sm:$0xff] }
   0x5   :  { %51 = vst [vmem:[#allocation2 + $0x20] sm:$0xff] %v3688_v4  ;;  %54 = vst [vmem:[#allocation2 + $0x30] sm:$0xff] %v3688_v4  ;;  %v4054_v12 = vld [vmem:[%s5825_s1 + $0x48] sm:$0xff]  ;;  %v4059_v13 = vld [vmem:[%s5825_s1 + $0x50] sm:$0xff] }
   0x6   :  { %55 = vst [vmem:[#allocation2 + $0x38] sm:$0xff] %v3688_v4  ;;  %56 = vst [vmem:[#allocation2 + $0x40] sm:$0xff] %v3688_v4  ;;  %v4064_v14 = vld [vmem:[%s5825_s1 + $0x58] sm:$0xff]  ;;  %v4069_v15 = vld [vmem:[%s5825_s1 + $0x60] sm:$0xff] }
   0x7   :  { %57 = vst [vmem:[#allocation2 + $0x48] sm:$0xff] %v3688_v4  ;;  %58 = vst [vmem:[#allocation2 + $0x50] sm:$0xff] %v3688_v4  ;;  %v4074_v16 = vld [vmem:[%s5825_s1 + $0x68] sm:$0xff]  ;;  %v4079_v17 = vld [vmem:[%s5825_s1 + $0x70] sm:$0xff] }
   0x8   :  { %60 = vst [vmem:[#allocation2 + $0x60] sm:$0x3] %v3688_v4  ;;  %61 = vst [vmem:[#allocation2 + $0x68] sm:$0x3] %v3688_v4  ;;  %v4084_v18 = vld [vmem:[%s5825_s1 + $0x78] sm:$0xff]  ;;  %v4089_v19 = vld [vmem:[%s5825_s1 + $0x80] sm:$0xff] }
   0x9   :  { %62 = vst [vmem:[#allocation2 + $0x70] sm:$0x3] %v3688_v4  ;;  %63 = vst [vmem:[#allocation2 + $0x78] sm:$0x3] %v3688_v4  ;;  %v4094_v20 = vld [vmem:[%s5825_s1 + $0x88] sm:$0xff] }
   0xa   :  { %64 = vst [vmem:[#allocation2 + $0x80] sm:$0x3] %v3688_v4  ;;  %67 = vst [vmem:[#allocation2 + $0x90] sm:$0xff] %v3688_v4  ;;  %v4099_v21 = vld [vmem:[%s5825_s1 + $0x90] ss:$0 sm:$0xff] }
   0xb   :  { %68 = vst [vmem:[#allocation2 + $0x98] sm:$0xff] %v3688_v4  ;;  %69 = vst [vmem:[#allocation2 + $0xa0] sm:$0xff] %v3688_v4  ;;  %v4104_v22 = vld [vmem:[%s5825_s1 + $0x98] ss:$0 sm:$0xff]  ;;  %v4109_v23 = vld [vmem:[%s5825_s1 + $0xa0] ss:$0 sm:$0xff] }
   0xc   :  { %70 = vst [vmem:[#allocation2 + $0xa8] sm:$0xff] %v3688_v4  ;;  %71 = vst [vmem:[#allocation2 + $0xb0] sm:$0xff] %v3688_v4  ;;  %v4114_v24 = vld [vmem:[%s5825_s1 + $0xa8] ss:$0 sm:$0xff]  ;;  %v4119_v25 = vld [vmem:[%s5825_s1 + $0xb0] ss:$0 sm:$0xff] }
   0xd   :  { %73 = vst [vmem:[#allocation2 + $0xc0] sm:$0xff] %v3688_v4  ;;  %74 = vst [vmem:[#allocation2 + $0xc8] sm:$0xff] %v3688_v4  ;;  %v4124_v26 = vld [vmem:[%s5825_s1 + $0xb8] ss:$0 sm:$0xff] }
   0xe   :  { %75 = vst [vmem:[#allocation2 + $0xd0] sm:$0xff] %v3688_v4  ;;  %76 = vst [vmem:[#allocation2 + $0xd8] sm:$0xff] %v3688_v4 }
   0xf   :  { %77 = vst [vmem:[#allocation2 + $0xe0] sm:$0xff] %v3688_v4  ;;  %79 = vst [vmem:[#allocation2 + $0xf0] sm:$0x3] %v3688_v4 }
  0x10   :  { %80 = vst [vmem:[#allocation2 + $0xf8] sm:$0x3] %v3688_v4  ;;  %81 = vst [vmem:[#allocation2 + $0x100] sm:$0x3] %v3688_v4 }
  0x11   :  { %82 = vst [vmem:[#allocation2 + $0x108] sm:$0x3] %v3688_v4  ;;  %83 = vst [vmem:[#allocation2 + $0x110] sm:$0x3] %v3688_v4 }
  0x12   :  { %86 = vst [vmem:[#allocation2 + $0x900] sm:$0xff] %v3688_v4  ;;  %87 = vst [vmem:[#allocation2 + $0x908] sm:$0xff] %v3688_v4 }
  0x13   :  { %88 = vst [vmem:[#allocation2 + $0x910] sm:$0xff] %v3688_v4  ;;  %89 = vst [vmem:[#allocation2 + $0x918] sm:$0xff] %v3688_v4 }
  0x14   :  { %90 = vst [vmem:[#allocation2 + $0x920] sm:$0xff] %v3688_v4  ;;  %92 = vst [vmem:[#allocation2 + $0x930] sm:$0xff] %v3688_v4 }
  0x15   :  { %93 = vst [vmem:[#allocation2 + $0x938] sm:$0xff] %v3688_v4  ;;  %94 = vst [vmem:[#allocation2 + $0x940] sm:$0xff] %v3688_v4 }
  0x16   :  { %95 = vst [vmem:[#allocation2 + $0x948] sm:$0xff] %v3688_v4  ;;  %96 = vst [vmem:[#allocation2 + $0x950] sm:$0xff] %v3688_v4 }
  0x17   :  { %98 = vst [vmem:[#allocation2 + $0x960] sm:$0x3] %v3688_v4  ;;  %99 = vst [vmem:[#allocation2 + $0x968] sm:$0x3] %v3688_v4 }
  0x18   :  { %100 = vst [vmem:[#allocation2 + $0x970] sm:$0x3] %v3688_v4  ;;  %101 = vst [vmem:[#allocation2 + $0x978] sm:$0x3] %v3688_v4 }
  0x19   :  { %102 = vst [vmem:[#allocation2 + $0x980] sm:$0x3] %v3688_v4  ;;  %104 = vst [vmem:[#allocation2 + $0x990] sm:$0xff] %v3688_v4 }
  0x1a   :  { %105 = vst [vmem:[#allocation2 + $0x998] sm:$0xff] %v3688_v4  ;;  %106 = vst [vmem:[#allocation2 + $0x9a0] sm:$0xff] %v3688_v4 }
  0x1b   :  { %107 = vst [vmem:[#allocation2 + $0x9a8] sm:$0xff] %v3688_v4  ;;  %108 = vst [vmem:[#allocation2 + $0x9b0] sm:$0xff] %v3688_v4 }
  0x1c   :  { %110 = vst [vmem:[#allocation2 + $0x9c0] sm:$0xff] %v3688_v4  ;;  %111 = vst [vmem:[#allocation2 + $0x9c8] sm:$0xff] %v3688_v4 }
  0x1d   :  { %112 = vst [vmem:[#allocation2 + $0x9d0] sm:$0xff] %v3688_v4  ;;  %113 = vst [vmem:[#allocation2 + $0x9d8] sm:$0xff] %v3688_v4 }
  0x1e   :  { %114 = vst [vmem:[#allocation2 + $0x9e0] sm:$0xff] %v3688_v4  ;;  %116 = vst [vmem:[#allocation2 + $0x9f0] sm:$0x3] %v3688_v4 }
  0x1f   :  { %117 = vst [vmem:[#allocation2 + $0x9f8] sm:$0x3] %v3688_v4  ;;  %118 = vst [vmem:[#allocation2 + $0xa00] sm:$0x3] %v3688_v4 }
  0x20   :  { %119 = vst [vmem:[#allocation2 + $0xa08] sm:$0x3] %v3688_v4  ;;  %120 = vst [vmem:[#allocation2 + $0xa10] sm:$0x3] %v3688_v4 }
  0x21   :  { %123 = vst [vmem:[#allocation2 + $0x120] sm:$0x3] %v3688_v4  ;;  %124 = vst [vmem:[#allocation2 + $0x128] sm:$0x3] %v3688_v4 }
  0x22   :  { %125 = vst [vmem:[#allocation2 + $0x130] sm:$0x3] %v3688_v4  ;;  %126 = vst [vmem:[#allocation2 + $0x138] sm:$0x3] %v3688_v4 }
  0x23   :  { %127 = vst [vmem:[#allocation2 + $0x140] sm:$0x3] %v3688_v4  ;;  %129 = vst [vmem:[#allocation2 + $0x1b0] sm:$0x3] %v3688_v4 }
  0x24   :  { %130 = vst [vmem:[#allocation2 + $0x1b8] sm:$0x3] %v3688_v4  ;;  %131 = vst [vmem:[#allocation2 + $0x1c0] sm:$0x3] %v3688_v4 }
  0x25   :  { %132 = vst [vmem:[#allocation2 + $0x1c8] sm:$0x3] %v3688_v4  ;;  %133 = vst [vmem:[#allocation2 + $0x1d0] sm:$0x3] %v3688_v4 }
  0x26   :  { %135 = vst [vmem:[#allocation2 + $0x240] sm:$0x3] %v3688_v4  ;;  %136 = vst [vmem:[#allocation2 + $0x248] sm:$0x3] %v3688_v4 }
  0x27   :  { %137 = vst [vmem:[#allocation2 + $0x250] sm:$0x3] %v3688_v4  ;;  %138 = vst [vmem:[#allocation2 + $0x258] sm:$0x3] %v3688_v4 }
  0x28   :  { %139 = vst [vmem:[#allocation2 + $0x260] sm:$0x3] %v3688_v4  ;;  %141 = vst [vmem:[#allocation2 + $0x2d0] sm:$0x3] %v3688_v4 }
  0x29   :  { %142 = vst [vmem:[#allocation2 + $0x2d8] sm:$0x3] %v3688_v4  ;;  %143 = vst [vmem:[#allocation2 + $0x2e0] sm:$0x3] %v3688_v4 }
  0x2a   :  { %144 = vst [vmem:[#allocation2 + $0x2e8] sm:$0x3] %v3688_v4  ;;  %145 = vst [vmem:[#allocation2 + $0x2f0] sm:$0x3] %v3688_v4 }
  0x2b   :  { %147 = vst [vmem:[#allocation2 + $0x360] sm:$0x3] %v3688_v4  ;;  %148 = vst [vmem:[#allocation2 + $0x368] sm:$0x3] %v3688_v4 }
  0x2c   :  { %149 = vst [vmem:[#allocation2 + $0x370] sm:$0x3] %v3688_v4  ;;  %150 = vst [vmem:[#allocation2 + $0x378] sm:$0x3] %v3688_v4 }
  0x2d   :  { %151 = vst [vmem:[#allocation2 + $0x380] sm:$0x3] %v3688_v4  ;;  %153 = vst [vmem:[#allocation2 + $0x3f0] sm:$0x3] %v3688_v4 }
  0x2e   :  { %154 = vst [vmem:[#allocation2 + $0x3f8] sm:$0x3] %v3688_v4  ;;  %155 = vst [vmem:[#allocation2 + $0x400] sm:$0x3] %v3688_v4 }
  0x2f   :  { %156 = vst [vmem:[#allocation2 + $0x408] sm:$0x3] %v3688_v4  ;;  %157 = vst [vmem:[#allocation2 + $0x410] sm:$0x3] %v3688_v4 }
  0x30   :  { %159 = vst [vmem:[#allocation2 + $0x480] sm:$0x3] %v3688_v4  ;;  %160 = vst [vmem:[#allocation2 + $0x488] sm:$0x3] %v3688_v4 }
  0x31   :  { %161 = vst [vmem:[#allocation2 + $0x490] sm:$0x3] %v3688_v4  ;;  %162 = vst [vmem:[#allocation2 + $0x498] sm:$0x3] %v3688_v4 }
  0x32   :  { %163 = vst [vmem:[#allocation2 + $0x4a0] sm:$0x3] %v3688_v4  ;;  %165 = vst [vmem:[#allocation2 + $0x510] sm:$0x3] %v3688_v4 }
  0x33   :  { %166 = vst [vmem:[#allocation2 + $0x518] sm:$0x3] %v3688_v4  ;;  %167 = vst [vmem:[#allocation2 + $0x520] sm:$0x3] %v3688_v4 }
  0x34   :  { %168 = vst [vmem:[#allocation2 + $0x528] sm:$0x3] %v3688_v4  ;;  %169 = vst [vmem:[#allocation2 + $0x530] sm:$0x3] %v3688_v4 }
  0x35   :  { %171 = vst [vmem:[#allocation2 + $0x5a0] sm:$0x3] %v3688_v4  ;;  %172 = vst [vmem:[#allocation2 + $0x5a8] sm:$0x3] %v3688_v4 }
  0x36   :  { %173 = vst [vmem:[#allocation2 + $0x5b0] sm:$0x3] %v3688_v4  ;;  %174 = vst [vmem:[#allocation2 + $0x5b8] sm:$0x3] %v3688_v4 }
  0x37   :  { %175 = vst [vmem:[#allocation2 + $0x5c0] sm:$0x3] %v3688_v4  ;;  %177 = vst [vmem:[#allocation2 + $0x630] sm:$0x3] %v3688_v4 }
  0x38   :  { %178 = vst [vmem:[#allocation2 + $0x638] sm:$0x3] %v3688_v4  ;;  %179 = vst [vmem:[#allocation2 + $0x640] sm:$0x3] %v3688_v4 }
  0x39   :  { %180 = vst [vmem:[#allocation2 + $0x648] sm:$0x3] %v3688_v4  ;;  %181 = vst [vmem:[#allocation2 + $0x650] sm:$0x3] %v3688_v4 }
  0x3a   :  { %183 = vst [vmem:[#allocation2 + $0x6c0] sm:$0x3] %v3688_v4  ;;  %184 = vst [vmem:[#allocation2 + $0x6c8] sm:$0x3] %v3688_v4 }
  0x3b   :  { %185 = vst [vmem:[#allocation2 + $0x6d0] sm:$0x3] %v3688_v4  ;;  %186 = vst [vmem:[#allocation2 + $0x6d8] sm:$0x3] %v3688_v4 }
  0x3c   :  { %187 = vst [vmem:[#allocation2 + $0x6e0] sm:$0x3] %v3688_v4  ;;  %189 = vst [vmem:[#allocation2 + $0x750] sm:$0x3] %v3688_v4 }
  0x3d   :  { %190 = vst [vmem:[#allocation2 + $0x758] sm:$0x3] %v3688_v4  ;;  %191 = vst [vmem:[#allocation2 + $0x760] sm:$0x3] %v3688_v4 }
  0x3e   :  { %192 = vst [vmem:[#allocation2 + $0x768] sm:$0x3] %v3688_v4  ;;  %193 = vst [vmem:[#allocation2 + $0x770] sm:$0x3] %v3688_v4 }
  0x3f   :  { %195 = vst [vmem:[#allocation2 + $0x7e0] sm:$0x3] %v3688_v4  ;;  %196 = vst [vmem:[#allocation2 + $0x7e8] sm:$0x3] %v3688_v4 }
  0x40   :  { %197 = vst [vmem:[#allocation2 + $0x7f0] sm:$0x3] %v3688_v4  ;;  %198 = vst [vmem:[#allocation2 + $0x7f8] sm:$0x3] %v3688_v4 }
  0x41   :  { %199 = vst [vmem:[#allocation2 + $0x800] sm:$0x3] %v3688_v4  ;;  %201 = vst [vmem:[#allocation2 + $0x870] sm:$0x3] %v3688_v4 }
  0x42   :  { %202 = vst [vmem:[#allocation2 + $0x878] sm:$0x3] %v3688_v4  ;;  %203 = vst [vmem:[#allocation2 + $0x880] sm:$0x3] %v3688_v4 }
  0x43   :  { %204 = vst [vmem:[#allocation2 + $0x888] sm:$0x3] %v3688_v4  ;;  %205 = vst [vmem:[#allocation2 + $0x890] sm:$0x3] %v3688_v4 }
  0x44   :  { %207 = vst [vmem:[#allocation2 + $0x180] sm:$0x3] %v3688_v4  ;;  %208 = vst [vmem:[#allocation2 + $0x188] sm:$0x3] %v3688_v4 }
  0x45   :  { %209 = vst [vmem:[#allocation2 + $0x190] sm:$0x3] %v3688_v4  ;;  %210 = vst [vmem:[#allocation2 + $0x198] sm:$0x3] %v3688_v4 }
  0x46   :  { %211 = vst [vmem:[#allocation2 + $0x1a0] sm:$0x3] %v3688_v4  ;;  %213 = vst [vmem:[#allocation2 + $0x210] sm:$0x3] %v3688_v4 }
  0x47   :  { %214 = vst [vmem:[#allocation2 + $0x218] sm:$0x3] %v3688_v4  ;;  %215 = vst [vmem:[#allocation2 + $0x220] sm:$0x3] %v3688_v4 }
  0x48   :  { %216 = vst [vmem:[#allocation2 + $0x228] sm:$0x3] %v3688_v4  ;;  %217 = vst [vmem:[#allocation2 + $0x230] sm:$0x3] %v3688_v4 }
  0x49   :  { %219 = vst [vmem:[#allocation2 + $0x2a0] sm:$0x3] %v3688_v4  ;;  %220 = vst [vmem:[#allocation2 + $0x2a8] sm:$0x3] %v3688_v4 }
  0x4a   :  { %221 = vst [vmem:[#allocation2 + $0x2b0] sm:$0x3] %v3688_v4  ;;  %222 = vst [vmem:[#allocation2 + $0x2b8] sm:$0x3] %v3688_v4 }
  0x4b   :  { %223 = vst [vmem:[#allocation2 + $0x2c0] sm:$0x3] %v3688_v4  ;;  %225 = vst [vmem:[#allocation2 + $0x330] sm:$0x3] %v3688_v4 }
  0x4c   :  { %226 = vst [vmem:[#allocation2 + $0x338] sm:$0x3] %v3688_v4  ;;  %227 = vst [vmem:[#allocation2 + $0x340] sm:$0x3] %v3688_v4 }
  0x4d   :  { %228 = vst [vmem:[#allocation2 + $0x348] sm:$0x3] %v3688_v4  ;;  %229 = vst [vmem:[#allocation2 + $0x350] sm:$0x3] %v3688_v4 }
  0x4e   :  { %231 = vst [vmem:[#allocation2 + $0x3c0] sm:$0x3] %v3688_v4  ;;  %232 = vst [vmem:[#allocation2 + $0x3c8] sm:$0x3] %v3688_v4 }
  0x4f   :  { %233 = vst [vmem:[#allocation2 + $0x3d0] sm:$0x3] %v3688_v4  ;;  %234 = vst [vmem:[#allocation2 + $0x3d8] sm:$0x3] %v3688_v4 }
  0x50   :  { %235 = vst [vmem:[#allocation2 + $0x3e0] sm:$0x3] %v3688_v4  ;;  %237 = vst [vmem:[#allocation2 + $0x450] sm:$0x3] %v3688_v4 }
  0x51   :  { %238 = vst [vmem:[#allocation2 + $0x458] sm:$0x3] %v3688_v4  ;;  %239 = vst [vmem:[#allocation2 + $0x460] sm:$0x3] %v3688_v4 }
  0x52   :  { %240 = vst [vmem:[#allocation2 + $0x468] sm:$0x3] %v3688_v4  ;;  %241 = vst [vmem:[#allocation2 + $0x470] sm:$0x3] %v3688_v4 }
  0x53   :  { %243 = vst [vmem:[#allocation2 + $0x4e0] sm:$0x3] %v3688_v4  ;;  %244 = vst [vmem:[#allocation2 + $0x4e8] sm:$0x3] %v3688_v4 }
  0x54   :  { %245 = vst [vmem:[#allocation2 + $0x4f0] sm:$0x3] %v3688_v4  ;;  %246 = vst [vmem:[#allocation2 + $0x4f8] sm:$0x3] %v3688_v4 }
  0x55   :  { %247 = vst [vmem:[#allocation2 + $0x500] sm:$0x3] %v3688_v4  ;;  %249 = vst [vmem:[#allocation2 + $0x570] sm:$0x3] %v3688_v4 }
  0x56   :  { %250 = vst [vmem:[#allocation2 + $0x578] sm:$0x3] %v3688_v4  ;;  %251 = vst [vmem:[#allocation2 + $0x580] sm:$0x3] %v3688_v4 }
  0x57   :  { %252 = vst [vmem:[#allocation2 + $0x588] sm:$0x3] %v3688_v4  ;;  %253 = vst [vmem:[#allocation2 + $0x590] sm:$0x3] %v3688_v4 }
  0x58   :  { %255 = vst [vmem:[#allocation2 + $0x600] sm:$0x3] %v3688_v4  ;;  %256 = vst [vmem:[#allocation2 + $0x608] sm:$0x3] %v3688_v4 }
  0x59   :  { %257 = vst [vmem:[#allocation2 + $0x610] sm:$0x3] %v3688_v4  ;;  %258 = vst [vmem:[#allocation2 + $0x618] sm:$0x3] %v3688_v4 }
  0x5a   :  { %259 = vst [vmem:[#allocation2 + $0x620] sm:$0x3] %v3688_v4  ;;  %261 = vst [vmem:[#allocation2 + $0x690] sm:$0x3] %v3688_v4 }
  0x5b   :  { %262 = vst [vmem:[#allocation2 + $0x698] sm:$0x3] %v3688_v4  ;;  %263 = vst [vmem:[#allocation2 + $0x6a0] sm:$0x3] %v3688_v4 }
  0x5c   :  { %264 = vst [vmem:[#allocation2 + $0x6a8] sm:$0x3] %v3688_v4  ;;  %265 = vst [vmem:[#allocation2 + $0x6b0] sm:$0x3] %v3688_v4 }
  0x5d   :  { %267 = vst [vmem:[#allocation2 + $0x720] sm:$0x3] %v3688_v4  ;;  %268 = vst [vmem:[#allocation2 + $0x728] sm:$0x3] %v3688_v4 }
  0x5e   :  { %269 = vst [vmem:[#allocation2 + $0x730] sm:$0x3] %v3688_v4  ;;  %270 = vst [vmem:[#allocation2 + $0x738] sm:$0x3] %v3688_v4 }
  0x5f   :  { %271 = vst [vmem:[#allocation2 + $0x740] sm:$0x3] %v3688_v4  ;;  %273 = vst [vmem:[#allocation2 + $0x7b0] sm:$0x3] %v3688_v4 }
  0x60   :  { %274 = vst [vmem:[#allocation2 + $0x7b8] sm:$0x3] %v3688_v4  ;;  %275 = vst [vmem:[#allocation2 + $0x7c0] sm:$0x3] %v3688_v4 }
  0x61   :  { %276 = vst [vmem:[#allocation2 + $0x7c8] sm:$0x3] %v3688_v4  ;;  %277 = vst [vmem:[#allocation2 + $0x7d0] sm:$0x3] %v3688_v4 }
  0x62   :  { %279 = vst [vmem:[#allocation2 + $0x840] sm:$0x3] %v3688_v4  ;;  %280 = vst [vmem:[#allocation2 + $0x848] sm:$0x3] %v3688_v4 }
  0x63   :  { %281 = vst [vmem:[#allocation2 + $0x850] sm:$0x3] %v3688_v4  ;;  %282 = vst [vmem:[#allocation2 + $0x858] sm:$0x3] %v3688_v4 }
  0x64   :  { %283 = vst [vmem:[#allocation2 + $0x860] sm:$0x3] %v3688_v4  ;;  %285 = vst [vmem:[#allocation2 + $0x8d0] sm:$0x3] %v3688_v4 }
  0x65   :  { %286 = vst [vmem:[#allocation2 + $0x8d8] sm:$0x3] %v3688_v4  ;;  %287 = vst [vmem:[#allocation2 + $0x8e0] sm:$0x3] %v3688_v4 }
  0x66   :  { %288 = vst [vmem:[#allocation2 + $0x8e8] sm:$0x3] %v3688_v4  ;;  %289 = vst [vmem:[#allocation2 + $0x8f0] sm:$0x3] %v3688_v4 }
  0x67   :  { %53 = vst.msk [vmem:[#allocation2 + $0x28] sm:$0xff] %vm52_vm0, %v3688_v4  ;;  %59 = vst.msk [vmem:[#allocation2 + $0x58] sm:$0xff] %vm52_vm0, %v3688_v4 }
  0x68   :  { %72 = vst.msk [vmem:[#allocation2 + $0xb8] sm:$0xff] %vm52_vm0, %v3688_v4  ;;  %78 = vst.msk [vmem:[#allocation2 + $0xe8] sm:$0xff] %vm52_vm0, %v3688_v4 }
  0x69   :  { %91 = vst.msk [vmem:[#allocation2 + $0x928] sm:$0xff] %vm52_vm0, %v3688_v4  ;;  %97 = vst.msk [vmem:[#allocation2 + $0x958] sm:$0xff] %vm52_vm0, %v3688_v4 }
  0x6a   :  { %109 = vst.msk [vmem:[#allocation2 + $0x9b8] sm:$0xff] %vm52_vm0, %v3688_v4  ;;  %115 = vst.msk [vmem:[#allocation2 + $0x9e8] sm:$0xff] %vm52_vm0, %v3688_v4 }
  0x6b   :  { %66 = vst.msk [vmem:[#allocation2 + $0x88] sm:$0x3] %vm65_vm1, %v3688_v4  ;;  %84 = vst.msk [vmem:[#allocation2 + $0x118] sm:$0x3] %vm65_vm1, %v3688_v4 }
  0x6c   :  { %103 = vst.msk [vmem:[#allocation2 + $0x988] sm:$0x3] %vm65_vm1, %v3688_v4  ;;  %121 = vst.msk [vmem:[#allocation2 + $0xa18] sm:$0x3] %vm65_vm1, %v3688_v4 }
  0x6d   :  { %128 = vst.msk [vmem:[#allocation2 + $0x148] sm:$0x3] %vm65_vm1, %v3688_v4  ;;  %134 = vst.msk [vmem:[#allocation2 + $0x1d8] sm:$0x3] %vm65_vm1, %v3688_v4 }
  0x6e   :  { %140 = vst.msk [vmem:[#allocation2 + $0x268] sm:$0x3] %vm65_vm1, %v3688_v4  ;;  %146 = vst.msk [vmem:[#allocation2 + $0x2f8] sm:$0x3] %vm65_vm1, %v3688_v4 }
  0x6f   :  { %152 = vst.msk [vmem:[#allocation2 + $0x388] sm:$0x3] %vm65_vm1, %v3688_v4  ;;  %158 = vst.msk [vmem:[#allocation2 + $0x418] sm:$0x3] %vm65_vm1, %v3688_v4 }
  0x70   :  { %164 = vst.msk [vmem:[#allocation2 + $0x4a8] sm:$0x3] %vm65_vm1, %v3688_v4  ;;  %170 = vst.msk [vmem:[#allocation2 + $0x538] sm:$0x3] %vm65_vm1, %v3688_v4 }
  0x71   :  { %176 = vst.msk [vmem:[#allocation2 + $0x5c8] sm:$0x3] %vm65_vm1, %v3688_v4  ;;  %182 = vst.msk [vmem:[#allocation2 + $0x658] sm:$0x3] %vm65_vm1, %v3688_v4 }
  0x72   :  { %188 = vst.msk [vmem:[#allocation2 + $0x6e8] sm:$0x3] %vm65_vm1, %v3688_v4  ;;  %194 = vst.msk [vmem:[#allocation2 + $0x778] sm:$0x3] %vm65_vm1, %v3688_v4 }
  0x73   :  { %200 = vst.msk [vmem:[#allocation2 + $0x808] sm:$0x3] %vm65_vm1, %v3688_v4  ;;  %206 = vst.msk [vmem:[#allocation2 + $0x898] sm:$0x3] %vm65_vm1, %v3688_v4 }
  0x74   :  { %212 = vst.msk [vmem:[#allocation2 + $0x1a8] sm:$0x3] %vm65_vm1, %v3688_v4  ;;  %218 = vst.msk [vmem:[#allocation2 + $0x238] sm:$0x3] %vm65_vm1, %v3688_v4 }
  0x75   :  { %224 = vst.msk [vmem:[#allocation2 + $0x2c8] sm:$0x3] %vm65_vm1, %v3688_v4  ;;  %230 = vst.msk [vmem:[#allocation2 + $0x358] sm:$0x3] %vm65_vm1, %v3688_v4 }
  0x76   :  { %236 = vst.msk [vmem:[#allocation2 + $0x3e8] sm:$0x3] %vm65_vm1, %v3688_v4  ;;  %242 = vst.msk [vmem:[#allocation2 + $0x478] sm:$0x3] %vm65_vm1, %v3688_v4 }
  0x77   :  { %248 = vst.msk [vmem:[#allocation2 + $0x508] sm:$0x3] %vm65_vm1, %v3688_v4  ;;  %254 = vst.msk [vmem:[#allocation2 + $0x598] sm:$0x3] %vm65_vm1, %v3688_v4 }
  0x78   :  { %260 = vst.msk [vmem:[#allocation2 + $0x628] sm:$0x3] %vm65_vm1, %v3688_v4  ;;  %266 = vst.msk [vmem:[#allocation2 + $0x6b8] sm:$0x3] %vm65_vm1, %v3688_v4 }
  0x79   :  { %272 = vst.msk [vmem:[#allocation2 + $0x748] sm:$0x3] %vm65_vm1, %v3688_v4  ;;  %278 = vst.msk [vmem:[#allocation2 + $0x7d8] sm:$0x3] %vm65_vm1, %v3688_v4 }
  0x7a   :  { %284 = vst.msk [vmem:[#allocation2 + $0x868] sm:$0x3] %vm65_vm1, %v3688_v4  ;;  %290 = vst.msk [vmem:[#allocation2 + $0x8f8] sm:$0x3] %vm65_vm1, %v3688_v4 }
  0x7b   :  { %5909 = vst [vmem:[#allocation8_spill] sm:$0xff] %v4013_v5  ;;  %5910 = vst [vmem:[#allocation9_spill] sm:$0xff] %v4018_v6 }
  0x7c   :  { %5911 = vst [vmem:[#allocation10_spill] sm:$0xff] %v4023_v7  ;;  %5914 = vst [vmem:[#allocation11_spill] sm:$0xff] %v5913_v8 }
  0x7d   :  { %5915 = vst [vmem:[#allocation12_spill] sm:$0xff] %v4033_v9  ;;  %5916 = vst [vmem:[#allocation13_spill] sm:$0xff] %v4038_v10 }
  0x7e   :  { %5917 = vst [vmem:[#allocation14_spill] sm:$0xff] %v4043_v11  ;;  %45 = vst.msk [vmem:[#allocation3] sm:$0x3f] %vm4026_vm2, %v3688_v4 }
  0x7f   :  { %46 = vst.msk [vmem:[#allocation4] sm:$0x3f] %vm4026_vm2, %v3688_v4  ;;  %5918 = vst [vmem:[#allocation15_spill] sm:$0xff] %v4054_v12 }
  0x80   :  { %5919 = vst [vmem:[#allocation16_spill] sm:$0xff] %v4059_v13  ;;  %5920 = vst [vmem:[#allocation17_spill] sm:$0xff] %v4064_v14 }
  0x81   :  { %5921 = vst [vmem:[#allocation18_spill] sm:$0xff] %v4069_v15  ;;  %5922 = vst [vmem:[#allocation19_spill] sm:$0xff] %v4074_v16 }
  0x82   :  { %5923 = vst [vmem:[#allocation20_spill] sm:$0xff] %v4079_v17  ;;  %5924 = vst [vmem:[#allocation21_spill] sm:$0xff] %v4084_v18 }
  0x83   :  { %5925 = vst [vmem:[#allocation22_spill] sm:$0xff] %v4089_v19  ;;  %5926 = vst [vmem:[#allocation23_spill] sm:$0xff] %v4094_v20 }
  0x84   :  { %5927 = vst [vmem:[#allocation24_spill] sm:$0xff] %v4099_v21  ;;  %5928 = vst [vmem:[#allocation25_spill] sm:$0xff] %v4104_v22 }
  0x85   :  { %5929 = vst [vmem:[#allocation26_spill] sm:$0xff] %v4109_v23  ;;  %5930 = vst [vmem:[#allocation27_spill] sm:$0xff] %v4114_v24 }
  0x86   :  { %5931 = vst [vmem:[#allocation28_spill] sm:$0xff] %v4119_v25  ;;  %5932 = vst [vmem:[#allocation29_spill] sm:$0xff] %v4124_v26 }
  0x87 LB: > { %s3632_s12 = smul.u32 96, %s3678_s11  ;;  %vm364_vm3 = vcmask 261122   ;;  %vm325_vm4 = vcmask 1041408   ;;  %s3678_s11 = sphi %s4126_s11, %s296_s11  }
  0x88   : > { %s3334_s13 = smul.u32 144, %s3678_s11  ;;  %s296_s11 = sadd.s32 1, %s3678_s11  }
  0x89   : > { %s4136_s16 = scalar_lea.vmem %s5824_s0, %s3632_s12  ;;  %p293_p0 = scmp.ge.s32.totalorder %s296_s11, 14  }
  0x8a   : > { %v300_v27 = vld [vmem:[%s4136_s16] sm:$0xff]  ;;  %v301_v28 = vld [vmem:[%s4136_s16 + $0x8] sm:$0xff]  ;;  %v302_v29 = vld [vmem:[%s4136_s16 + $0x10] sm:$0xff]  ;;  %s3335_s1 = scalar_lea.vmem [#allocation2], %s3334_s13  ;;  %s4161_s17 = smov (%p293_p0), 0  }
  0x8b   : > { %v326_v30 = vrot.slane %v300_v27, 6  ;;  %v327_v31 = vrot.slane %v301_v28, 6  ;;  %v328_v32 = vrot.slane %v302_v29, 6  ;;  %v303_v33 = vld [vmem:[%s4136_s16 + $0x18] sm:$0xff]  ;;  %v304_v34 = vld [vmem:[%s4136_s16 + $0x20] sm:$0xff]  ;;  %v305_v35 = vld [vmem:[%s4136_s16 + $0x28] sm:$0xff] }
  0x8c   : > { %v329_v36 = vrot.slane %v303_v33, 6  ;;  %v330_v37 = vrot.slane %v304_v34, 6  ;;  %v331_v38 = vrot.slane %v305_v35, 6  ;;  %v306_v39 = vld [vmem:[%s4136_s16 + $0x30] sm:$0x3f] }
  0x8d   : > { %3371 = vst [vmem:[%s3335_s1 + $0x120] sm:$0xfc] %v326_v30  ;;  %3372 = vst [vmem:[%s3335_s1 + $0x128] sm:$0xfc] %v327_v31  ;;  %v332_v40 = vrot.slane %v306_v39, 6 }
  0x8e   : > { %3373 = vst [vmem:[%s3335_s1 + $0x130] sm:$0xfc] %v328_v32  ;;  %v307_v41 = vld [vmem:[%s4136_s16 + $0x38] sm:$0x3f]  ;;  %v308_v42 = vld [vmem:[%s4136_s16 + $0x40] sm:$0x3f] }
  0x8f   : > { %3374 = vst [vmem:[%s3335_s1 + $0x138] sm:$0xfc] %v329_v36  ;;  %3375 = vst [vmem:[%s3335_s1 + $0x140] sm:$0xfc] %v330_v37  ;;  %v334_v43 = vrot.slane %v307_v41, 6  ;;  %v336_v44 = vrot.slane %v308_v42, 6  ;;  %v333_v47 = vsel %vm325_vm4, %v326_v30, %v332_v40 }
  0x90   : > { %3376 = vst.msk [vmem:[%s3335_s1 + $0x148] sm:$0xfc] %vm364_vm3, %v331_v38  ;;  %v309_v45 = vld [vmem:[%s4136_s16 + $0x48] sm:$0x3f]  ;;  %v310_v46 = vld [vmem:[%s4136_s16 + $0x50] sm:$0x3f] }
  0x91   : > { %v338_v48 = vrot.slane %v309_v45, 6  ;;  %v340_v49 = vrot.slane %v310_v46, 6  ;;  %v311_v50 = vld [vmem:[%s4136_s16 + $0x58] sm:$0x3f]  ;;  %3377 = vst [vmem:[%s3335_s1 + $0x150] sm:$0xff] %v333_v47  ;;  %v335_v51 = vsel %vm325_vm4, %v327_v31, %v334_v43  ;;  %v337_v52 = vsel %vm325_vm4, %v328_v32, %v336_v44  ;;  %295 = sbr.rel (!%p293_p0) target bundleno = 135 (0x87), region = 68 }
  0x92   : > { %v342_v53 = vrot.slane %v311_v50, 6  ;;  %3378 = vst [vmem:[%s3335_s1 + $0x158] sm:$0xff] %v335_v51  ;;  %3379 = vst [vmem:[%s3335_s1 + $0x160] sm:$0xff] %v337_v52 }
  0x93   : > { %v339_v54 = vsel %vm325_vm4, %v329_v36, %v338_v48  ;;  %v341_v55 = vsel %vm325_vm4, %v330_v37, %v340_v49 }
  0x94   : > { %3380 = vst [vmem:[%s3335_s1 + $0x168] sm:$0xff] %v339_v54  ;;  %3381 = vst [vmem:[%s3335_s1 + $0x170] sm:$0xff] %v341_v55  ;;  %v343_v56 = vsel %vm325_vm4, %v331_v38, %v342_v53 }
  0x95   : > { %3382 = vst.msk [vmem:[%s3335_s1 + $0x178] sm:$0xff] %vm52_vm0, %v343_v56 }
  0x96 LB: > { %v5933_v7 = vld [vmem:[#allocation10_spill] sm:$0xff]  ;;  %v5934_v6 = vld [vmem:[#allocation9_spill] sm:$0xff]  ;;  %v5935_v5 = vld [vmem:[#allocation8_spill] sm:$0xff]  ;;  %v5939_v0 = vlaneseq  ;;  %s3633_s18 = smul.u32 144, %s3682_s17  ;;  %vm489_vm5 = vcmask 1046528   ;;  %vm592_vm6 = vcmask 1045504   ;;  %s3682_s17 = sphi %s4161_s17, %s377_s17  }
  0x97   : > { %v5936_v3 = vld [vmem:[#allocation7_spill] sm:$0xff]  ;;  %v5937_v2 = vld [vmem:[#allocation6_spill] sm:$0xff]  ;;  %v5938_v1 = vld [vmem:[#allocation5_spill] sm:$0xff]  ;;  %vm707_vm7 = vcmask 1044480   ;;  %vm834_vm8 = vcmask 1043456   ;;  %s3634_s19 = smul.u32 96, %s3682_s17 }
  0x98   : > { %v4167_v57 = vshrl.u32 %v5939_v0, 7  ;;  %s4202_s0 = scalar_lea.vmem [#allocation2], %s3633_s18  ;;  %vm2983_vm9 = vcmask 259072   ;;  %s377_s17 = sadd.s32 1, %s3682_s17  }
  0x99   : > { %s5618_s22 = scalar_lea.vmem %s5828_s4, %s3634_s19  ;;  %p374_p1 = scmp.ge.s32.totalorder %s377_s17, 14  }
  0x9a   : > { %5940 = vst [vmem:[#allocation30_spill] sm:$0xff] %v4167_v57  ;;  %v4171_v58 = vsub.s32 0, %v4167_v57  ;;  %v4174_v59 = vsub.s32 1, %v4167_v57  ;;  %v4177_v60 = vsub.s32 2, %v4167_v57  ;;  %v4180_v61 = vsub.s32 3, %v4167_v57 }
  0x9b   : > { %v4183_v62 = vsub.s32 4, %v4167_v57  ;;  %v4186_v63 = vsub.s32 5, %v4167_v57  ;;  %v4189_v4 = vsub.s32 6, %v4167_v57  ;;  %v4192_v27 = vsub.s32 7, %v4167_v57 }
  0x9c   : > { %5941 = vst [vmem:[#allocation31_spill] sm:$0xff] %v4171_v58  ;;  %5942 = vst [vmem:[#allocation32_spill] sm:$0xff] %v4174_v59  ;;  %v396_v28 = vrot.slane %v5938_v1, %v4171_v58  ;;  %v400_v29 = vrot.slane %v5937_v2, %v4171_v58  ;;  %v404_v30 = vrot.slane %v5936_v3, %v4171_v58  ;;  %v381_v32 = vld [vmem:[%s4202_s0] sm:$0xff]  ;;  %v382_v33 = vld [vmem:[%s4202_s0 + $0x8] sm:$0xff] }
  0x9d   : > { %5943 = vst [vmem:[#allocation33_spill] sm:$0xff] %v4177_v60  ;;  %5944 = vst [vmem:[#allocation34_spill] sm:$0xff] %v4180_v61  ;;  %v408_v31 = vrot.slane %v5935_v5, %v4171_v58  ;;  %v383_v34 = vld [vmem:[%s4202_s0 + $0x10] sm:$0xff]  ;;  %v412_v35 = vrot.slane %v5934_v6, %v4171_v58  ;;  %v416_v36 = vrot.slane %v5933_v7, %v4171_v58  ;;  %v384_v39 = vld [vmem:[%s4202_s0 + $0x18] sm:$0xff] }
  0x9e   : > { %5945 = vst [vmem:[#allocation35_spill] sm:$0xff] %v4183_v62  ;;  %5946 = vst [vmem:[#allocation36_spill] sm:$0xff] %v4186_v63  ;;  %v444_v37 = vrot.slane %v5938_v1, %v4174_v59  ;;  %v448_v38 = vrot.slane %v5937_v2, %v4174_v59  ;;  %v385_v40 = vld [vmem:[%s4202_s0 + $0x20] sm:$0xff]  ;;  %v386_v41 = vld [vmem:[%s4202_s0 + $0x28] sm:$0xff]  ;;  %v4218_v42 = vmul.f32 %v396_v28, %v381_v32 }
  0x9f   : > { %5947 = vst [vmem:[#allocation37_spill] sm:$0xff] %v4189_v4  ;;  %5948 = vst [vmem:[#allocation38_spill] sm:$0xff] %v4192_v27  ;;  %v4220_v43 = vmul.f32 %v400_v29, %v382_v33  ;;  %v4222_v44 = vmul.f32 %v404_v30, %v383_v34  ;;  %v452_v45 = vrot.slane %v5936_v3, %v4174_v59  ;;  %v387_v46 = vld [vmem:[%s4202_s0 + $0x30] sm:$0x3f]  ;;  %v388_v47 = vld [vmem:[%s4202_s0 + $0x38] sm:$0x3f] }
  0xa0   : > { %v389_v48 = vld [vmem:[%s4202_s0 + $0x40] sm:$0x3f]  ;;  %v4229_v49 = vmul.f32 %v408_v31, %v384_v39  ;;  %v4231_v50 = vmul.f32 %v412_v35, %v385_v40  ;;  %v4233_v51 = vmul.f32 %v416_v36, %v386_v41  ;;  %v456_v52 = vrot.slane %v5935_v5, %v4174_v59  ;;  %v390_v53 = vld [vmem:[%s4202_s0 + $0x48] sm:$0x3f]  ;;  %v391_v54 = vld [vmem:[%s4202_s0 + $0x50] sm:$0x3f] }
  0xa1   : > { %v392_v55 = vld [vmem:[%s4202_s0 + $0x58] sm:$0x3f]  ;;  %v423_v56 = vmul.f32 %v396_v28, %v387_v46  ;;  %v424_v32 = vmul.f32 %v400_v29, %v388_v47  ;;  %v4240_v33 = vmul.f32 %v404_v30, %v389_v48  ;;  %v460_v34 = vrot.slane %v5934_v6, %v4174_v59  ;;  %v429_v0 = vld [vmem:[%s4202_s0] sm:$0xfe]  ;;  %v430_v8 = vld [vmem:[%s4202_s0 + $0x8] sm:$0xfe] }
  0xa2   : > { %v4244_v39 = vmul.f32 %v408_v31, %v390_v53  ;;  %v4246_v40 = vmul.f32 %v412_v35, %v391_v54  ;;  %v4248_v41 = vmul.f32 %v416_v36, %v392_v55  ;;  %v431_v57 = vld [vmem:[%s4202_s0 + $0x10] sm:$0xfe]  ;;  %v464_v28 = vrot.slane %v5933_v7, %v4174_v59  ;;  %v432_v29 = vld [vmem:[%s4202_s0 + $0x18] sm:$0xfe]  ;;  %v433_v30 = vld [vmem:[%s4202_s0 + $0x20] sm:$0xfe] }
  0xa3   : > { %v434_v46 = vld [vmem:[%s4202_s0 + $0x28] sm:$0xfe]  ;;  %v465_v47 = vmul.f32 %v444_v37, %v429_v0  ;;  %v466_v31 = vmul.f32 %v448_v38, %v430_v8  ;;  %v467_v48 = vmul.f32 %v452_v45, %v431_v57  ;;  %v4260_v35 = vrot.slane %v5938_v1, %v4177_v60  ;;  %v435_v36 = vld [vmem:[%s4202_s0 + $0x30] sm:$0x7f]  ;;  %v436_v53 = vld [vmem:[%s4202_s0 + $0x38] sm:$0x7f] }
  0xa4   : > { %v437_v54 = vld [vmem:[%s4202_s0 + $0x40] sm:$0x7f]  ;;  %v468_v55 = vmul.f32 %v456_v52, %v432_v29  ;;  %v469_v26 = vmul.f32 %v460_v34, %v433_v30  ;;  %v470_v25 = vmul.f32 %v464_v28, %v434_v46  ;;  %v4267_v24 = vrot.slane %v5937_v2, %v4177_v60  ;;  %v438_v23 = vld [vmem:[%s4202_s0 + $0x48] sm:$0x7f]  ;;  %v439_v22 = vld [vmem:[%s4202_s0 + $0x50] sm:$0x7f] }
  0xa5   : > { %v440_v21 = vld [vmem:[%s4202_s0 + $0x58] sm:$0x7f]  ;;  %v471_v0 = vmul.f32 %v444_v37, %v435_v36  ;;  %v472_v8 = vmul.f32 %v448_v38, %v436_v53  ;;  %v473_v57 = vmul.f32 %v452_v45, %v437_v54  ;;  %v555_v20 = vrot.slane %v5936_v3, %v4177_v60  ;;  %v537_v53 = vld [vmem:[%s4202_s0 + $0x28] sm:$0xfc] }
  0xa6   : > { %v474_v19 = vmul.f32 %v456_v52, %v438_v23  ;;  %v475_v18 = vmul.f32 %v460_v34, %v439_v22  ;;  %v476_v17 = vmul.f32 %v464_v28, %v440_v21  ;;  %v490_v16 = vrot.slane %v465_v47, 1  ;;  %v4286_v28 = vld [vmem:[%s4202_s0 + $0x30] sm:$0xff]  ;;  %v536_v47 = vld [vmem:[%s4202_s0 + $0x20] sm:$0xfc]  ;;  %v4299_v54 = vld [vmem:[%s4202_s0 + $0x38] sm:$0xff] }
  0xa7   : > { %v491_v29 = vrot.slane %v471_v0, 1  ;;  %v493_v30 = vrot.slane %v466_v31, 1  ;;  %v494_v46 = vrot.slane %v472_v8, 1  ;;  %v496_v15 = vrot.slane %v467_v48, 1  ;;  %v4312_v0 = vld [vmem:[%s4202_s0 + $0x58] sm:$0xff] }
  0xa8   : > { %v497_v59 = vrot.slane %v473_v57, 1  ;;  %v499_v14 = vrot.slane %v468_v55, 1  ;;  %v500_v13 = vrot.slane %v474_v19, 1  ;;  %v502_v12 = vrot.slane %v469_v26, 1  ;;  %v4302_v55 = vld [vmem:[%s4202_s0 + $0x40] sm:$0xff] }
  0xa9   : > { %v492_v37 = vsel %vm489_vm5, %v490_v16, %v491_v29  ;;  %v495_v38 = vsel %vm489_vm5, %v493_v30, %v494_v46  ;;  %v503_v45 = vrot.slane %v475_v18, 1  ;;  %v505_v23 = vrot.slane %v470_v25, 1  ;;  %v532_v25 = vld [vmem:[%s4202_s0] sm:$0xfc]  ;;  %5949 = vst [vmem:[#allocation39_spill] sm:$0xff] %v4302_v55 }
  0xaa   : > { %v498_v21 = vsel %vm489_vm5, %v496_v15, %v497_v59  ;;  %v501_v22 = vsel %vm489_vm5, %v499_v14, %v500_v13  ;;  %v506_v52 = vrot.slane %v476_v17, 1  ;;  %v520_v19 = vadd.f32 %v492_v37, %v4218_v42  ;;  %v533_v15 = vld [vmem:[%s4202_s0 + $0x8] sm:$0xfc] }
  0xab   : > { %v504_v26 = vsel %vm489_vm5, %v502_v12, %v503_v45  ;;  %v521_v34 = vadd.f32 %v495_v38, %v4220_v43  ;;  %v522_v16 = vadd.f32 %v498_v21, %v4222_v44  ;;  %v523_v18 = vadd.f32 %v501_v22, %v4229_v49  ;;  %v534_v43 = vld [vmem:[%s4202_s0 + $0x10] sm:$0xfc]  ;;  %v535_v44 = vld [vmem:[%s4202_s0 + $0x18] sm:$0xfc] }
  0xac   : > { %v507_v14 = vsel %vm489_vm5, %v505_v23, %v506_v52  ;;  %v524_v17 = vadd.f32 %v504_v26, %v4231_v50  ;;  %v526_v12 = vadd.f32 %v491_v29, %v423_v56  ;;  %v527_v42 = vadd.f32 %v494_v46, %v424_v32  ;;  %v4306_v56 = vld [vmem:[%s4202_s0 + $0x48] sm:$0xff]  ;;  %v4309_v32 = vld [vmem:[%s4202_s0 + $0x50] sm:$0xff] }
  0xad   : > { %v525_v49 = vadd.f32 %v507_v14, %v4233_v51  ;;  %v528_v31 = vadd.f32 %v497_v59, %v4240_v33  ;;  %v529_v48 = vadd.f32 %v500_v13, %v4244_v39  ;;  %v530_v36 = vadd.f32 %v503_v45, %v4246_v40  ;;  %5950 = vst [vmem:[#allocation40_spill] sm:$0xff] %v4306_v56 }
  0xae   : > { %v531_v50 = vadd.f32 %v506_v52, %v4248_v41  ;;  %5951 = vst [vmem:[#allocation41_spill] sm:$0xff] %v4309_v32  ;;  %v559_v59 = vrot.slane %v5935_v5, %v4177_v60  ;;  %v563_v13 = vrot.slane %v5934_v6, %v4177_v60  ;;  %v567_v51 = vrot.slane %v5933_v7, %v4177_v60 }
  0xaf   : > { %v568_v33 = vmul.f32 %v4260_v35, %v532_v25  ;;  %v569_v39 = vmul.f32 %v4267_v24, %v533_v15  ;;  %v570_v40 = vmul.f32 %v555_v20, %v534_v43  ;;  %v574_v41 = vmul.f32 %v4260_v35, %v4286_v28 }
  0xb0   : > { %v571_v8 = vmul.f32 %v559_v59, %v535_v44  ;;  %v572_v57 = vmul.f32 %v563_v13, %v536_v47  ;;  %v573_v29 = vmul.f32 %v567_v51, %v537_v53  ;;  %v575_v30 = vmul.f32 %v4267_v24, %v4299_v54 }
  0xb1   : > { %v576_v46 = vmul.f32 %v555_v20, %v4302_v55  ;;  %v577_v37 = vmul.f32 %v559_v59, %v4306_v56  ;;  %v578_v38 = vmul.f32 %v563_v13, %v4309_v32  ;;  %v579_v45 = vmul.f32 %v567_v51, %v4312_v0 }
  0xb2   : > { %v593_v23 = vrot.slane %v568_v33, 2  ;;  %v594_v21 = vrot.slane %v574_v41, 2  ;;  %v596_v22 = vrot.slane %v569_v39, 2  ;;  %v597_v52 = vrot.slane %v575_v30, 2  ;;  %v635_v30 = vld [vmem:[%s4202_s0] sm:$0xf8] }
  0xb3   : > { %v599_v26 = vrot.slane %v570_v40, 2  ;;  %v600_v35 = vrot.slane %v576_v46, 2  ;;  %v602_v25 = vrot.slane %v571_v8, 2  ;;  %v603_v15 = vrot.slane %v577_v37, 2  ;;  %v636_v46 = vld [vmem:[%s4202_s0 + $0x8] sm:$0xf8] }
  0xb4   : > { %v595_v14 = vsel %vm592_vm6, %v593_v23, %v594_v21  ;;  %v598_v24 = vsel %vm592_vm6, %v596_v22, %v597_v52  ;;  %v605_v43 = vrot.slane %v572_v57, 2  ;;  %v606_v20 = vrot.slane %v578_v38, 2  ;;  %v639_v38 = vld [vmem:[%s4202_s0 + $0x20] sm:$0xf8]  ;;  %v643_v22 = vld [vmem:[%s4202_s0 + $0x70] sm:$0x1] }
  0xb5   : > { %v601_v44 = vsel %vm592_vm6, %v599_v26, %v600_v35  ;;  %v604_v47 = vsel %vm592_vm6, %v602_v25, %v603_v15  ;;  %v608_v53 = vrot.slane %v573_v29, 2  ;;  %v609_v59 = vrot.slane %v579_v45, 2 }
  0xb6   : > { %v607_v13 = vsel %vm592_vm6, %v605_v43, %v606_v20  ;;  %v4335_v51 = vadd.f32 %v595_v14, %v520_v19  ;;  %v4337_v33 = vadd.f32 %v598_v24, %v521_v34  ;;  %v4339_v39 = vadd.f32 %v601_v44, %v522_v16  ;;  %v645_v14 = vld [vmem:[%s4202_s0 + $0x80] sm:$0x1]  ;;  %v646_v24 = vld [vmem:[%s4202_s0 + $0x88] sm:$0x1] }
  0xb7   : > { %v610_v40 = vsel %vm592_vm6, %v608_v53, %v609_v59  ;;  %v4342_v41 = vadd.f32 %v604_v47, %v523_v18  ;;  %v4344_v8 = vadd.f32 %v607_v13, %v524_v17  ;;  %v4346_v57 = vadd.f32 %v594_v21, %v526_v12  ;;  %v637_v18 = vld [vmem:[%s4202_s0 + $0x10] sm:$0xf8]  ;;  %v638_v12 = vld [vmem:[%s4202_s0 + $0x18] sm:$0xf8]  ;;  %v642_v21 = vld [vmem:[%s4202_s0 + $0x68] sm:$0x1] }
  0xb8   : > { %v4348_v29 = vadd.f32 %v610_v40, %v525_v49  ;;  %v4350_v19 = vadd.f32 %v597_v52, %v527_v42  ;;  %v4352_v34 = vadd.f32 %v600_v35, %v528_v31  ;;  %v4354_v16 = vadd.f32 %v603_v15, %v529_v48  ;;  %v640_v49 = vld [vmem:[%s4202_s0 + $0x28] sm:$0xf8]  ;;  %v641_v48 = vld [vmem:[%s4202_s0 + $0x60] sm:$0x1]  ;;  %v644_v52 = vld [vmem:[%s4202_s0 + $0x78] sm:$0x1] }
  0xb9   : > { %v4359_v37 = vadd.f32 %v606_v20, %v530_v36  ;;  %v4361_v17 = vadd.f32 %v609_v59, %v531_v50  ;;  %v650_v42 = vrot.slane %v5938_v1, %v4180_v61  ;;  %v654_v31 = vrot.slane %v5937_v2, %v4180_v61 }
  0xba   : > { %v658_v45 = vrot.slane %v5936_v3, %v4180_v61  ;;  %v662_v36 = vrot.slane %v5935_v5, %v4180_v61  ;;  %v666_v50 = vrot.slane %v5934_v6, %v4180_v61  ;;  %v670_v23 = vrot.slane %v5933_v7, %v4180_v61 }
  0xbb   : > { %v671_v26 = vmul.f32 %v650_v42, %v635_v30  ;;  %v672_v35 = vmul.f32 %v654_v31, %v636_v46  ;;  %v677_v25 = vmul.f32 %v650_v42, %v4286_v28  ;;  %v678_v15 = vmul.f32 %v654_v31, %v4299_v54 }
  0xbc   : > { %v673_v43 = vmul.f32 %v658_v45, %v637_v18  ;;  %v674_v20 = vmul.f32 %v662_v36, %v638_v12  ;;  %v675_v44 = vmul.f32 %v666_v50, %v639_v38  ;;  %v676_v47 = vmul.f32 %v670_v23, %v640_v49 }
  0xbd   : > { %v679_v53 = vmul.f32 %v658_v45, %v4302_v55  ;;  %v680_v59 = vmul.f32 %v662_v36, %v4306_v56  ;;  %v681_v13 = vmul.f32 %v666_v50, %v4309_v32  ;;  %v682_v40 = vmul.f32 %v670_v23, %v4312_v0 }
  0xbe   : > { %v683_v30 = vmul.f32 %v650_v42, %v641_v48  ;;  %v684_v46 = vmul.f32 %v654_v31, %v642_v21  ;;  %v685_v61 = vmul.f32 %v658_v45, %v643_v22  ;;  %v686_v60 = vmul.f32 %v662_v36, %v644_v52 }
  0xbf   : > { %v687_v11 = vmul.f32 %v666_v50, %v645_v14  ;;  %v688_v10 = vmul.f32 %v670_v23, %v646_v24  ;;  %v708_v9 = vrot.slane %v671_v26, 3  ;;  %v709_v58 = vrot.slane %v677_v25, 3 }
  0xc0   : > { %v711_v18 = vrot.slane %v672_v35, 3  ;;  %v712_v12 = vrot.slane %v678_v15, 3  ;;  %v714_v38 = vrot.slane %v673_v43, 3  ;;  %v715_v49 = vrot.slane %v679_v53, 3  ;;  %v766_v43 = vld [vmem:[%s4202_s0 + $0x20] sm:$0xf0] }
  0xc1   : > { %v710_v27 = vsel %vm707_vm7, %v708_v9, %v709_v58  ;;  %v717_v4 = vrot.slane %v674_v20, 3  ;;  %v718_v56 = vrot.slane %v680_v59, 3  ;;  %v720_v55 = vrot.slane %v675_v44, 3  ;;  %v767_v20 = vld [vmem:[%s4202_s0 + $0x28] sm:$0xf0] }
  0xc2   : > { %v713_v32 = vsel %vm707_vm7, %v711_v18, %v712_v12  ;;  %v716_v42 = vsel %vm707_vm7, %v714_v38, %v715_v49  ;;  %v721_v31 = vrot.slane %v681_v13, 3  ;;  %v723_v48 = vrot.slane %v676_v47, 3  ;;  %v768_v44 = vld [vmem:[%s4202_s0 + $0x60] sm:$0x3] }
  0xc3   : > { %v719_v45 = vsel %vm707_vm7, %v717_v4, %v718_v56  ;;  %v724_v36 = vrot.slane %v682_v40, 3  ;;  %v726_v50 = vrot.slane %v683_v30, 3  ;;  %v728_v23 = vrot.slane %v684_v46, 3  ;;  %v769_v40 = vld [vmem:[%s4202_s0 + $0x68] sm:$0x3] }
  0xc4   : > { %v722_v21 = vsel %vm707_vm7, %v720_v55, %v721_v31  ;;  %v730_v22 = vrot.slane %v685_v61, 3  ;;  %v732_v52 = vrot.slane %v686_v60, 3  ;;  %v734_v26 = vrot.slane %v687_v11, 3  ;;  %v770_v30 = vld [vmem:[%s4202_s0 + $0x70] sm:$0x3] }
  0xc5   : > { %v725_v9 = vsel %vm707_vm7, %v723_v48, %v724_v36  ;;  %v727_v35 = vsel %vm707_vm7, %v709_v58, %v726_v50  ;;  %v729_v25 = vsel %vm707_vm7, %v712_v12, %v728_v23  ;;  %v736_v15 = vrot.slane %v688_v10, 3  ;;  %v771_v46 = vld [vmem:[%s4202_s0 + $0x78] sm:$0x3]  ;;  %v5952_v23 = vld [vmem:[#allocation39_spill] sm:$0xff] }
  0xc6   : > { %v731_v14 = vsel %vm707_vm7, %v715_v49, %v730_v22  ;;  %v733_v4 = vsel %vm707_vm7, %v718_v56, %v732_v52  ;;  %v735_v24 = vsel %vm707_vm7, %v721_v31, %v734_v26  ;;  %v4402_v55 = vadd.f32 %v710_v27, %v4335_v51  ;;  %v762_v51 = vld [vmem:[%s4202_s0] sm:$0xf0]  ;;  %v773_v31 = vld [vmem:[%s4202_s0 + $0x88] sm:$0x3]  ;;  %v5954_v26 = vld [vmem:[#allocation41_spill] sm:$0xff] }
  0xc7   : > { %v737_v11 = vsel %vm707_vm7, %v724_v36, %v736_v15  ;;  %v4406_v58 = vadd.f32 %v713_v32, %v4337_v33  ;;  %v4409_v10 = vadd.f32 %v716_v42, %v4339_v39  ;;  %v4412_v60 = vadd.f32 %v719_v45, %v4342_v41  ;;  %v772_v42 = vld [vmem:[%s4202_s0 + $0x80] sm:$0x3]  ;;  %v5953_v22 = vld [vmem:[#allocation40_spill] sm:$0xff] }
  0xc8   : > { %v4415_v61 = vadd.f32 %v722_v21, %v4344_v8  ;;  %v4418_v27 = vadd.f32 %v725_v9, %v4348_v29  ;;  %v4421_v56 = vadd.f32 %v727_v35, %v4346_v57  ;;  %v4424_v32 = vadd.f32 %v729_v25, %v4350_v19  ;;  %v763_v57 = vld [vmem:[%s4202_s0 + $0x8] sm:$0xf0]  ;;  %v764_v29 = vld [vmem:[%s4202_s0 + $0x10] sm:$0xf0]  ;;  %v765_v19 = vld [vmem:[%s4202_s0 + $0x18] sm:$0xf0] }
  0xc9   : > { %v4428_v33 = vadd.f32 %v731_v14, %v4352_v34  ;;  %v4431_v39 = vadd.f32 %v733_v4, %v4354_v16  ;;  %v4434_v41 = vadd.f32 %v735_v24, %v4359_v37  ;;  %v4437_v8 = vadd.f32 %v737_v11, %v4361_v17 }
  0xca   : > { %v777_v34 = vrot.slane %v5938_v1, %v4183_v62  ;;  %v781_v16 = vrot.slane %v5937_v2, %v4183_v62  ;;  %v785_v37 = vrot.slane %v5936_v3, %v4183_v62  ;;  %v789_v17 = vrot.slane %v5935_v5, %v4183_v62 }
  0xcb   : > { %v793_v47 = vrot.slane %v5934_v6, %v4183_v62  ;;  %v797_v53 = vrot.slane %v5933_v7, %v4183_v62  ;;  %v4459_v59 = vrot.slane %v5938_v1, %v4186_v63  ;;  %v4463_v13 = vrot.slane %v5937_v2, %v4186_v63 }
  0xcc   : > { %v798_v18 = vmul.f32 %v777_v34, %v762_v51  ;;  %v799_v12 = vmul.f32 %v781_v16, %v763_v57  ;;  %v800_v38 = vmul.f32 %v785_v37, %v764_v29  ;;  %v801_v49 = vmul.f32 %v789_v17, %v765_v19 }
  0xcd   : > { %v802_v48 = vmul.f32 %v793_v47, %v766_v43  ;;  %v803_v45 = vmul.f32 %v797_v53, %v767_v20  ;;  %v804_v36 = vmul.f32 %v777_v34, %v4286_v28  ;;  %v805_v50 = vmul.f32 %v781_v16, %v4299_v54 }
  0xce   : > { %v806_v21 = vmul.f32 %v785_v37, %v5952_v23  ;;  %v807_v52 = vmul.f32 %v789_v17, %v5953_v22  ;;  %v808_v9 = vmul.f32 %v793_v47, %v5954_v26  ;;  %v809_v35 = vmul.f32 %v797_v53, %v4312_v0 }
  0xcf   : > { %v810_v25 = vmul.f32 %v777_v34, %v768_v44  ;;  %v811_v15 = vmul.f32 %v781_v16, %v769_v40  ;;  %v812_v14 = vmul.f32 %v785_v37, %v770_v30  ;;  %v813_v4 = vmul.f32 %v789_v17, %v771_v46 }
  0xd0   : > { %v814_v24 = vmul.f32 %v793_v47, %v772_v42  ;;  %v815_v11 = vmul.f32 %v797_v53, %v773_v31  ;;  %v835_v51 = vrot.slane %v798_v18, 4  ;;  %v836_v57 = vrot.slane %v804_v36, 4 }
  0xd1   : > { %v838_v29 = vrot.slane %v799_v12, 4  ;;  %v839_v28 = vrot.slane %v805_v50, 4  ;;  %v841_v19 = vrot.slane %v800_v38, 4  ;;  %v842_v54 = vrot.slane %v806_v21, 4 }
  0xd2   : > { %v837_v43 = vsel %vm834_vm8, %v835_v51, %v836_v57  ;;  %v844_v20 = vrot.slane %v801_v49, 4  ;;  %v845_v23 = vrot.slane %v807_v52, 4  ;;  %v847_v22 = vrot.slane %v802_v48, 4 }
  0xd3   : > { %v840_v26 = vsel %vm834_vm8, %v838_v29, %v839_v28  ;;  %v843_v0 = vsel %vm834_vm8, %v841_v19, %v842_v54  ;;  %v848_v34 = vrot.slane %v808_v9, 4  ;;  %v850_v16 = vrot.slane %v803_v45, 4  ;;  %v3384_v9 = vld [vmem:[%s4202_s0 + $0x90] sm:$0xff]  ;;  %v3393_v19 = vld [vmem:[%s4202_s0 + $0xd8] sm:$0x3f] }
  0xd4   : > { %v846_v37 = vsel %vm834_vm8, %v844_v20, %v845_v23  ;;  %v851_v17 = vrot.slane %v809_v35, 4  ;;  %v853_v44 = vrot.slane %v810_v25, 4  ;;  %v855_v47 = vrot.slane %v811_v15, 4  ;;  %v3385_v35 = vld [vmem:[%s4202_s0 + $0x98] sm:$0xff]  ;;  %v3386_v25 = vld [vmem:[%s4202_s0 + $0xa0] sm:$0xff]  ;;  %v3388_v29 = vld [vmem:[%s4202_s0 + $0xb0] sm:$0xff] }
  0xd5   : > { %v849_v53 = vsel %vm834_vm8, %v847_v22, %v848_v34  ;;  %v857_v40 = vrot.slane %v812_v14, 4  ;;  %v859_v30 = vrot.slane %v813_v4, 4  ;;  %v861_v46 = vrot.slane %v814_v24, 4  ;;  %v3390_v4 = vld [vmem:[%s4202_s0 + $0xc0] sm:$0x3f] }
  0xd6   : > { %v852_v18 = vsel %vm834_vm8, %v850_v16, %v851_v17  ;;  %v854_v12 = vsel %vm834_vm8, %v836_v57, %v853_v44  ;;  %v856_v38 = vsel %vm834_vm8, %v839_v28, %v855_v47  ;;  %v863_v49 = vrot.slane %v815_v11, 4  ;;  %v3391_v24 = vld [vmem:[%s4202_s0 + $0xc8] sm:$0x3f]  ;;  %v3392_v28 = vld [vmem:[%s4202_s0 + $0xd0] sm:$0x3f] }
  0xd7   : > { %v858_v42 = vsel %vm834_vm8, %v842_v54, %v857_v40  ;;  %v860_v31 = vsel %vm834_vm8, %v845_v23, %v859_v30  ;;  %v862_v48 = vsel %vm834_vm8, %v848_v34, %v861_v46  ;;  %v877_v45 = vadd.f32 %v837_v43, %v4402_v55  ;;  %v3395_v54 = vld [vmem:[%s4202_s0 + $0xe8] sm:$0x3f] }
  0xd8   : > { %v864_v36 = vsel %vm834_vm8, %v851_v17, %v863_v49  ;;  %v878_v50 = vadd.f32 %v840_v26, %v4406_v58  ;;  %v879_v21 = vadd.f32 %v843_v0, %v4409_v10  ;;  %v880_v52 = vadd.f32 %v846_v37, %v4412_v60  ;;  %v3387_v10 = vld [vmem:[%s4202_s0 + $0xa8] sm:$0xff] }
  0xd9   : > { %v881_v15 = vadd.f32 %v849_v53, %v4415_v61  ;;  %v882_v55 = vadd.f32 %v852_v18, %v4418_v27  ;;  %v883_v14 = vadd.f32 %v854_v12, %v4421_v56  ;;  %v884_v58 = vadd.f32 %v856_v38, %v4424_v32  ;;  %v3389_v61 = vld [vmem:[%s4202_s0 + $0xb8] sm:$0xff]  ;;  %v3394_v27 = vld [vmem:[%s4202_s0 + $0xe0] sm:$0x3f]  ;;  %v3396_v18 = vld [vmem:[%s4202_s0 + $0x90] sm:$0xfe] }
  0xda   : > { %v885_v60 = vadd.f32 %v858_v42, %v4428_v33  ;;  %v886_v11 = vadd.f32 %v860_v31, %v4431_v39  ;;  %v887_v51 = vadd.f32 %v862_v48, %v4434_v41  ;;  %v888_v57 = vadd.f32 %v864_v36, %v4437_v8  ;;  %v3397_v12 = vld [vmem:[%s4202_s0 + $0x98] sm:$0xfe]  ;;  %v3398_v38 = vld [vmem:[%s4202_s0 + $0xa0] sm:$0xfe]  ;;  %v3400_v36 = vld [vmem:[%s4202_s0 + $0xb0] sm:$0xfe] }
  0xdb   : > { %v916_v56 = vrot.slane %v5936_v3, %v4186_v63  ;;  %v920_v32 = vrot.slane %v5935_v5, %v4186_v63  ;;  %v924_v33 = vrot.slane %v5934_v6, %v4186_v63  ;;  %v928_v39 = vrot.slane %v5933_v7, %v4186_v63 }
  0xdc   : > { %v929_v41 = vmul.f32 %v3384_v9, %v4459_v59  ;;  %v930_v8 = vmul.f32 %v3385_v35, %v4463_v13  ;;  %v935_v43 = vmul.f32 %v3390_v4, %v4459_v59  ;;  %v936_v20 = vmul.f32 %v3391_v24, %v4463_v13  ;;  %v3404_v9 = vld [vmem:[%s4202_s0 + $0xd0] sm:$0x7f]  ;;  %v3407_v4 = vld [vmem:[%s4202_s0 + $0xe8] sm:$0x7f] }
  0xdd   : > { %v931_v23 = vmul.f32 %v3386_v25, %v916_v56  ;;  %v932_v22 = vmul.f32 %v3387_v10, %v920_v32  ;;  %v933_v26 = vmul.f32 %v3388_v29, %v924_v33  ;;  %v934_v0 = vmul.f32 %v3389_v61, %v928_v39  ;;  %v5955_v35 = vld [vmem:[#allocation37_spill] sm:$0xff]  ;;  %v3406_v10 = vld [vmem:[%s4202_s0 + $0xe0] sm:$0x7f] }
  0xde   : > { %v937_v34 = vmul.f32 %v3392_v28, %v916_v56  ;;  %v938_v16 = vmul.f32 %v3393_v19, %v920_v32  ;;  %v939_v37 = vmul.f32 %v3394_v27, %v924_v33  ;;  %v940_v17 = vmul.f32 %v3395_v54, %v928_v39 }
  0xdf   : > { %v941_v44 = vadd.f32 %v929_v41, %v877_v45  ;;  %v942_v47 = vadd.f32 %v930_v8, %v878_v50  ;;  %v943_v53 = vadd.f32 %v931_v23, %v879_v21  ;;  %v4524_v59 = vadd.f32 %v932_v22, %v880_v52  ;;  %v3399_v45 = vld [vmem:[%s4202_s0 + $0xa8] sm:$0xfe]  ;;  %v3401_v50 = vld [vmem:[%s4202_s0 + $0xb8] sm:$0xfe]  ;;  %v3402_v21 = vld [vmem:[%s4202_s0 + $0xc0] sm:$0x7f] }
  0xe0   : > { %v4526_v13 = vadd.f32 %v933_v26, %v881_v15  ;;  %v4528_v40 = vadd.f32 %v934_v0, %v882_v55  ;;  %v947_v30 = vadd.f32 %v935_v43, %v883_v14  ;;  %v4530_v46 = vadd.f32 %v936_v20, %v884_v58  ;;  %v3403_v52 = vld [vmem:[%s4202_s0 + $0xc8] sm:$0x7f]  ;;  %v3405_v58 = vld [vmem:[%s4202_s0 + $0xd8] sm:$0x7f] }
  0xe1   : > { %v4535_v49 = vadd.f32 %v937_v34, %v885_v60  ;;  %v4537_v42 = vadd.f32 %v938_v16, %v886_v11  ;;  %v4539_v31 = vadd.f32 %v939_v37, %v887_v51  ;;  %v4541_v48 = vadd.f32 %v940_v17, %v888_v57  ;;  %v5956_v11 = vld [vmem:[#allocation38_spill] sm:$0xff] }
  0xe2   : > { %v968_v25 = vrot.slane %v5938_v1, %v5955_v35  ;;  %v972_v15 = vrot.slane %v5937_v2, %v5955_v35  ;;  %v976_v55 = vrot.slane %v5936_v3, %v5955_v35  ;;  %v980_v14 = vrot.slane %v5935_v5, %v5955_v35 }
  0xe3   : > { %v984_v24 = vrot.slane %v5934_v6, %v5955_v35  ;;  %v988_v60 = vrot.slane %v5933_v7, %v5955_v35  ;;  %v4566_v51 = vrot.slane %v5938_v1, %v5956_v11  ;;  %v4570_v57 = vrot.slane %v5937_v2, %v5956_v11 }
  0xe4   : > { %v989_v29 = vmul.f32 %v3396_v18, %v968_v25  ;;  %v990_v61 = vmul.f32 %v3397_v12, %v972_v15  ;;  %v991_v28 = vmul.f32 %v3398_v38, %v976_v55  ;;  %v992_v19 = vmul.f32 %v3399_v45, %v980_v14 }
  0xe5   : > { %v993_v27 = vmul.f32 %v3400_v36, %v984_v24  ;;  %v994_v54 = vmul.f32 %v3401_v50, %v988_v60  ;;  %v995_v56 = vmul.f32 %v3402_v21, %v968_v25  ;;  %v996_v32 = vmul.f32 %v3403_v52, %v972_v15  ;;  %v3408_v15 = vld [vmem:[%s4202_s0 + $0x90] sm:$0xfc] }
  0xe6   : > { %v997_v33 = vmul.f32 %v3404_v9, %v976_v55  ;;  %v998_v39 = vmul.f32 %v3405_v58, %v980_v14  ;;  %v999_v41 = vmul.f32 %v3406_v10, %v984_v24  ;;  %v1000_v8 = vmul.f32 %v3407_v4, %v988_v60  ;;  %v3409_v4 = vld [vmem:[%s4202_s0 + $0x98] sm:$0xfc]  ;;  %v3410_v24 = vld [vmem:[%s4202_s0 + $0xa0] sm:$0xfc]  ;;  %v3411_v60 = vld [vmem:[%s4202_s0 + $0xa8] sm:$0xfc] }
  0xe7   : > { %v1013_v43 = vrot.slane %v989_v29, 1  ;;  %v1014_v20 = vrot.slane %v995_v56, 1  ;;  %v1016_v23 = vrot.slane %v990_v61, 1  ;;  %v1017_v22 = vrot.slane %v996_v32, 1  ;;  %v3412_v61 = vld [vmem:[%s4202_s0 + $0xb0] sm:$0xfc] }
  0xe8   : > { %v1019_v26 = vrot.slane %v991_v28, 1  ;;  %v1020_v0 = vrot.slane %v997_v33, 1  ;;  %v1022_v34 = vrot.slane %v992_v19, 1  ;;  %v1023_v16 = vrot.slane %v998_v39, 1  ;;  %v4593_v28 = vld [vmem:[%s4202_s0 + $0xc8] sm:$0xff] }
  0xe9   : > { %v1015_v37 = vsel %vm489_vm5, %v1013_v43, %v1014_v20  ;;  %v1018_v17 = vsel %vm489_vm5, %v1016_v23, %v1017_v22  ;;  %v1025_v18 = vrot.slane %v993_v27, 1  ;;  %v1026_v12 = vrot.slane %v999_v41, 1  ;;  %v3413_v19 = vld [vmem:[%s4202_s0 + $0xb8] sm:$0xfc]  ;;  %v4599_v27 = vld [vmem:[%s4202_s0 + $0xd0] sm:$0xff] }
  0xea   : > { %v1021_v38 = vsel %vm489_vm5, %v1019_v26, %v1020_v0  ;;  %v1024_v45 = vsel %vm489_vm5, %v1022_v34, %v1023_v16  ;;  %v1028_v36 = vrot.slane %v994_v54, 1  ;;  %v1029_v50 = vrot.slane %v1000_v8, 1  ;;  %v4602_v54 = vld [vmem:[%s4202_s0 + $0xd8] sm:$0xff] }
  0xeb   : > { %v1027_v21 = vsel %vm489_vm5, %v1025_v18, %v1026_v12  ;;  %v1043_v52 = vadd.f32 %v1015_v37, %v941_v44  ;;  %v1044_v9 = vadd.f32 %v1018_v17, %v942_v47  ;;  %v1045_v25 = vadd.f32 %v1021_v38, %v943_v53  ;;  %5957 = vst [vmem:[#allocation39_spill] sm:$0xff] %v4602_v54 }
  0xec   : > { %v1030_v55 = vsel %vm489_vm5, %v1028_v36, %v1029_v50  ;;  %v1046_v14 = vadd.f32 %v1024_v45, %v4524_v59  ;;  %v1047_v58 = vadd.f32 %v1027_v21, %v4526_v13  ;;  %v1049_v10 = vadd.f32 %v1014_v20, %v947_v30  ;;  %v4590_v59 = vld [vmem:[%s4202_s0 + $0xc0] sm:$0xff] }
  0xed   : > { %v1048_v44 = vadd.f32 %v1030_v55, %v4528_v40  ;;  %v1050_v47 = vadd.f32 %v1017_v22, %v4530_v46  ;;  %v1051_v53 = vadd.f32 %v1020_v0, %v4535_v49  ;;  %v1052_v29 = vadd.f32 %v1023_v16, %v4537_v42  ;;  %v4609_v49 = vld [vmem:[%s4202_s0 + $0xe0] sm:$0xff]  ;;  %v4612_v42 = vld [vmem:[%s4202_s0 + $0xe8] sm:$0xff] }
  0xee   : > { %v1053_v13 = vadd.f32 %v1026_v12, %v4539_v31  ;;  %v1054_v30 = vadd.f32 %v1029_v50, %v4541_v48  ;;  %v1078_v40 = vrot.slane %v5936_v3, %v5956_v11  ;;  %v1082_v46 = vrot.slane %v5935_v5, %v5956_v11  ;;  %5958 = vst [vmem:[#allocation40_spill] sm:$0xff] %v4609_v49 }
  0xef   : > { %v1086_v31 = vrot.slane %v5934_v6, %v5956_v11  ;;  %v1090_v48 = vrot.slane %v5933_v7, %v5956_v11  ;;  %v1091_v56 = vmul.f32 %v3408_v15, %v4566_v51  ;;  %v1092_v32 = vmul.f32 %v3409_v4, %v4570_v57 }
  0xf0   : > { %v1093_v33 = vmul.f32 %v3410_v24, %v1078_v40  ;;  %v1094_v39 = vmul.f32 %v3411_v60, %v1082_v46  ;;  %v1097_v41 = vmul.f32 %v4590_v59, %v4566_v51  ;;  %v1098_v8 = vmul.f32 %v4593_v28, %v4570_v57 }
  0xf1   : > { %v1095_v43 = vmul.f32 %v3412_v61, %v1086_v31  ;;  %v1096_v20 = vmul.f32 %v3413_v19, %v1090_v48  ;;  %v1099_v23 = vmul.f32 %v4599_v27, %v1078_v40  ;;  %v1100_v22 = vmul.f32 %v4602_v54, %v1082_v46 }
  0xf2   : > { %v1101_v26 = vmul.f32 %v4609_v49, %v1086_v31  ;;  %v1102_v0 = vmul.f32 %v4612_v42, %v1090_v48  ;;  %v1115_v34 = vrot.slane %v1091_v56, 2  ;;  %v1116_v16 = vrot.slane %v1097_v41, 2  ;;  %v3420_v56 = vld [vmem:[%s4202_s0 + $0x90] sm:$0xf8]  ;;  %v3425_v41 = vld [vmem:[%s4202_s0 + $0xb8] sm:$0xf8] }
  0xf3   : > { %v1118_v37 = vrot.slane %v1092_v32, 2  ;;  %v1119_v17 = vrot.slane %v1098_v8, 2  ;;  %v1121_v18 = vrot.slane %v1093_v33, 2  ;;  %v1122_v12 = vrot.slane %v1099_v23, 2  ;;  %v5959_v8 = vld [vmem:[#allocation31_spill] sm:$0xff] }
  0xf4   : > { %v1117_v51 = vsel %vm592_vm6, %v1115_v34, %v1116_v16  ;;  %v1124_v38 = vrot.slane %v1094_v39, 2  ;;  %v1125_v57 = vrot.slane %v1100_v22, 2  ;;  %v1127_v45 = vrot.slane %v1095_v43, 2  ;;  %v3423_v39 = vld [vmem:[%s4202_s0 + $0xa8] sm:$0xf8] }
  0xf5   : > { %v1120_v36 = vsel %vm592_vm6, %v1118_v37, %v1119_v17  ;;  %v1123_v50 = vsel %vm592_vm6, %v1121_v18, %v1122_v12  ;;  %v1128_v21 = vrot.slane %v1101_v26, 2  ;;  %v1130_v15 = vrot.slane %v1096_v20, 2  ;;  %v3426_v22 = vld [vmem:[%s4202_s0 + $0xf0] sm:$0x1]  ;;  %v5964_v26 = vld [vmem:[#allocation16_spill] sm:$0xff]  ;;  %v5966_v37 = vld [vmem:[#allocation32_spill] sm:$0xff] }
  0xf6   : > { %v1126_v55 = vsel %vm592_vm6, %v1124_v38, %v1125_v57  ;;  %v1131_v4 = vrot.slane %v1102_v0, 2  ;;  %v4632_v24 = vadd.f32 %v1117_v51, %v1043_v52  ;;  %v4634_v60 = vadd.f32 %v1120_v36, %v1044_v9  ;;  %v5965_v34 = vld [vmem:[#allocation17_spill] sm:$0xff]  ;;  %v3428_v51 = vld [vmem:[%s4202_s0 + $0x100] sm:$0x1]  ;;  %v3429_v38 = vld [vmem:[%s4202_s0 + $0x108] sm:$0x1] }
  0xf7   : > { %v1129_v61 = vsel %vm592_vm6, %v1127_v45, %v1128_v21  ;;  %v4637_v19 = vadd.f32 %v1123_v50, %v1045_v25  ;;  %v4639_v40 = vadd.f32 %v1126_v55, %v1046_v14  ;;  %v4641_v46 = vadd.f32 %v1116_v16, %v1049_v10  ;;  %v3421_v10 = vld [vmem:[%s4202_s0 + $0x98] sm:$0xf8] }
  0xf8   : > { %v1132_v31 = vsel %vm592_vm6, %v1130_v15, %v1131_v4  ;;  %v4644_v48 = vadd.f32 %v1129_v61, %v1047_v58  ;;  %v4646_v52 = vadd.f32 %v1119_v17, %v1050_v47  ;;  %v4648_v9 = vadd.f32 %v1122_v12, %v1051_v53  ;;  %v3422_v58 = vld [vmem:[%s4202_s0 + $0xa0] sm:$0xf8]  ;;  %v3424_v47 = vld [vmem:[%s4202_s0 + $0xb0] sm:$0xf8]  ;;  %v3427_v12 = vld [vmem:[%s4202_s0 + $0xf8] sm:$0x1] }
  0xf9   : > { %v4651_v32 = vadd.f32 %v1132_v31, %v1048_v44  ;;  %v4653_v33 = vadd.f32 %v1125_v57, %v1052_v29  ;;  %v4655_v25 = vadd.f32 %v1128_v21, %v1053_v13  ;;  %v4657_v14 = vadd.f32 %v1131_v4, %v1054_v30  ;;  %v5960_v53 = vld [vmem:[#allocation12_spill] sm:$0xff]  ;;  %v5961_v44 = vld [vmem:[#allocation13_spill] sm:$0xff]  ;;  %v5962_v13 = vld [vmem:[#allocation14_spill] sm:$0xff] }
  0xfa   : > { %v1172_v43 = vrot.slane %v5960_v53, %v5959_v8  ;;  %v1176_v29 = vrot.slane %v5961_v44, %v5959_v8  ;;  %v1180_v20 = vrot.slane %v5962_v13, %v5959_v8  ;;  %v5963_v30 = vld [vmem:[#allocation15_spill] sm:$0xff]  ;;  %v1188_v0 = vrot.slane %v5964_v26, %v5959_v8  ;;  %v3430_v21 = vld [vmem:[%s4202_s0 + $0x110] sm:$0x1]  ;;  %v3431_v15 = vld [vmem:[%s4202_s0 + $0x118] sm:$0x1] }
  0xfb   : > { %v1184_v23 = vrot.slane %v5963_v30, %v5959_v8  ;;  %v1192_v16 = vrot.slane %v5965_v34, %v5959_v8  ;;  %v4679_v17 = vrot.slane %v5960_v53, %v5966_v37  ;;  %v4683_v18 = vrot.slane %v5961_v44, %v5966_v37 }
  0xfc   : > { %v1193_v57 = vmul.f32 %v3420_v56, %v1172_v43  ;;  %v1194_v45 = vmul.f32 %v3421_v10, %v1176_v29  ;;  %v1195_v36 = vmul.f32 %v3422_v58, %v1180_v20  ;;  %v1197_v55 = vmul.f32 %v3424_v47, %v1188_v0 }
  0xfd   : > { %v1196_v50 = vmul.f32 %v3423_v39, %v1184_v23  ;;  %v1198_v4 = vmul.f32 %v3425_v41, %v1192_v16  ;;  %v1199_v61 = vmul.f32 %v4590_v59, %v1172_v43  ;;  %v1200_v31 = vmul.f32 %v4593_v28, %v1176_v29 }
  0xfe   : > { %v1201_v1 = vmul.f32 %v4599_v27, %v1180_v20  ;;  %v1202_v2 = vmul.f32 %v4602_v54, %v1184_v23  ;;  %v1203_v3 = vmul.f32 %v4609_v49, %v1188_v0  ;;  %v1204_v5 = vmul.f32 %v4612_v42, %v1192_v16 }
  0xff   : > { %v1205_v56 = vmul.f32 %v3426_v22, %v1172_v43  ;;  %v1206_v10 = vmul.f32 %v3427_v12, %v1176_v29  ;;  %v1207_v58 = vmul.f32 %v3428_v51, %v1180_v20  ;;  %v1208_v39 = vmul.f32 %v3429_v38, %v1184_v23 }
 0x100   : > { %v1209_v6 = vmul.f32 %v3430_v21, %v1188_v0  ;;  %v1210_v7 = vmul.f32 %v3431_v15, %v1192_v16  ;;  %v1229_v47 = vrot.slane %v1193_v57, 3  ;;  %v1230_v41 = vrot.slane %v1199_v61, 3  ;;  %v3438_v21 = vld [vmem:[%s4202_s0 + $0xf0] sm:$0x3] }
 0x101   : > { %v1232_v8 = vrot.slane %v1194_v45, 3  ;;  %v1233_v11 = vrot.slane %v1200_v31, 3  ;;  %v1235_v35 = vrot.slane %v1195_v36, 3  ;;  %v1236_v63 = vrot.slane %v1201_v1, 3  ;;  %v3436_v36 = vld [vmem:[%s4202_s0 + $0xb0] sm:$0xf0] }
 0x102   : > { %v1231_v62 = vsel %vm707_vm7, %v1229_v47, %v1230_v41  ;;  %v1238_v44 = vrot.slane %v1196_v50, 3  ;;  %v1239_v53 = vrot.slane %v1202_v2, 3  ;;  %v1241_v54 = vrot.slane %v1197_v55, 3  ;;  %v3437_v50 = vld [vmem:[%s4202_s0 + $0xb8] sm:$0xf0] }
 0x103   : > { %v1234_v49 = vsel %vm707_vm7, %v1232_v8, %v1233_v11  ;;  %v1237_v43 = vsel %vm707_vm7, %v1235_v35, %v1236_v63  ;;  %v1242_v29 = vrot.slane %v1203_v3, 3  ;;  %v1244_v20 = vrot.slane %v1198_v4, 3  ;;  %v3440_v55 = vld [vmem:[%s4202_s0 + $0x100] sm:$0x3]  ;;  %v3441_v4 = vld [vmem:[%s4202_s0 + $0x108] sm:$0x3] }
 0x104   : > { %v1240_v23 = vsel %vm707_vm7, %v1238_v44, %v1239_v53  ;;  %v1245_v22 = vrot.slane %v1204_v5, 3  ;;  %v1247_v0 = vrot.slane %v1205_v56, 3  ;;  %v1249_v16 = vrot.slane %v1206_v10, 3 }
 0x105   : > { %v1243_v12 = vsel %vm707_vm7, %v1241_v54, %v1242_v29  ;;  %v1251_v51 = vrot.slane %v1207_v58, 3  ;;  %v1253_v1 = vrot.slane %v1208_v39, 3  ;;  %v1255_v38 = vrot.slane %v1209_v6, 3  ;;  %v3442_v58 = vld [vmem:[%s4202_s0 + $0x110] sm:$0x3] }
 0x106   : > { %v1246_v57 = vsel %vm707_vm7, %v1244_v20, %v1245_v22  ;;  %v1248_v2 = vsel %vm707_vm7, %v1230_v41, %v1247_v0  ;;  %v1250_v35 = vsel %vm707_vm7, %v1233_v11, %v1249_v16  ;;  %v1257_v3 = vrot.slane %v1210_v7, 3  ;;  %v3443_v39 = vld [vmem:[%s4202_s0 + $0x118] sm:$0x3]  ;;  %v5968_v0 = vld [vmem:[#allocation40_spill] sm:$0xff] }
 0x107   : > { %v1252_v8 = vsel %vm707_vm7, %v1236_v63, %v1251_v51  ;;  %v1254_v5 = vsel %vm707_vm7, %v1239_v53, %v1253_v1  ;;  %v1256_v44 = vsel %vm707_vm7, %v1242_v29, %v1255_v38  ;;  %v4708_v54 = vadd.f32 %v1231_v62, %v4632_v24  ;;  %v3434_v53 = vld [vmem:[%s4202_s0 + $0xa0] sm:$0xf0] }
 0x108   : > { %v1258_v6 = vsel %vm707_vm7, %v1245_v22, %v1257_v3  ;;  %v4712_v45 = vadd.f32 %v1234_v49, %v4634_v60  ;;  %v4715_v11 = vadd.f32 %v1237_v43, %v4637_v19  ;;  %v4718_v7 = vadd.f32 %v1240_v23, %v4639_v40  ;;  %v3432_v60 = vld [vmem:[%s4202_s0 + $0x90] sm:$0xf0]  ;;  %v3433_v19 = vld [vmem:[%s4202_s0 + $0x98] sm:$0xf0] }
 0x109   : > { %v4721_v63 = vadd.f32 %v1243_v12, %v4644_v48  ;;  %v4724_v62 = vadd.f32 %v1246_v57, %v4651_v32  ;;  %v4727_v24 = vadd.f32 %v1248_v2, %v4641_v46  ;;  %v4730_v49 = vadd.f32 %v1250_v35, %v4646_v52  ;;  %v3435_v52 = vld [vmem:[%s4202_s0 + $0xa8] sm:$0xf0]  ;;  %v5967_v23 = vld [vmem:[#allocation39_spill] sm:$0xff] }
 0x10a   : > { %v4736_v40 = vadd.f32 %v1252_v8, %v4648_v9  ;;  %v4739_v48 = vadd.f32 %v1254_v5, %v4653_v33  ;;  %v4742_v32 = vadd.f32 %v1256_v44, %v4655_v25  ;;  %v4745_v46 = vadd.f32 %v1258_v6, %v4657_v14  ;;  %v3439_v14 = vld [vmem:[%s4202_s0 + $0xf8] sm:$0x3] }
 0x10b   : > { %v1306_v15 = vrot.slane %v5962_v13, %v5966_v37  ;;  %v1310_v9 = vrot.slane %v5963_v30, %v5966_v37  ;;  %v1314_v33 = vrot.slane %v5964_v26, %v5966_v37  ;;  %v1318_v25 = vrot.slane %v5965_v34, %v5966_v37 }
 0x10c   : > { %v1319_v61 = vmul.f32 %v3432_v60, %v4679_v17  ;;  %v1320_v31 = vmul.f32 %v3433_v19, %v4683_v18  ;;  %v1325_v56 = vmul.f32 %v4590_v59, %v4679_v17  ;;  %v1326_v10 = vmul.f32 %v4593_v28, %v4683_v18 }
 0x10d   : > { %v1321_v47 = vmul.f32 %v3434_v53, %v1306_v15  ;;  %v1322_v41 = vmul.f32 %v3435_v52, %v1310_v9  ;;  %v1323_v43 = vmul.f32 %v3436_v36, %v1314_v33  ;;  %v1324_v29 = vmul.f32 %v3437_v50, %v1318_v25 }
 0x10e   : > { %v1327_v20 = vmul.f32 %v4599_v27, %v1306_v15  ;;  %v1328_v22 = vmul.f32 %v5967_v23, %v1310_v9  ;;  %v1329_v16 = vmul.f32 %v5968_v0, %v1314_v33  ;;  %v1330_v12 = vmul.f32 %v4612_v42, %v1318_v25  ;;  %v3445_v0 = vld [vmem:[%s4202_s0 + $0x128] sm:$0xff] }
 0x10f   : > { %v1331_v51 = vmul.f32 %v3438_v21, %v4679_v17  ;;  %v1332_v59 = vmul.f32 %v3439_v14, %v4683_v18  ;;  %v1333_v1 = vmul.f32 %v3440_v55, %v1306_v15  ;;  %v1334_v28 = vmul.f32 %v3441_v4, %v1310_v9 }
 0x110   : > { %v1335_v38 = vmul.f32 %v3442_v58, %v1314_v33  ;;  %v1336_v57 = vmul.f32 %v3443_v39, %v1318_v25  ;;  %v1355_v2 = vrot.slane %v1319_v61, 4  ;;  %v1356_v35 = vrot.slane %v1325_v56, 4 }
 0x111   : > { %v1358_v3 = vrot.slane %v1320_v31, 4  ;;  %v1359_v8 = vrot.slane %v1326_v10, 4  ;;  %v1361_v5 = vrot.slane %v1321_v47, 4  ;;  %v1362_v27 = vrot.slane %v1327_v20, 4 }
 0x112   : > { %v1357_v44 = vsel %vm834_vm8, %v1355_v2, %v1356_v35  ;;  %v1364_v6 = vrot.slane %v1322_v41, 4  ;;  %v1365_v60 = vrot.slane %v1328_v22, 4  ;;  %v1367_v19 = vrot.slane %v1323_v43, 4  ;;  %v3444_v22 = vld [vmem:[%s4202_s0 + $0x120] sm:$0xff] }
 0x113   : > { %v1360_v42 = vsel %vm834_vm8, %v1358_v3, %v1359_v8  ;;  %v1363_v17 = vsel %vm834_vm8, %v1361_v5, %v1362_v27  ;;  %v1368_v18 = vrot.slane %v1329_v16, 4  ;;  %v1370_v53 = vrot.slane %v1324_v29, 4  ;;  %v5972_v5 = vld [vmem:[#allocation34_spill] sm:$0xff] }
 0x114   : > { %v1366_v52 = vsel %vm834_vm8, %v1364_v6, %v1365_v60  ;;  %v1371_v36 = vrot.slane %v1330_v12, 4  ;;  %v1373_v50 = vrot.slane %v1331_v51, 4  ;;  %v1375_v21 = vrot.slane %v1332_v59, 4  ;;  %v3447_v12 = vld [vmem:[%s4202_s0 + $0x138] sm:$0xff]  ;;  %v3449_v51 = vld [vmem:[%s4202_s0 + $0x148] sm:$0xff] }
 0x115   : > { %v1369_v15 = vsel %vm834_vm8, %v1367_v19, %v1368_v18  ;;  %v1377_v9 = vrot.slane %v1333_v1, 4  ;;  %v1379_v33 = vrot.slane %v1334_v28, 4  ;;  %v1381_v25 = vrot.slane %v1335_v38, 4  ;;  %v3451_v59 = vld [vmem:[%s4202_s0 + $0x158] sm:$0x3f]  ;;  %v5969_v1 = vld [vmem:[#allocation33_spill] sm:$0xff] }
 0x116   : > { %v1372_v14 = vsel %vm834_vm8, %v1370_v53, %v1371_v36  ;;  %v1374_v55 = vsel %vm834_vm8, %v1356_v35, %v1373_v50  ;;  %v1376_v4 = vsel %vm834_vm8, %v1359_v8, %v1375_v21  ;;  %v1383_v61 = vrot.slane %v1336_v57, 4  ;;  %v5970_v28 = vld [vmem:[#allocation12_spill] sm:$0xff]  ;;  %v5971_v57 = vld [vmem:[#allocation13_spill] sm:$0xff]  ;;  %v3455_v35 = vld [vmem:[%s4202_s0 + $0x178] sm:$0x3f] }
 0x117   : > { %v1378_v31 = vsel %vm834_vm8, %v1362_v27, %v1377_v9  ;;  %v1380_v56 = vsel %vm834_vm8, %v1365_v60, %v1379_v33  ;;  %v1382_v10 = vsel %vm834_vm8, %v1368_v18, %v1381_v25  ;;  %v1397_v58 = vadd.f32 %v1357_v44, %v4708_v54 }
 0x118   : > { %v1384_v39 = vsel %vm834_vm8, %v1371_v36, %v1383_v61  ;;  %v1398_v47 = vadd.f32 %v1360_v42, %v4712_v45  ;;  %v1399_v41 = vadd.f32 %v1363_v17, %v4715_v11  ;;  %v1400_v43 = vadd.f32 %v1366_v52, %v4718_v7  ;;  %v3446_v45 = vld [vmem:[%s4202_s0 + $0x130] sm:$0xff] }
 0x119   : > { %v1401_v29 = vadd.f32 %v1369_v15, %v4721_v63  ;;  %v1402_v20 = vadd.f32 %v1372_v14, %v4724_v62  ;;  %v1403_v54 = vadd.f32 %v1374_v55, %v4727_v24  ;;  %v1404_v23 = vadd.f32 %v1376_v4, %v4730_v49  ;;  %v3448_v62 = vld [vmem:[%s4202_s0 + $0x140] sm:$0xff]  ;;  %v3450_v24 = vld [vmem:[%s4202_s0 + $0x150] sm:$0x3f]  ;;  %v3457_v4 = vld [vmem:[%s4202_s0 + $0x128] sm:$0xfe] }
 0x11a   : > { %v1405_v11 = vadd.f32 %v1378_v31, %v4736_v40  ;;  %v1406_v7 = vadd.f32 %v1380_v56, %v4739_v48  ;;  %v1407_v16 = vadd.f32 %v1382_v10, %v4742_v32  ;;  %v1408_v63 = vadd.f32 %v1384_v39, %v4745_v46  ;;  %v3452_v49 = vld [vmem:[%s4202_s0 + $0x160] sm:$0x3f]  ;;  %v3453_v32 = vld [vmem:[%s4202_s0 + $0x168] sm:$0x3f]  ;;  %v3454_v46 = vld [vmem:[%s4202_s0 + $0x170] sm:$0x3f] }
 0x11b   : > { %v1428_v38 = vrot.slane %v5970_v28, %v5969_v1  ;;  %v1432_v2 = vrot.slane %v5971_v57, %v5969_v1  ;;  %v1436_v40 = vrot.slane %v5962_v13, %v5969_v1  ;;  %v1440_v48 = vrot.slane %v5963_v30, %v5969_v1  ;;  %v3456_v55 = vld [vmem:[%s4202_s0 + $0x120] sm:$0xfe]  ;;  %v3458_v61 = vld [vmem:[%s4202_s0 + $0x130] sm:$0xfe] }
 0x11c   : > { %v1444_v3 = vrot.slane %v5964_v26, %v5969_v1  ;;  %v1448_v8 = vrot.slane %v5965_v34, %v5969_v1  ;;  %v1488_v27 = vrot.slane %v5970_v28, %v5972_v5  ;;  %v1492_v44 = vrot.slane %v5971_v57, %v5972_v5 }
 0x11d   : > { %v1449_v6 = vmul.f32 %v3444_v22, %v1428_v38  ;;  %v1450_v60 = vmul.f32 %v3445_v0, %v1432_v2  ;;  %v1451_v19 = vmul.f32 %v3446_v45, %v1436_v40  ;;  %v1452_v42 = vmul.f32 %v3447_v12, %v1440_v48  ;;  %v3459_v22 = vld [vmem:[%s4202_s0 + $0x138] sm:$0xfe]  ;;  %v3462_v0 = vld [vmem:[%s4202_s0 + $0x150] sm:$0x7f] }
 0x11e   : > { %v1453_v17 = vmul.f32 %v3448_v62, %v1444_v3  ;;  %v1454_v18 = vmul.f32 %v3449_v51, %v1448_v8  ;;  %v1455_v53 = vmul.f32 %v3450_v24, %v1428_v38  ;;  %v1456_v52 = vmul.f32 %v3451_v59, %v1432_v2  ;;  %v3463_v45 = vld [vmem:[%s4202_s0 + $0x158] sm:$0x7f]  ;;  %v3461_v62 = vld [vmem:[%s4202_s0 + $0x148] sm:$0xfe]  ;;  %v3464_v51 = vld [vmem:[%s4202_s0 + $0x160] sm:$0x7f] }
 0x11f   : > { %v1457_v36 = vmul.f32 %v3452_v49, %v1436_v40  ;;  %v1458_v50 = vmul.f32 %v3453_v32, %v1440_v48  ;;  %v1459_v21 = vmul.f32 %v3454_v46, %v1444_v3  ;;  %v1460_v15 = vmul.f32 %v3455_v35, %v1448_v8  ;;  %v3465_v24 = vld [vmem:[%s4202_s0 + $0x168] sm:$0x7f]  ;;  %v3466_v59 = vld [vmem:[%s4202_s0 + $0x170] sm:$0x7f]  ;;  %v3467_v49 = vld [vmem:[%s4202_s0 + $0x178] sm:$0x7f] }
 0x120   : > { %v1461_v9 = vadd.f32 %v1449_v6, %v1397_v58  ;;  %v1462_v33 = vadd.f32 %v1450_v60, %v1398_v47  ;;  %v1463_v25 = vadd.f32 %v1451_v19, %v1399_v41  ;;  %v1464_v14 = vadd.f32 %v1452_v42, %v1400_v43  ;;  %v3460_v43 = vld [vmem:[%s4202_s0 + $0x140] sm:$0xfe] }
 0x121   : > { %v1465_v31 = vadd.f32 %v1453_v17, %v1401_v29  ;;  %v1466_v56 = vadd.f32 %v1454_v18, %v1402_v20  ;;  %v1467_v10 = vadd.f32 %v1455_v53, %v1403_v54  ;;  %v1468_v39 = vadd.f32 %v1456_v52, %v1404_v23 }
 0x122   : > { %v1469_v58 = vadd.f32 %v1457_v36, %v1405_v11  ;;  %v1470_v47 = vadd.f32 %v1458_v50, %v1406_v7  ;;  %v1471_v41 = vadd.f32 %v1459_v21, %v1407_v16  ;;  %v1472_v12 = vadd.f32 %v1460_v15, %v1408_v63 }
 0x123   : > { %v1496_v29 = vrot.slane %v5962_v13, %v5972_v5  ;;  %v1500_v20 = vrot.slane %v5963_v30, %v5972_v5  ;;  %v1504_v54 = vrot.slane %v5964_v26, %v5972_v5  ;;  %v1508_v23 = vrot.slane %v5965_v34, %v5972_v5 }
 0x124   : > { %v1509_v11 = vmul.f32 %v3456_v55, %v1488_v27  ;;  %v1510_v7 = vmul.f32 %v3457_v4, %v1492_v44  ;;  %v1515_v16 = vmul.f32 %v3462_v0, %v1488_v27  ;;  %v1516_v63 = vmul.f32 %v3463_v45, %v1492_v44 }
 0x125   : > { %v1511_v38 = vmul.f32 %v3458_v61, %v1496_v29  ;;  %v1512_v2 = vmul.f32 %v3459_v22, %v1500_v20  ;;  %v1513_v40 = vmul.f32 %v3460_v43, %v1504_v54  ;;  %v1514_v48 = vmul.f32 %v3461_v62, %v1508_v23 }
 0x126   : > { %v1517_v32 = vmul.f32 %v3464_v51, %v1496_v29  ;;  %v1518_v46 = vmul.f32 %v3465_v24, %v1500_v20  ;;  %v1519_v35 = vmul.f32 %v3466_v59, %v1504_v54  ;;  %v1520_v3 = vmul.f32 %v3467_v49, %v1508_v23  ;;  %v4855_v24 = vld [vmem:[%s4202_s0 + $0x150] sm:$0xff]  ;;  %v4858_v59 = vld [vmem:[%s4202_s0 + $0x158] sm:$0xff]  ;;  %v3469_v20 = vld [vmem:[%s4202_s0 + $0x128] sm:$0xfc] }
 0x127   : > { %v1533_v8 = vrot.slane %v1509_v11, 1  ;;  %v1534_v6 = vrot.slane %v1515_v16, 1  ;;  %v1536_v60 = vrot.slane %v1510_v7, 1  ;;  %v1537_v19 = vrot.slane %v1516_v63, 1  ;;  %v3470_v54 = vld [vmem:[%s4202_s0 + $0x130] sm:$0xfc] }
 0x128   : > { %v1539_v42 = vrot.slane %v1511_v38, 1  ;;  %v1540_v17 = vrot.slane %v1517_v32, 1  ;;  %v1542_v18 = vrot.slane %v1512_v2, 1  ;;  %v1543_v53 = vrot.slane %v1518_v46, 1  ;;  %v4864_v23 = vld [vmem:[%s4202_s0 + $0x160] sm:$0xff]  ;;  %v5973_v16 = vld [vmem:[#allocation35_spill] sm:$0xff] }
 0x129   : > { %v1535_v52 = vsel %vm489_vm5, %v1533_v8, %v1534_v6  ;;  %v1538_v27 = vsel %vm489_vm5, %v1536_v60, %v1537_v19  ;;  %v1545_v44 = vrot.slane %v1513_v40, 1  ;;  %v1546_v36 = vrot.slane %v1519_v35, 1  ;;  %v3471_v11 = vld [vmem:[%s4202_s0 + $0x138] sm:$0xfc]  ;;  %v3473_v7 = vld [vmem:[%s4202_s0 + $0x148] sm:$0xfc] }
 0x12a   : > { %v1541_v50 = vsel %vm489_vm5, %v1539_v42, %v1540_v17  ;;  %v1544_v21 = vsel %vm489_vm5, %v1542_v18, %v1543_v53  ;;  %v1548_v15 = vrot.slane %v1514_v48, 1  ;;  %v1549_v55 = vrot.slane %v1520_v3, 1 }
 0x12b   : > { %v1547_v4 = vsel %vm489_vm5, %v1545_v44, %v1546_v36  ;;  %v1563_v61 = vadd.f32 %v1535_v52, %v1461_v9  ;;  %v1564_v22 = vadd.f32 %v1538_v27, %v1462_v33  ;;  %v1565_v0 = vadd.f32 %v1541_v50, %v1463_v25  ;;  %v3468_v25 = vld [vmem:[%s4202_s0 + $0x120] sm:$0xfc] }
 0x12c   : > { %v1550_v45 = vsel %vm489_vm5, %v1548_v15, %v1549_v55  ;;  %v1566_v43 = vadd.f32 %v1544_v21, %v1464_v14  ;;  %v1567_v62 = vadd.f32 %v1547_v4, %v1465_v31  ;;  %v1569_v51 = vadd.f32 %v1534_v6, %v1467_v10  ;;  %v3472_v10 = vld [vmem:[%s4202_s0 + $0x140] sm:$0xfc] }
 0x12d   : > { %v1568_v49 = vadd.f32 %v1550_v45, %v1466_v56  ;;  %v1570_v29 = vadd.f32 %v1537_v19, %v1468_v39  ;;  %v1571_v9 = vadd.f32 %v1540_v17, %v1469_v58  ;;  %v1572_v33 = vadd.f32 %v1543_v53, %v1470_v47  ;;  %v4874_v39 = vld [vmem:[%s4202_s0 + $0x168] sm:$0xff]  ;;  %v4877_v58 = vld [vmem:[%s4202_s0 + $0x170] sm:$0xff]  ;;  %v4880_v47 = vld [vmem:[%s4202_s0 + $0x178] sm:$0xff] }
 0x12e   : > { %v1573_v14 = vadd.f32 %v1546_v36, %v1471_v41  ;;  %v1574_v31 = vadd.f32 %v1549_v55, %v1472_v12  ;;  %v1590_v63 = vrot.slane %v5970_v28, %v5973_v16  ;;  %v1594_v56 = vrot.slane %v5971_v57, %v5973_v16  ;;  %5974 = vst [vmem:[#allocation41_spill] sm:$0xff] %v4877_v58 }
 0x12f   : > { %v1598_v38 = vrot.slane %v5962_v13, %v5973_v16  ;;  %v1602_v41 = vrot.slane %v5963_v30, %v5973_v16  ;;  %v1606_v12 = vrot.slane %v5964_v26, %v5973_v16  ;;  %v1610_v2 = vrot.slane %v5965_v34, %v5973_v16 }
 0x130   : > { %v1611_v40 = vmul.f32 %v3468_v25, %v1590_v63  ;;  %v1612_v48 = vmul.f32 %v3469_v20, %v1594_v56  ;;  %v1617_v32 = vmul.f32 %v4855_v24, %v1590_v63  ;;  %v1618_v46 = vmul.f32 %v4858_v59, %v1594_v56 }
 0x131   : > { %v1613_v35 = vmul.f32 %v3470_v54, %v1598_v38  ;;  %v1614_v3 = vmul.f32 %v3471_v11, %v1602_v41  ;;  %v1615_v8 = vmul.f32 %v3472_v10, %v1606_v12  ;;  %v1616_v6 = vmul.f32 %v3473_v7, %v1610_v2 }
 0x132   : > { %v1619_v60 = vmul.f32 %v4864_v23, %v1598_v38  ;;  %v1620_v19 = vmul.f32 %v4874_v39, %v1602_v41  ;;  %v1621_v42 = vmul.f32 %v4877_v58, %v1606_v12  ;;  %v1622_v17 = vmul.f32 %v4880_v47, %v1610_v2 }
 0x133   : > { %v1635_v18 = vrot.slane %v1611_v40, 2  ;;  %v1636_v53 = vrot.slane %v1617_v32, 2  ;;  %v1638_v52 = vrot.slane %v1612_v48, 2  ;;  %v1639_v27 = vrot.slane %v1618_v46, 2  ;;  %v3481_v32 = vld [vmem:[%s4202_s0 + $0x128] sm:$0xf8] }
 0x134   : > { %v1641_v44 = vrot.slane %v1613_v35, 2  ;;  %v1642_v36 = vrot.slane %v1619_v60, 2  ;;  %v1644_v50 = vrot.slane %v1614_v3, 2  ;;  %v1645_v21 = vrot.slane %v1620_v19, 2  ;;  %v3484_v35 = vld [vmem:[%s4202_s0 + $0x140] sm:$0xf8] }
 0x135   : > { %v1637_v15 = vsel %vm592_vm6, %v1635_v18, %v1636_v53  ;;  %v1640_v55 = vsel %vm592_vm6, %v1638_v52, %v1639_v27  ;;  %v1647_v4 = vrot.slane %v1615_v8, 2  ;;  %v1648_v45 = vrot.slane %v1621_v42, 2  ;;  %v3486_v3 = vld [vmem:[%s4202_s0 + $0x180] sm:$0x1]  ;;  %v3487_v60 = vld [vmem:[%s4202_s0 + $0x188] sm:$0x1] }
 0x136   : > { %v1643_v25 = vsel %vm592_vm6, %v1641_v44, %v1642_v36  ;;  %v1646_v20 = vsel %vm592_vm6, %v1644_v50, %v1645_v21  ;;  %v1650_v54 = vrot.slane %v1616_v6, 2  ;;  %v1651_v11 = vrot.slane %v1622_v17, 2  ;;  %v3488_v19 = vld [vmem:[%s4202_s0 + $0x190] sm:$0x1]  ;;  %v3489_v42 = vld [vmem:[%s4202_s0 + $0x198] sm:$0x1] }
 0x137   : > { %v1649_v10 = vsel %vm592_vm6, %v1647_v4, %v1648_v45  ;;  %v4901_v7 = vadd.f32 %v1637_v15, %v1563_v61  ;;  %v4903_v63 = vadd.f32 %v1640_v55, %v1564_v22  ;;  %v4905_v56 = vadd.f32 %v1643_v25, %v1565_v0  ;;  %v3480_v0 = vld [vmem:[%s4202_s0 + $0x120] sm:$0xf8]  ;;  %v3491_v44 = vld [vmem:[%s4202_s0 + $0x1a8] sm:$0x1] }
 0x138   : > { %v1652_v38 = vsel %vm592_vm6, %v1650_v54, %v1651_v11  ;;  %v4908_v41 = vadd.f32 %v1646_v20, %v1566_v43  ;;  %v4910_v12 = vadd.f32 %v1649_v10, %v1567_v62  ;;  %v4912_v2 = vadd.f32 %v1636_v53, %v1569_v51  ;;  %v3482_v43 = vld [vmem:[%s4202_s0 + $0x130] sm:$0xf8]  ;;  %v3483_v51 = vld [vmem:[%s4202_s0 + $0x138] sm:$0xf8] }
 0x139   : > { %v4914_v40 = vadd.f32 %v1652_v38, %v1568_v49  ;;  %v4916_v61 = vadd.f32 %v1639_v27, %v1570_v29  ;;  %v4918_v48 = vadd.f32 %v1642_v36, %v1571_v9  ;;  %v4920_v22 = vadd.f32 %v1645_v21, %v1572_v33  ;;  %v3485_v49 = vld [vmem:[%s4202_s0 + $0x148] sm:$0xf8]  ;;  %v5975_v29 = vld [vmem:[#allocation36_spill] sm:$0xff] }
 0x13a   : > { %v4925_v46 = vadd.f32 %v1648_v45, %v1573_v14  ;;  %v4927_v62 = vadd.f32 %v1651_v11, %v1574_v31  ;;  %v1692_v9 = vrot.slane %v5970_v28, %v5975_v29  ;;  %v1696_v33 = vrot.slane %v5971_v57, %v5975_v29  ;;  %v3490_v27 = vld [vmem:[%s4202_s0 + $0x1a0] sm:$0x1] }
 0x13b   : > { %v1700_v8 = vrot.slane %v5962_v13, %v5975_v29  ;;  %v1704_v14 = vrot.slane %v5963_v30, %v5975_v29  ;;  %v1708_v31 = vrot.slane %v5964_v26, %v5975_v29  ;;  %v1712_v6 = vrot.slane %v5965_v34, %v5975_v29 }
 0x13c   : > { %v1713_v17 = vmul.f32 %v3480_v0, %v1692_v9  ;;  %v1714_v18 = vmul.f32 %v3481_v32, %v1696_v33  ;;  %v1719_v53 = vmul.f32 %v4855_v24, %v1692_v9  ;;  %v1720_v52 = vmul.f32 %v4858_v59, %v1696_v33 }
 0x13d   : > { %v1715_v36 = vmul.f32 %v3482_v43, %v1700_v8  ;;  %v1716_v50 = vmul.f32 %v3483_v51, %v1704_v14  ;;  %v1717_v21 = vmul.f32 %v3484_v35, %v1708_v31  ;;  %v1718_v15 = vmul.f32 %v3485_v49, %v1712_v6 }
 0x13e   : > { %v1721_v55 = vmul.f32 %v4864_v23, %v1700_v8  ;;  %v1722_v4 = vmul.f32 %v4874_v39, %v1704_v14  ;;  %v1723_v45 = vmul.f32 %v4877_v58, %v1708_v31  ;;  %v1724_v25 = vmul.f32 %v4880_v47, %v1712_v6 }
 0x13f   : > { %v1725_v20 = vmul.f32 %v3486_v3, %v1692_v9  ;;  %v1726_v54 = vmul.f32 %v3487_v60, %v1696_v33  ;;  %v1727_v11 = vmul.f32 %v3488_v19, %v1700_v8  ;;  %v1728_v10 = vmul.f32 %v3489_v42, %v1704_v14 }
 0x140   : > { %v1729_v38 = vmul.f32 %v3490_v27, %v1708_v31  ;;  %v1730_v0 = vmul.f32 %v3491_v44, %v1712_v6  ;;  %v1749_v32 = vrot.slane %v1713_v17, 3  ;;  %v1750_v29 = vrot.slane %v1719_v53, 3 }
 0x141   : > { %v1752_v43 = vrot.slane %v1714_v18, 3  ;;  %v1753_v51 = vrot.slane %v1720_v52, 3  ;;  %v1755_v35 = vrot.slane %v1715_v36, 3  ;;  %v1756_v49 = vrot.slane %v1721_v55, 3  ;;  %v3494_v55 = vld [vmem:[%s4202_s0 + $0x130] sm:$0xf0] }
 0x142   : > { %v1751_v16 = vsel %vm707_vm7, %v1749_v32, %v1750_v29  ;;  %v1758_v5 = vrot.slane %v1716_v50, 3  ;;  %v1759_v1 = vrot.slane %v1722_v4, 3  ;;  %v1761_v37 = vrot.slane %v1717_v21, 3  ;;  %v3496_v4 = vld [vmem:[%s4202_s0 + $0x140] sm:$0xf0] }
 0x143   : > { %v1754_v58 = vsel %vm707_vm7, %v1752_v43, %v1753_v51  ;;  %v1757_v9 = vsel %vm707_vm7, %v1755_v35, %v1756_v49  ;;  %v1762_v33 = vrot.slane %v1723_v45, 3  ;;  %v1764_v3 = vrot.slane %v1718_v15, 3  ;;  %v3497_v45 = vld [vmem:[%s4202_s0 + $0x148] sm:$0xf0]  ;;  %v3499_v32 = vld [vmem:[%s4202_s0 + $0x188] sm:$0x3] }
 0x144   : > { %v1760_v8 = vsel %vm707_vm7, %v1758_v5, %v1759_v1  ;;  %v1765_v14 = vrot.slane %v1724_v25, 3  ;;  %v1767_v31 = vrot.slane %v1725_v20, 3  ;;  %v1769_v6 = vrot.slane %v1726_v54, 3  ;;  %v5976_v25 = vld [vmem:[#allocation37_spill] sm:$0xff]  ;;  %v3498_v20 = vld [vmem:[%s4202_s0 + $0x180] sm:$0x3] }
 0x145   : > { %v1763_v60 = vsel %vm707_vm7, %v1761_v37, %v1762_v33  ;;  %v1771_v19 = vrot.slane %v1727_v11, 3  ;;  %v1773_v42 = vrot.slane %v1728_v10, 3  ;;  %v1775_v17 = vrot.slane %v1729_v38, 3  ;;  %v5977_v10 = vld [vmem:[#allocation38_spill] sm:$0xff]  ;;  %v3500_v43 = vld [vmem:[%s4202_s0 + $0x190] sm:$0x3] }
 0x146   : > { %v1766_v18 = vsel %vm707_vm7, %v1764_v3, %v1765_v14  ;;  %v1768_v53 = vsel %vm707_vm7, %v1750_v29, %v1767_v31  ;;  %v1770_v52 = vsel %vm707_vm7, %v1753_v51, %v1769_v6  ;;  %v1777_v27 = vrot.slane %v1730_v0, 3  ;;  %v3501_v51 = vld [vmem:[%s4202_s0 + $0x198] sm:$0x3]  ;;  %v3502_v3 = vld [vmem:[%s4202_s0 + $0x1a0] sm:$0x3] }
 0x147   : > { %v1772_v44 = vsel %vm707_vm7, %v1756_v49, %v1771_v19  ;;  %v1774_v5 = vsel %vm707_vm7, %v1759_v1, %v1773_v42  ;;  %v1776_v36 = vsel %vm707_vm7, %v1762_v33, %v1775_v17  ;;  %v4968_v37 = vadd.f32 %v1751_v16, %v4901_v7  ;;  %v5978_v17 = vld [vmem:[#allocation41_spill] sm:$0xff] }
 0x148   : > { %v1778_v50 = vsel %vm707_vm7, %v1765_v14, %v1777_v27  ;;  %v4972_v29 = vadd.f32 %v1754_v58, %v4903_v63  ;;  %v4975_v21 = vadd.f32 %v1757_v9, %v4905_v56  ;;  %v4978_v1 = vadd.f32 %v1760_v8, %v4908_v41  ;;  %v3492_v63 = vld [vmem:[%s4202_s0 + $0x120] sm:$0xf0]  ;;  %v3503_v8 = vld [vmem:[%s4202_s0 + $0x1a8] sm:$0x3] }
 0x149   : > { %v4981_v15 = vadd.f32 %v1763_v60, %v4910_v12  ;;  %v4984_v16 = vadd.f32 %v1766_v18, %v4914_v40  ;;  %v4987_v7 = vadd.f32 %v1768_v53, %v4912_v2  ;;  %v4990_v58 = vadd.f32 %v1770_v52, %v4916_v61  ;;  %v3493_v2 = vld [vmem:[%s4202_s0 + $0x128] sm:$0xf0]  ;;  %v3495_v61 = vld [vmem:[%s4202_s0 + $0x138] sm:$0xf0] }
 0x14a   : > { %v4994_v56 = vadd.f32 %v1772_v44, %v4918_v48  ;;  %v4997_v41 = vadd.f32 %v1774_v5, %v4920_v22  ;;  %v5000_v12 = vadd.f32 %v1776_v36, %v4925_v46  ;;  %v5003_v40 = vadd.f32 %v1778_v50, %v4927_v62 }
 0x14b   : > { %v1818_v48 = vrot.slane %v5970_v28, %v5976_v25  ;;  %v1822_v22 = vrot.slane %v5971_v57, %v5976_v25  ;;  %v1826_v46 = vrot.slane %v5962_v13, %v5976_v25  ;;  %v1830_v62 = vrot.slane %v5963_v30, %v5976_v25 }
 0x14c   : > { %v1834_v54 = vrot.slane %v5964_v26, %v5976_v25  ;;  %v1838_v11 = vrot.slane %v5965_v34, %v5976_v25  ;;  %v5025_v38 = vrot.slane %v5970_v28, %v5977_v10  ;;  %v5029_v0 = vrot.slane %v5971_v57, %v5977_v10 }
 0x14d   : > { %v1839_v35 = vmul.f32 %v3492_v63, %v1818_v48  ;;  %v1840_v49 = vmul.f32 %v3493_v2, %v1822_v22  ;;  %v1841_v9 = vmul.f32 %v3494_v55, %v1826_v46  ;;  %v1842_v33 = vmul.f32 %v3495_v61, %v1830_v62 }
 0x14e   : > { %v1843_v14 = vmul.f32 %v3496_v4, %v1834_v54  ;;  %v1844_v31 = vmul.f32 %v3497_v45, %v1838_v11  ;;  %v1845_v6 = vmul.f32 %v4855_v24, %v1818_v48  ;;  %v1846_v60 = vmul.f32 %v4858_v59, %v1822_v22 }
 0x14f   : > { %v1847_v19 = vmul.f32 %v4864_v23, %v1826_v46  ;;  %v1848_v42 = vmul.f32 %v4874_v39, %v1830_v62  ;;  %v1849_v18 = vmul.f32 %v5978_v17, %v1834_v54  ;;  %v1850_v53 = vmul.f32 %v4880_v47, %v1838_v11 }
 0x150   : > { %v1851_v52 = vmul.f32 %v3498_v20, %v1818_v48  ;;  %v1852_v27 = vmul.f32 %v3499_v32, %v1822_v22  ;;  %v1853_v44 = vmul.f32 %v3500_v43, %v1826_v46  ;;  %v1854_v5 = vmul.f32 %v3501_v51, %v1830_v62 }
 0x151   : > { %v1855_v36 = vmul.f32 %v3502_v3, %v1834_v54  ;;  %v1856_v50 = vmul.f32 %v3503_v8, %v1838_v11  ;;  %v1875_v63 = vrot.slane %v1839_v35, 4  ;;  %v1876_v2 = vrot.slane %v1845_v6, 4 }
 0x152   : > { %v1878_v55 = vrot.slane %v1840_v49, 4  ;;  %v1879_v24 = vrot.slane %v1846_v60, 4  ;;  %v1881_v61 = vrot.slane %v1841_v9, 4  ;;  %v1882_v59 = vrot.slane %v1847_v19, 4 }
 0x153   : > { %v1877_v23 = vsel %vm834_vm8, %v1875_v63, %v1876_v2  ;;  %v1884_v4 = vrot.slane %v1842_v33, 4  ;;  %v1885_v39 = vrot.slane %v1848_v42, 4  ;;  %v1887_v45 = vrot.slane %v1843_v14, 4 }
 0x154   : > { %v1880_v17 = vsel %vm834_vm8, %v1878_v55, %v1879_v24  ;;  %v1883_v47 = vsel %vm834_vm8, %v1881_v61, %v1882_v59  ;;  %v1888_v48 = vrot.slane %v1849_v18, 4  ;;  %v1890_v22 = vrot.slane %v1844_v31, 4  ;;  %v3504_v18 = vld [vmem:[%s4202_s0 + $0x1b0] sm:$0xff]  ;;  %v3513_v61 = vld [vmem:[%s4202_s0 + $0x1f8] sm:$0x3f] }
 0x155   : > { %v1886_v46 = vsel %vm834_vm8, %v1884_v4, %v1885_v39  ;;  %v1891_v62 = vrot.slane %v1850_v53, 4  ;;  %v1893_v20 = vrot.slane %v1851_v52, 4  ;;  %v1895_v54 = vrot.slane %v1852_v27, 4  ;;  %v3505_v53 = vld [vmem:[%s4202_s0 + $0x1b8] sm:$0xff]  ;;  %v3506_v52 = vld [vmem:[%s4202_s0 + $0x1c0] sm:$0xff]  ;;  %v3508_v55 = vld [vmem:[%s4202_s0 + $0x1d0] sm:$0xff] }
 0x156   : > { %v1889_v11 = vsel %vm834_vm8, %v1887_v45, %v1888_v48  ;;  %v1897_v32 = vrot.slane %v1853_v44, 4  ;;  %v1899_v43 = vrot.slane %v1854_v5, 4  ;;  %v1901_v51 = vrot.slane %v1855_v36, 4  ;;  %v3510_v5 = vld [vmem:[%s4202_s0 + $0x1e0] sm:$0x3f] }
 0x157   : > { %v1892_v35 = vsel %vm834_vm8, %v1890_v22, %v1891_v62  ;;  %v1894_v49 = vsel %vm834_vm8, %v1876_v2, %v1893_v20  ;;  %v1896_v9 = vsel %vm834_vm8, %v1879_v24, %v1895_v54  ;;  %v1903_v33 = vrot.slane %v1856_v50, 4  ;;  %v3511_v36 = vld [vmem:[%s4202_s0 + $0x1e8] sm:$0x3f]  ;;  %v3512_v24 = vld [vmem:[%s4202_s0 + $0x1f0] sm:$0x3f] }
 0x158   : > { %v1898_v3 = vsel %vm834_vm8, %v1882_v59, %v1897_v32  ;;  %v1900_v8 = vsel %vm834_vm8, %v1885_v39, %v1899_v43  ;;  %v1902_v14 = vsel %vm834_vm8, %v1888_v48, %v1901_v51  ;;  %v1917_v31 = vadd.f32 %v1877_v23, %v4968_v37  ;;  %v3515_v59 = vld [vmem:[%s4202_s0 + $0x208] sm:$0x3f] }
 0x159   : > { %v1904_v6 = vsel %vm834_vm8, %v1891_v62, %v1903_v33  ;;  %v1918_v60 = vadd.f32 %v1880_v17, %v4972_v29  ;;  %v1919_v19 = vadd.f32 %v1883_v47, %v4975_v21  ;;  %v1920_v42 = vadd.f32 %v1886_v46, %v4978_v1  ;;  %v3507_v21 = vld [vmem:[%s4202_s0 + $0x1c8] sm:$0xff] }
 0x15a   : > { %v1921_v27 = vadd.f32 %v1889_v11, %v4981_v15  ;;  %v1922_v37 = vadd.f32 %v1892_v35, %v4984_v16  ;;  %v1923_v44 = vadd.f32 %v1894_v49, %v4987_v7  ;;  %v1924_v29 = vadd.f32 %v1896_v9, %v4990_v58  ;;  %v3509_v15 = vld [vmem:[%s4202_s0 + $0x1d8] sm:$0xff]  ;;  %v3514_v16 = vld [vmem:[%s4202_s0 + $0x200] sm:$0x3f]  ;;  %v3516_v35 = vld [vmem:[%s4202_s0 + $0x1b0] sm:$0xfe] }
 0x15b   : > { %v1925_v1 = vadd.f32 %v1898_v3, %v4994_v56  ;;  %v1926_v50 = vadd.f32 %v1900_v8, %v4997_v41  ;;  %v1927_v63 = vadd.f32 %v1902_v14, %v5000_v12  ;;  %v1928_v2 = vadd.f32 %v1904_v6, %v5003_v40  ;;  %v3517_v49 = vld [vmem:[%s4202_s0 + $0x1b8] sm:$0xfe]  ;;  %v3518_v9 = vld [vmem:[%s4202_s0 + $0x1c0] sm:$0xfe]  ;;  %v3520_v6 = vld [vmem:[%s4202_s0 + $0x1d0] sm:$0xfe] }
 0x15c   : > { %v1956_v7 = vrot.slane %v5962_v13, %v5977_v10  ;;  %v1960_v58 = vrot.slane %v5963_v30, %v5977_v10  ;;  %v1964_v56 = vrot.slane %v5964_v26, %v5977_v10  ;;  %v1968_v41 = vrot.slane %v5965_v34, %v5977_v10 }
 0x15d   : > { %v1969_v12 = vmul.f32 %v3504_v18, %v5025_v38  ;;  %v1970_v40 = vmul.f32 %v3505_v53, %v5029_v0  ;;  %v1975_v23 = vmul.f32 %v3510_v5, %v5025_v38  ;;  %v1976_v4 = vmul.f32 %v3511_v36, %v5029_v0  ;;  %v3524_v18 = vld [vmem:[%s4202_s0 + $0x1f0] sm:$0x7f] }
 0x15e   : > { %v1971_v39 = vmul.f32 %v3506_v52, %v1956_v7  ;;  %v1972_v45 = vmul.f32 %v3507_v21, %v1960_v58  ;;  %v1973_v17 = vmul.f32 %v3508_v55, %v1964_v56  ;;  %v1974_v47 = vmul.f32 %v3509_v15, %v1968_v41  ;;  %v5979_v53 = vld [vmem:[#allocation31_spill] sm:$0xff]  ;;  %v5983_v5 = vld [vmem:[#allocation21_spill] sm:$0xff]  ;;  %v5985_v15 = vld [vmem:[#allocation23_spill] sm:$0xff] }
 0x15f   : > { %v1977_v48 = vmul.f32 %v3512_v24, %v1956_v7  ;;  %v1978_v22 = vmul.f32 %v3513_v61, %v1960_v58  ;;  %v1979_v46 = vmul.f32 %v3514_v16, %v1964_v56  ;;  %v1980_v62 = vmul.f32 %v3515_v59, %v1968_v41  ;;  %v5980_v52 = vld [vmem:[#allocation18_spill] sm:$0xff]  ;;  %v5986_v61 = vld [vmem:[#allocation32_spill] sm:$0xff] }
 0x160   : > { %v1981_v20 = vadd.f32 %v1969_v12, %v1917_v31  ;;  %v1982_v54 = vadd.f32 %v1970_v40, %v1918_v60  ;;  %v1983_v11 = vadd.f32 %v1971_v39, %v1919_v19  ;;  %v5090_v38 = vadd.f32 %v1972_v45, %v1920_v42  ;;  %v3519_v31 = vld [vmem:[%s4202_s0 + $0x1c8] sm:$0xfe]  ;;  %v3521_v60 = vld [vmem:[%s4202_s0 + $0x1d8] sm:$0xfe]  ;;  %v3522_v19 = vld [vmem:[%s4202_s0 + $0x1e0] sm:$0x7f] }
 0x161   : > { %v5092_v0 = vadd.f32 %v1973_v17, %v1921_v27  ;;  %v5094_v32 = vadd.f32 %v1974_v47, %v1922_v37  ;;  %v1987_v43 = vadd.f32 %v1975_v23, %v1923_v44  ;;  %v5096_v51 = vadd.f32 %v1976_v4, %v1924_v29  ;;  %v3523_v42 = vld [vmem:[%s4202_s0 + $0x1e8] sm:$0x7f]  ;;  %v5981_v37 = vld [vmem:[#allocation19_spill] sm:$0xff] }
 0x162   : > { %v5101_v33 = vadd.f32 %v1977_v48, %v1925_v1  ;;  %v5103_v3 = vadd.f32 %v1978_v22, %v1926_v50  ;;  %v5105_v8 = vadd.f32 %v1979_v46, %v1927_v63  ;;  %v5107_v14 = vadd.f32 %v1980_v62, %v1928_v2  ;;  %v5982_v29 = vld [vmem:[#allocation20_spill] sm:$0xff]  ;;  %v3525_v1 = vld [vmem:[%s4202_s0 + $0x1f8] sm:$0x7f] }
 0x163   : > { %v2008_v27 = vrot.slane %v5980_v52, %v5979_v53  ;;  %v2012_v44 = vrot.slane %v5981_v37, %v5979_v53  ;;  %v2016_v21 = vrot.slane %v5982_v29, %v5979_v53  ;;  %v2020_v36 = vrot.slane %v5983_v5, %v5979_v53  ;;  %v3526_v50 = vld [vmem:[%s4202_s0 + $0x200] sm:$0x7f]  ;;  %v3527_v63 = vld [vmem:[%s4202_s0 + $0x208] sm:$0x7f]  ;;  %v5984_v2 = vld [vmem:[#allocation22_spill] sm:$0xff] }
 0x164   : > { %v2024_v55 = vrot.slane %v5984_v2, %v5979_v53  ;;  %v2028_v24 = vrot.slane %v5985_v15, %v5979_v53  ;;  %v5132_v16 = vrot.slane %v5980_v52, %v5986_v61  ;;  %v5136_v59 = vrot.slane %v5981_v37, %v5986_v61 }
 0x165   : > { %v2029_v7 = vmul.f32 %v3516_v35, %v2008_v27  ;;  %v2030_v58 = vmul.f32 %v3517_v49, %v2012_v44  ;;  %v2031_v56 = vmul.f32 %v3518_v9, %v2016_v21  ;;  %v2032_v41 = vmul.f32 %v3519_v31, %v2020_v36 }
 0x166   : > { %v2033_v12 = vmul.f32 %v3520_v6, %v2024_v55  ;;  %v2034_v40 = vmul.f32 %v3521_v60, %v2028_v24  ;;  %v2035_v23 = vmul.f32 %v3522_v19, %v2008_v27  ;;  %v2036_v4 = vmul.f32 %v3523_v42, %v2012_v44 }
 0x167   : > { %v2037_v39 = vmul.f32 %v3524_v18, %v2016_v21  ;;  %v2038_v45 = vmul.f32 %v3525_v1, %v2020_v36  ;;  %v2039_v17 = vmul.f32 %v3526_v50, %v2024_v55  ;;  %v2040_v47 = vmul.f32 %v3527_v63, %v2028_v24  ;;  %v3528_v1 = vld [vmem:[%s4202_s0 + $0x1b0] sm:$0xfc]  ;;  %v3529_v24 = vld [vmem:[%s4202_s0 + $0x1b8] sm:$0xfc] }
 0x168   : > { %v2053_v48 = vrot.slane %v2029_v7, 1  ;;  %v2054_v22 = vrot.slane %v2035_v23, 1  ;;  %v2056_v46 = vrot.slane %v2030_v58, 1  ;;  %v2057_v62 = vrot.slane %v2036_v4, 1  ;;  %v3530_v7 = vld [vmem:[%s4202_s0 + $0x1c0] sm:$0xfc] }
 0x169   : > { %v2059_v53 = vrot.slane %v2031_v56, 1  ;;  %v2060_v13 = vrot.slane %v2037_v39, 1  ;;  %v2062_v26 = vrot.slane %v2032_v41, 1  ;;  %v2063_v35 = vrot.slane %v2038_v45, 1  ;;  %v3531_v58 = vld [vmem:[%s4202_s0 + $0x1c8] sm:$0xfc] }
 0x16a   : > { %v2055_v49 = vsel %vm489_vm5, %v2053_v48, %v2054_v22  ;;  %v2058_v9 = vsel %vm489_vm5, %v2056_v46, %v2057_v62  ;;  %v2065_v31 = vrot.slane %v2033_v12, 1  ;;  %v2066_v6 = vrot.slane %v2039_v17, 1  ;;  %v3533_v41 = vld [vmem:[%s4202_s0 + $0x1d8] sm:$0xfc]  ;;  %v5159_v12 = vld [vmem:[%s4202_s0 + $0x1e8] sm:$0xff]  ;;  %v5165_v23 = vld [vmem:[%s4202_s0 + $0x1f0] sm:$0xff] }
 0x16b   : > { %v2061_v60 = vsel %vm489_vm5, %v2059_v53, %v2060_v13  ;;  %v2064_v19 = vsel %vm489_vm5, %v2062_v26, %v2063_v35  ;;  %v2068_v42 = vrot.slane %v2034_v40, 1  ;;  %v2069_v18 = vrot.slane %v2040_v47, 1  ;;  %v3532_v40 = vld [vmem:[%s4202_s0 + $0x1d0] sm:$0xfc]  ;;  %v5168_v4 = vld [vmem:[%s4202_s0 + $0x1f8] sm:$0xff] }
 0x16c   : > { %v2067_v27 = vsel %vm489_vm5, %v2065_v31, %v2066_v6  ;;  %v2083_v44 = vadd.f32 %v2055_v49, %v1981_v20  ;;  %v2084_v21 = vadd.f32 %v2058_v9, %v1982_v54  ;;  %v2085_v36 = vadd.f32 %v2061_v60, %v1983_v11  ;;  %5987 = vst [vmem:[#allocation39_spill] sm:$0xff] %v5168_v4 }
 0x16d   : > { %v2070_v50 = vsel %vm489_vm5, %v2068_v42, %v2069_v18  ;;  %v2086_v63 = vadd.f32 %v2064_v19, %v5090_v38  ;;  %v2087_v55 = vadd.f32 %v2067_v27, %v5092_v0  ;;  %v2089_v26 = vadd.f32 %v2054_v22, %v1987_v43  ;;  %v5156_v38 = vld [vmem:[%s4202_s0 + $0x1e0] sm:$0xff] }
 0x16e   : > { %v2088_v20 = vadd.f32 %v2070_v50, %v5094_v32  ;;  %v2090_v54 = vadd.f32 %v2057_v62, %v5096_v51  ;;  %v2091_v11 = vadd.f32 %v2060_v13, %v5101_v33  ;;  %v2092_v56 = vadd.f32 %v2063_v35, %v5103_v3  ;;  %v5175_v51 = vld [vmem:[%s4202_s0 + $0x200] sm:$0xff]  ;;  %v5178_v33 = vld [vmem:[%s4202_s0 + $0x208] sm:$0xff] }
 0x16f   : > { %v2093_v0 = vadd.f32 %v2066_v6, %v5105_v8  ;;  %v2094_v43 = vadd.f32 %v2069_v18, %v5107_v14  ;;  %v2118_v32 = vrot.slane %v5982_v29, %v5986_v61  ;;  %v2122_v13 = vrot.slane %v5983_v5, %v5986_v61  ;;  %5988 = vst [vmem:[#allocation40_spill] sm:$0xff] %v5175_v51 }
 0x170   : > { %v2126_v3 = vrot.slane %v5984_v2, %v5986_v61  ;;  %v2130_v8 = vrot.slane %v5985_v15, %v5986_v61  ;;  %v2131_v14 = vmul.f32 %v3528_v1, %v5132_v16  ;;  %v2132_v39 = vmul.f32 %v3529_v24, %v5136_v59 }
 0x171   : > { %v2133_v45 = vmul.f32 %v3530_v7, %v2118_v32  ;;  %v2134_v17 = vmul.f32 %v3531_v58, %v2122_v13  ;;  %v2137_v47 = vmul.f32 %v5156_v38, %v5132_v16  ;;  %v2138_v48 = vmul.f32 %v5159_v12, %v5136_v59 }
 0x172   : > { %v2135_v22 = vmul.f32 %v3532_v40, %v2126_v3  ;;  %v2136_v46 = vmul.f32 %v3533_v41, %v2130_v8  ;;  %v2139_v62 = vmul.f32 %v5165_v23, %v2118_v32  ;;  %v2140_v53 = vmul.f32 %v5168_v4, %v2122_v13 }
 0x173   : > { %v2141_v61 = vmul.f32 %v5175_v51, %v2126_v3  ;;  %v2142_v35 = vmul.f32 %v5178_v33, %v2130_v8  ;;  %v2155_v49 = vrot.slane %v2131_v14, 2  ;;  %v2156_v9 = vrot.slane %v2137_v47, 2 }
 0x174   : > { %v2158_v31 = vrot.slane %v2132_v39, 2  ;;  %v2159_v6 = vrot.slane %v2138_v48, 2  ;;  %v2161_v60 = vrot.slane %v2133_v45, 2  ;;  %v2162_v19 = vrot.slane %v2139_v62, 2  ;;  %v3540_v45 = vld [vmem:[%s4202_s0 + $0x1b0] sm:$0xf8] }
 0x175   : > { %v2157_v16 = vsel %vm592_vm6, %v2155_v49, %v2156_v9  ;;  %v2164_v42 = vrot.slane %v2134_v17, 2  ;;  %v2165_v59 = vrot.slane %v2140_v53, 2  ;;  %v2167_v18 = vrot.slane %v2135_v22, 2  ;;  %v3543_v48 = vld [vmem:[%s4202_s0 + $0x1c8] sm:$0xf8] }
 0x176   : > { %v2160_v27 = vsel %vm592_vm6, %v2158_v31, %v2159_v6  ;;  %v2163_v1 = vsel %vm592_vm6, %v2161_v60, %v2162_v19  ;;  %v2168_v50 = vrot.slane %v2141_v61, 2  ;;  %v2170_v24 = vrot.slane %v2136_v46, 2  ;;  %v3545_v22 = vld [vmem:[%s4202_s0 + $0x1d8] sm:$0xf8]  ;;  %v5989_v46 = vld [vmem:[#allocation33_spill] sm:$0xff]  ;;  %v5990_v61 = vld [vmem:[#allocation34_spill] sm:$0xff] }
 0x177   : > { %v2166_v7 = vsel %vm592_vm6, %v2164_v42, %v2165_v59  ;;  %v2171_v58 = vrot.slane %v2142_v35, 2  ;;  %v5198_v41 = vadd.f32 %v2157_v16, %v2083_v44  ;;  %v5200_v40 = vadd.f32 %v2160_v27, %v2084_v21  ;;  %v3548_v31 = vld [vmem:[%s4202_s0 + $0x220] sm:$0x1] }
 0x178   : > { %v2169_v32 = vsel %vm592_vm6, %v2167_v18, %v2168_v50  ;;  %v5203_v13 = vadd.f32 %v2163_v1, %v2085_v36  ;;  %v5205_v3 = vadd.f32 %v2166_v7, %v2086_v63  ;;  %v5207_v8 = vadd.f32 %v2156_v9, %v2089_v26  ;;  %v3541_v26 = vld [vmem:[%s4202_s0 + $0x1b8] sm:$0xf8]  ;;  %v3547_v9 = vld [vmem:[%s4202_s0 + $0x218] sm:$0x1] }
 0x179   : > { %v2172_v14 = vsel %vm592_vm6, %v2170_v24, %v2171_v58  ;;  %v5210_v39 = vadd.f32 %v2169_v32, %v2087_v55  ;;  %v5212_v44 = vadd.f32 %v2159_v6, %v2090_v54  ;;  %v5214_v21 = vadd.f32 %v2162_v19, %v2091_v11  ;;  %v3542_v55 = vld [vmem:[%s4202_s0 + $0x1c0] sm:$0xf8]  ;;  %v3544_v54 = vld [vmem:[%s4202_s0 + $0x1d0] sm:$0xf8]  ;;  %v3549_v6 = vld [vmem:[%s4202_s0 + $0x228] sm:$0x1] }
 0x17a   : > { %v5217_v17 = vadd.f32 %v2172_v14, %v2088_v20  ;;  %v5219_v47 = vadd.f32 %v2165_v59, %v2092_v56  ;;  %v5221_v36 = vadd.f32 %v2168_v50, %v2093_v0  ;;  %v5223_v63 = vadd.f32 %v2171_v58, %v2094_v43  ;;  %v3546_v43 = vld [vmem:[%s4202_s0 + $0x210] sm:$0x1]  ;;  %v3551_v18 = vld [vmem:[%s4202_s0 + $0x238] sm:$0x1] }
 0x17b   : > { %v2212_v11 = vrot.slane %v5980_v52, %v5989_v46  ;;  %v2216_v20 = vrot.slane %v5981_v37, %v5989_v46  ;;  %v2220_v56 = vrot.slane %v5982_v29, %v5989_v46  ;;  %v2224_v0 = vrot.slane %v5983_v5, %v5989_v46  ;;  %v3550_v59 = vld [vmem:[%s4202_s0 + $0x230] sm:$0x1] }
 0x17c   : > { %v2228_v62 = vrot.slane %v5984_v2, %v5989_v46  ;;  %v2232_v53 = vrot.slane %v5985_v15, %v5989_v46  ;;  %v5245_v35 = vrot.slane %v5980_v52, %v5990_v61  ;;  %v5249_v49 = vrot.slane %v5981_v37, %v5990_v61 }
 0x17d   : > { %v2233_v60 = vmul.f32 %v3540_v45, %v2212_v11  ;;  %v2234_v19 = vmul.f32 %v3541_v26, %v2216_v20  ;;  %v2235_v16 = vmul.f32 %v3542_v55, %v2220_v56  ;;  %v2236_v42 = vmul.f32 %v3543_v48, %v2224_v0 }
 0x17e   : > { %v2237_v27 = vmul.f32 %v3544_v54, %v2228_v62  ;;  %v2238_v1 = vmul.f32 %v3545_v22, %v2232_v53  ;;  %v2239_v50 = vmul.f32 %v5156_v38, %v2212_v11  ;;  %v2240_v24 = vmul.f32 %v5159_v12, %v2216_v20 }
 0x17f   : > { %v2241_v7 = vmul.f32 %v5165_v23, %v2220_v56  ;;  %v2242_v58 = vmul.f32 %v5168_v4, %v2224_v0  ;;  %v2243_v32 = vmul.f32 %v5175_v51, %v2228_v62  ;;  %v2244_v14 = vmul.f32 %v5178_v33, %v2232_v53 }
 0x180   : > { %v2245_v45 = vmul.f32 %v3546_v43, %v2212_v11  ;;  %v2246_v26 = vmul.f32 %v3547_v9, %v2216_v20  ;;  %v2247_v55 = vmul.f32 %v3548_v31, %v2220_v56  ;;  %v2248_v48 = vmul.f32 %v3549_v6, %v2224_v0 }
 0x181   : > { %v2249_v46 = vmul.f32 %v3550_v59, %v2228_v62  ;;  %v2250_v28 = vmul.f32 %v3551_v18, %v2232_v53  ;;  %v2269_v54 = vrot.slane %v2233_v60, 3  ;;  %v2270_v22 = vrot.slane %v2239_v50, 3  ;;  %v3557_v50 = vld [vmem:[%s4202_s0 + $0x1d8] sm:$0xf0] }
 0x182   : > { %v2272_v30 = vrot.slane %v2234_v19, 3  ;;  %v2273_v34 = vrot.slane %v2240_v24, 3  ;;  %v2275_v57 = vrot.slane %v2235_v16, 3  ;;  %v2276_v10 = vrot.slane %v2241_v7, 3  ;;  %v3558_v24 = vld [vmem:[%s4202_s0 + $0x210] sm:$0x3] }
 0x183   : > { %v2271_v25 = vsel %vm707_vm7, %v2269_v54, %v2270_v22  ;;  %v2278_v37 = vrot.slane %v2236_v42, 3  ;;  %v2279_v52 = vrot.slane %v2242_v58, 3  ;;  %v2281_v4 = vrot.slane %v2237_v27, 3  ;;  %v3560_v58 = vld [vmem:[%s4202_s0 + $0x220] sm:$0x3] }
 0x184   : > { %v2274_v51 = vsel %vm707_vm7, %v2272_v30, %v2273_v34  ;;  %v2277_v11 = vsel %vm707_vm7, %v2275_v57, %v2276_v10  ;;  %v2282_v20 = vrot.slane %v2243_v32, 3  ;;  %v2284_v56 = vrot.slane %v2238_v1, 3  ;;  %v3556_v1 = vld [vmem:[%s4202_s0 + $0x1d0] sm:$0xf0]  ;;  %v3561_v32 = vld [vmem:[%s4202_s0 + $0x228] sm:$0x3] }
 0x185   : > { %v2280_v0 = vsel %vm707_vm7, %v2278_v37, %v2279_v52  ;;  %v2285_v43 = vrot.slane %v2244_v14, 3  ;;  %v2287_v62 = vrot.slane %v2245_v45, 3  ;;  %v2289_v53 = vrot.slane %v2246_v26, 3 }
 0x186   : > { %v2283_v9 = vsel %vm707_vm7, %v2281_v4, %v2282_v20  ;;  %v2291_v31 = vrot.slane %v2247_v55, 3  ;;  %v2293_v6 = vrot.slane %v2248_v48, 3  ;;  %v2295_v60 = vrot.slane %v2249_v46, 3  ;;  %v3562_v48 = vld [vmem:[%s4202_s0 + $0x230] sm:$0x3] }
 0x187   : > { %v2286_v19 = vsel %vm707_vm7, %v2284_v56, %v2285_v43  ;;  %v2288_v16 = vsel %vm707_vm7, %v2270_v22, %v2287_v62  ;;  %v2290_v30 = vsel %vm707_vm7, %v2273_v34, %v2289_v53  ;;  %v2297_v57 = vrot.slane %v2250_v28, 3  ;;  %v3563_v46 = vld [vmem:[%s4202_s0 + $0x238] sm:$0x3]  ;;  %v5991_v56 = vld [vmem:[#allocation39_spill] sm:$0xff] }
 0x188   : > { %v2292_v37 = vsel %vm707_vm7, %v2276_v10, %v2291_v31  ;;  %v2294_v42 = vsel %vm707_vm7, %v2279_v52, %v2293_v6  ;;  %v2296_v59 = vsel %vm707_vm7, %v2282_v20, %v2295_v60  ;;  %v5274_v4 = vadd.f32 %v2271_v25, %v5198_v41  ;;  %v3552_v41 = vld [vmem:[%s4202_s0 + $0x1b0] sm:$0xf0] }
 0x189   : > { %v2298_v18 = vsel %vm707_vm7, %v2285_v43, %v2297_v57  ;;  %v5278_v27 = vadd.f32 %v2274_v51, %v5200_v40  ;;  %v5281_v34 = vadd.f32 %v2277_v11, %v5203_v13  ;;  %v5284_v28 = vadd.f32 %v2280_v0, %v5205_v3  ;;  %v3553_v40 = vld [vmem:[%s4202_s0 + $0x1b8] sm:$0xf0]  ;;  %v3554_v13 = vld [vmem:[%s4202_s0 + $0x1c0] sm:$0xf0] }
 0x18a   : > { %v5287_v10 = vadd.f32 %v2283_v9, %v5210_v39  ;;  %v5290_v25 = vadd.f32 %v2286_v19, %v5217_v17  ;;  %v5293_v52 = vadd.f32 %v2288_v16, %v5207_v8  ;;  %v5296_v51 = vadd.f32 %v2290_v30, %v5212_v44  ;;  %v3555_v44 = vld [vmem:[%s4202_s0 + $0x1c8] sm:$0xf0]  ;;  %v5992_v43 = vld [vmem:[#allocation40_spill] sm:$0xff] }
 0x18b   : > { %v5302_v3 = vadd.f32 %v2292_v37, %v5214_v21  ;;  %v5305_v39 = vadd.f32 %v2294_v42, %v5219_v47  ;;  %v5308_v17 = vadd.f32 %v2296_v59, %v5221_v36  ;;  %v5311_v8 = vadd.f32 %v2298_v18, %v5223_v63  ;;  %v3559_v63 = vld [vmem:[%s4202_s0 + $0x218] sm:$0x3] }
 0x18c   : > { %v2346_v7 = vrot.slane %v5982_v29, %v5990_v61  ;;  %v2350_v21 = vrot.slane %v5983_v5, %v5990_v61  ;;  %v2354_v47 = vrot.slane %v5984_v2, %v5990_v61  ;;  %v2358_v36 = vrot.slane %v5985_v15, %v5990_v61 }
 0x18d   : > { %v2359_v14 = vmul.f32 %v3552_v41, %v5245_v35  ;;  %v2360_v45 = vmul.f32 %v3553_v40, %v5249_v49  ;;  %v2365_v26 = vmul.f32 %v5156_v38, %v5245_v35  ;;  %v2366_v55 = vmul.f32 %v5159_v12, %v5249_v49 }
 0x18e   : > { %v2361_v54 = vmul.f32 %v3554_v13, %v2346_v7  ;;  %v2362_v22 = vmul.f32 %v3555_v44, %v2350_v21  ;;  %v2363_v11 = vmul.f32 %v3556_v1, %v2354_v47  ;;  %v2364_v20 = vmul.f32 %v3557_v50, %v2358_v36 }
 0x18f   : > { %v2367_v61 = vmul.f32 %v5165_v23, %v2346_v7  ;;  %v2368_v0 = vmul.f32 %v5991_v56, %v2350_v21  ;;  %v2369_v62 = vmul.f32 %v5992_v43, %v2354_v47  ;;  %v2370_v53 = vmul.f32 %v5178_v33, %v2358_v36  ;;  %v3564_v56 = vld [vmem:[%s4202_s0 + $0x240] sm:$0xff] }
 0x190   : > { %v2371_v9 = vmul.f32 %v3558_v24, %v5245_v35  ;;  %v2372_v38 = vmul.f32 %v3559_v63, %v5249_v49  ;;  %v2373_v31 = vmul.f32 %v3560_v58, %v2346_v7  ;;  %v2374_v12 = vmul.f32 %v3561_v32, %v2350_v21 }
 0x191   : > { %v2375_v6 = vmul.f32 %v3562_v48, %v2354_v47  ;;  %v2376_v60 = vmul.f32 %v3563_v46, %v2358_v36  ;;  %v2395_v19 = vrot.slane %v2359_v14, 4  ;;  %v2396_v16 = vrot.slane %v2365_v26, 4 }
 0x192   : > { %v2398_v30 = vrot.slane %v2360_v45, 4  ;;  %v2399_v57 = vrot.slane %v2366_v55, 4  ;;  %v2401_v37 = vrot.slane %v2361_v54, 4  ;;  %v2402_v23 = vrot.slane %v2367_v61, 4 }
 0x193   : > { %v2397_v42 = vsel %vm834_vm8, %v2395_v19, %v2396_v16  ;;  %v2404_v59 = vrot.slane %v2362_v22, 4  ;;  %v2405_v18 = vrot.slane %v2368_v0, 4  ;;  %v2407_v41 = vrot.slane %v2363_v11, 4  ;;  %v3570_v0 = vld [vmem:[%s4202_s0 + $0x270] sm:$0x3f] }
 0x194   : > { %v2400_v33 = vsel %vm834_vm8, %v2398_v30, %v2399_v57  ;;  %v2403_v35 = vsel %vm834_vm8, %v2401_v37, %v2402_v23  ;;  %v2408_v49 = vrot.slane %v2369_v62, 4  ;;  %v2410_v40 = vrot.slane %v2364_v20, 4  ;;  %v3565_v62 = vld [vmem:[%s4202_s0 + $0x248] sm:$0xff]  ;;  %v3575_v19 = vld [vmem:[%s4202_s0 + $0x298] sm:$0x3f] }
 0x195   : > { %v2406_v13 = vsel %vm834_vm8, %v2404_v59, %v2405_v18  ;;  %v2411_v44 = vrot.slane %v2370_v53, 4  ;;  %v2413_v1 = vrot.slane %v2371_v9, 4  ;;  %v2415_v50 = vrot.slane %v2372_v38, 4  ;;  %v3567_v53 = vld [vmem:[%s4202_s0 + $0x258] sm:$0xff]  ;;  %v3569_v9 = vld [vmem:[%s4202_s0 + $0x268] sm:$0xff] }
 0x196   : > { %v2409_v24 = vsel %vm834_vm8, %v2407_v41, %v2408_v49  ;;  %v2417_v7 = vrot.slane %v2373_v31, 4  ;;  %v2419_v21 = vrot.slane %v2374_v12, 4  ;;  %v2421_v47 = vrot.slane %v2375_v6, 4  ;;  %v5993_v38 = vld [vmem:[#allocation35_spill] sm:$0xff]  ;;  %v5995_v6 = vld [vmem:[#allocation19_spill] sm:$0xff] }
 0x197   : > { %v2412_v36 = vsel %vm834_vm8, %v2410_v40, %v2411_v44  ;;  %v2414_v63 = vsel %vm834_vm8, %v2396_v16, %v2413_v1  ;;  %v2416_v58 = vsel %vm834_vm8, %v2399_v57, %v2415_v50  ;;  %v2423_v32 = vrot.slane %v2376_v60, 4  ;;  %v5994_v31 = vld [vmem:[#allocation18_spill] sm:$0xff]  ;;  %v5996_v57 = vld [vmem:[#allocation36_spill] sm:$0xff] }
 0x198   : > { %v2418_v14 = vsel %vm834_vm8, %v2402_v23, %v2417_v7  ;;  %v2420_v45 = vsel %vm834_vm8, %v2405_v18, %v2419_v21  ;;  %v2422_v26 = vsel %vm834_vm8, %v2408_v49, %v2421_v47  ;;  %v2437_v55 = vadd.f32 %v2397_v42, %v5274_v4 }
 0x199   : > { %v2424_v48 = vsel %vm834_vm8, %v2411_v44, %v2423_v32  ;;  %v2438_v46 = vadd.f32 %v2400_v33, %v5278_v27  ;;  %v2439_v54 = vadd.f32 %v2403_v35, %v5281_v34  ;;  %v2440_v22 = vadd.f32 %v2406_v13, %v5284_v28  ;;  %v3571_v27 = vld [vmem:[%s4202_s0 + $0x278] sm:$0x3f] }
 0x19a   : > { %v2441_v11 = vadd.f32 %v2409_v24, %v5287_v10  ;;  %v2442_v20 = vadd.f32 %v2412_v36, %v5290_v25  ;;  %v2443_v4 = vadd.f32 %v2414_v63, %v5293_v52  ;;  %v2444_v61 = vadd.f32 %v2416_v58, %v5296_v51  ;;  %v3566_v25 = vld [vmem:[%s4202_s0 + $0x250] sm:$0xff]  ;;  %v3568_v52 = vld [vmem:[%s4202_s0 + $0x260] sm:$0xff]  ;;  %v3577_v63 = vld [vmem:[%s4202_s0 + $0x248] sm:$0xfe] }
 0x19b   : > { %v2445_v34 = vadd.f32 %v2418_v14, %v5302_v3  ;;  %v2446_v28 = vadd.f32 %v2420_v45, %v5305_v39  ;;  %v2447_v43 = vadd.f32 %v2422_v26, %v5308_v17  ;;  %v2448_v10 = vadd.f32 %v2424_v48, %v5311_v8  ;;  %v3572_v51 = vld [vmem:[%s4202_s0 + $0x280] sm:$0x3f]  ;;  %v3573_v17 = vld [vmem:[%s4202_s0 + $0x288] sm:$0x3f]  ;;  %v3574_v8 = vld [vmem:[%s4202_s0 + $0x290] sm:$0x3f] }
 0x19c   : > { %v2468_v12 = vrot.slane %v5994_v31, %v5993_v38  ;;  %v2472_v60 = vrot.slane %v5995_v6, %v5993_v38  ;;  %v2476_v3 = vrot.slane %v5982_v29, %v5993_v38  ;;  %v2480_v39 = vrot.slane %v5983_v5, %v5993_v38  ;;  %v3576_v36 = vld [vmem:[%s4202_s0 + $0x240] sm:$0xfe]  ;;  %v3578_v58 = vld [vmem:[%s4202_s0 + $0x250] sm:$0xfe]  ;;  %v3579_v48 = vld [vmem:[%s4202_s0 + $0x258] sm:$0xfe] }
 0x19d   : > { %v2484_v16 = vrot.slane %v5984_v2, %v5993_v38  ;;  %v2488_v30 = vrot.slane %v5985_v15, %v5993_v38  ;;  %v2528_v37 = vrot.slane %v5994_v31, %v5996_v57  ;;  %v2532_v23 = vrot.slane %v5995_v6, %v5996_v57 }
 0x19e   : > { %v2489_v42 = vmul.f32 %v3564_v56, %v2468_v12  ;;  %v2490_v59 = vmul.f32 %v3565_v62, %v2472_v60  ;;  %v2491_v18 = vmul.f32 %v3566_v25, %v2476_v3  ;;  %v2492_v41 = vmul.f32 %v3567_v53, %v2480_v39  ;;  %v3582_v56 = vld [vmem:[%s4202_s0 + $0x270] sm:$0x7f]  ;;  %v3581_v62 = vld [vmem:[%s4202_s0 + $0x268] sm:$0xfe]  ;;  %v3584_v25 = vld [vmem:[%s4202_s0 + $0x280] sm:$0x7f] }
 0x19f   : > { %v2493_v33 = vmul.f32 %v3568_v52, %v2484_v16  ;;  %v2494_v35 = vmul.f32 %v3569_v9, %v2488_v30  ;;  %v2495_v49 = vmul.f32 %v3570_v0, %v2468_v12  ;;  %v2496_v40 = vmul.f32 %v3571_v27, %v2472_v60  ;;  %v3583_v0 = vld [vmem:[%s4202_s0 + $0x278] sm:$0x7f]  ;;  %v3585_v53 = vld [vmem:[%s4202_s0 + $0x288] sm:$0x7f]  ;;  %v3586_v52 = vld [vmem:[%s4202_s0 + $0x290] sm:$0x7f] }
 0x1a0   : > { %v2497_v13 = vmul.f32 %v3572_v51, %v2476_v3  ;;  %v2498_v44 = vmul.f32 %v3573_v17, %v2480_v39  ;;  %v2499_v1 = vmul.f32 %v3574_v8, %v2484_v16  ;;  %v2500_v50 = vmul.f32 %v3575_v19, %v2488_v30  ;;  %v3587_v9 = vld [vmem:[%s4202_s0 + $0x298] sm:$0x7f] }
 0x1a1   : > { %v2501_v24 = vadd.f32 %v2489_v42, %v2437_v55  ;;  %v2502_v7 = vadd.f32 %v2490_v59, %v2438_v46  ;;  %v2503_v21 = vadd.f32 %v2491_v18, %v2439_v54  ;;  %v2504_v47 = vadd.f32 %v2492_v41, %v2440_v22  ;;  %v3580_v22 = vld [vmem:[%s4202_s0 + $0x260] sm:$0xfe] }
 0x1a2   : > { %v2505_v32 = vadd.f32 %v2493_v33, %v2441_v11  ;;  %v2506_v14 = vadd.f32 %v2494_v35, %v2442_v20  ;;  %v2507_v45 = vadd.f32 %v2495_v49, %v2443_v4  ;;  %v2508_v26 = vadd.f32 %v2496_v40, %v2444_v61 }
 0x1a3   : > { %v2509_v55 = vadd.f32 %v2497_v13, %v2445_v34  ;;  %v2510_v46 = vadd.f32 %v2498_v44, %v2446_v28  ;;  %v2511_v54 = vadd.f32 %v2499_v1, %v2447_v43  ;;  %v2512_v27 = vadd.f32 %v2500_v50, %v2448_v10 }
 0x1a4   : > { %v2536_v11 = vrot.slane %v5982_v29, %v5996_v57  ;;  %v2540_v20 = vrot.slane %v5983_v5, %v5996_v57  ;;  %v2544_v4 = vrot.slane %v5984_v2, %v5996_v57  ;;  %v2548_v61 = vrot.slane %v5985_v15, %v5996_v57 }
 0x1a5   : > { %v2549_v34 = vmul.f32 %v3576_v36, %v2528_v37  ;;  %v2550_v28 = vmul.f32 %v3577_v63, %v2532_v23  ;;  %v2555_v43 = vmul.f32 %v3582_v56, %v2528_v37  ;;  %v2556_v10 = vmul.f32 %v3583_v0, %v2532_v23 }
 0x1a6   : > { %v2551_v51 = vmul.f32 %v3578_v58, %v2536_v11  ;;  %v2552_v38 = vmul.f32 %v3579_v48, %v2540_v20  ;;  %v2553_v12 = vmul.f32 %v3580_v22, %v2544_v4  ;;  %v2554_v60 = vmul.f32 %v3581_v62, %v2548_v61  ;;  %v3588_v22 = vld [vmem:[%s4202_s0 + $0x240] sm:$0xfc]  ;;  %v3589_v62 = vld [vmem:[%s4202_s0 + $0x248] sm:$0xfc] }
 0x1a7   : > { %v2557_v3 = vmul.f32 %v3584_v25, %v2536_v11  ;;  %v2558_v39 = vmul.f32 %v3585_v53, %v2540_v20  ;;  %v2559_v17 = vmul.f32 %v3586_v52, %v2544_v4  ;;  %v2560_v8 = vmul.f32 %v3587_v9, %v2548_v61  ;;  %v3590_v25 = vld [vmem:[%s4202_s0 + $0x250] sm:$0xfc]  ;;  %v5428_v11 = vld [vmem:[%s4202_s0 + $0x278] sm:$0xff]  ;;  %v3593_v4 = vld [vmem:[%s4202_s0 + $0x268] sm:$0xfc] }
 0x1a8   : > { %v2573_v19 = vrot.slane %v2549_v34, 1  ;;  %v2574_v16 = vrot.slane %v2555_v43, 1  ;;  %v2576_v30 = vrot.slane %v2550_v28, 1  ;;  %v2577_v42 = vrot.slane %v2556_v10, 1  ;;  %v5997_v61 = vld [vmem:[#allocation37_spill] sm:$0xff] }
 0x1a9   : > { %v2579_v59 = vrot.slane %v2551_v51, 1  ;;  %v2580_v18 = vrot.slane %v2557_v3, 1  ;;  %v2582_v41 = vrot.slane %v2552_v38, 1  ;;  %v2583_v57 = vrot.slane %v2558_v39, 1 }
 0x1aa   : > { %v2575_v33 = vsel %vm489_vm5, %v2573_v19, %v2574_v16  ;;  %v2578_v37 = vsel %vm489_vm5, %v2576_v30, %v2577_v42  ;;  %v2585_v23 = vrot.slane %v2553_v12, 1  ;;  %v2586_v35 = vrot.slane %v2559_v17, 1 }
 0x1ab   : > { %v2581_v49 = vsel %vm489_vm5, %v2579_v59, %v2580_v18  ;;  %v2584_v40 = vsel %vm489_vm5, %v2582_v41, %v2583_v57  ;;  %v2588_v13 = vrot.slane %v2554_v60, 1  ;;  %v2589_v44 = vrot.slane %v2560_v8, 1 }
 0x1ac   : > { %v2587_v1 = vsel %vm489_vm5, %v2585_v23, %v2586_v35  ;;  %v2603_v50 = vadd.f32 %v2575_v33, %v2501_v24  ;;  %v2604_v36 = vadd.f32 %v2578_v37, %v2502_v7  ;;  %v2605_v63 = vadd.f32 %v2581_v49, %v2503_v21  ;;  %v3591_v7 = vld [vmem:[%s4202_s0 + $0x258] sm:$0xfc]  ;;  %v5425_v21 = vld [vmem:[%s4202_s0 + $0x270] sm:$0xff] }
 0x1ad   : > { %v2590_v58 = vsel %vm489_vm5, %v2588_v13, %v2589_v44  ;;  %v2606_v48 = vadd.f32 %v2584_v40, %v2504_v47  ;;  %v2607_v56 = vadd.f32 %v2587_v1, %v2505_v32  ;;  %v2609_v0 = vadd.f32 %v2574_v16, %v2507_v45  ;;  %v3592_v32 = vld [vmem:[%s4202_s0 + $0x260] sm:$0xfc] }
 0x1ae   : > { %v2608_v53 = vadd.f32 %v2590_v58, %v2506_v14  ;;  %v2610_v52 = vadd.f32 %v2577_v42, %v2508_v26  ;;  %v2611_v24 = vadd.f32 %v2580_v18, %v2509_v55  ;;  %v2612_v9 = vadd.f32 %v2583_v57, %v2510_v46  ;;  %v5433_v45 = vld [vmem:[%s4202_s0 + $0x280] sm:$0xff]  ;;  %v5440_v26 = vld [vmem:[%s4202_s0 + $0x288] sm:$0xff]  ;;  %v5443_v55 = vld [vmem:[%s4202_s0 + $0x290] sm:$0xff] }
 0x1af   : > { %v2613_v47 = vadd.f32 %v2586_v35, %v2511_v54  ;;  %v2614_v20 = vadd.f32 %v2589_v44, %v2512_v27  ;;  %v2630_v34 = vrot.slane %v5994_v31, %v5997_v61  ;;  %v2634_v14 = vrot.slane %v5995_v6, %v5997_v61  ;;  %v5446_v46 = vld [vmem:[%s4202_s0 + $0x298] sm:$0xff] }
 0x1b0   : > { %v2638_v54 = vrot.slane %v5982_v29, %v5997_v61  ;;  %v2642_v27 = vrot.slane %v5983_v5, %v5997_v61  ;;  %v2646_v28 = vrot.slane %v5984_v2, %v5997_v61  ;;  %v2650_v43 = vrot.slane %v5985_v15, %v5997_v61 }
 0x1b1   : > { %v2651_v10 = vmul.f32 %v3588_v22, %v2630_v34  ;;  %v2652_v51 = vmul.f32 %v3589_v62, %v2634_v14  ;;  %v2657_v38 = vmul.f32 %v5425_v21, %v2630_v34  ;;  %v2658_v12 = vmul.f32 %v5428_v11, %v2634_v14 }
 0x1b2   : > { %v2653_v60 = vmul.f32 %v3590_v25, %v2638_v54  ;;  %v2654_v3 = vmul.f32 %v3591_v7, %v2642_v27  ;;  %v2655_v39 = vmul.f32 %v3592_v32, %v2646_v28  ;;  %v2656_v17 = vmul.f32 %v3593_v4, %v2650_v43 }
 0x1b3   : > { %v2659_v8 = vmul.f32 %v5433_v45, %v2638_v54  ;;  %v2660_v19 = vmul.f32 %v5440_v26, %v2642_v27  ;;  %v2661_v16 = vmul.f32 %v5443_v55, %v2646_v28  ;;  %v2662_v30 = vmul.f32 %v5446_v46, %v2650_v43  ;;  %v3601_v28 = vld [vmem:[%s4202_s0 + $0x248] sm:$0xf8] }
 0x1b4   : > { %v2675_v42 = vrot.slane %v2651_v10, 2  ;;  %v2676_v59 = vrot.slane %v2657_v38, 2  ;;  %v2678_v18 = vrot.slane %v2652_v51, 2  ;;  %v2679_v41 = vrot.slane %v2658_v12, 2  ;;  %v3604_v10 = vld [vmem:[%s4202_s0 + $0x260] sm:$0xf8] }
 0x1b5   : > { %v2681_v57 = vrot.slane %v2653_v60, 2  ;;  %v2682_v33 = vrot.slane %v2659_v8, 2  ;;  %v2684_v37 = vrot.slane %v2654_v3, 2  ;;  %v2685_v23 = vrot.slane %v2660_v19, 2  ;;  %v3606_v51 = vld [vmem:[%s4202_s0 + $0x2a0] sm:$0x1] }
 0x1b6   : > { %v2677_v35 = vsel %vm592_vm6, %v2675_v42, %v2676_v59  ;;  %v2680_v49 = vsel %vm592_vm6, %v2678_v18, %v2679_v41  ;;  %v2687_v40 = vrot.slane %v2655_v39, 2  ;;  %v2688_v13 = vrot.slane %v2661_v16, 2  ;;  %v3607_v60 = vld [vmem:[%s4202_s0 + $0x2a8] sm:$0x1]  ;;  %v3608_v3 = vld [vmem:[%s4202_s0 + $0x2b0] sm:$0x1] }
 0x1b7   : > { %v2683_v44 = vsel %vm592_vm6, %v2681_v57, %v2682_v33  ;;  %v2686_v1 = vsel %vm592_vm6, %v2684_v37, %v2685_v23  ;;  %v2690_v58 = vrot.slane %v2656_v17, 2  ;;  %v2691_v22 = vrot.slane %v2662_v30, 2  ;;  %v3609_v39 = vld [vmem:[%s4202_s0 + $0x2b8] sm:$0x1]  ;;  %v3610_v30 = vld [vmem:[%s4202_s0 + $0x2c0] sm:$0x1] }
 0x1b8   : > { %v2689_v62 = vsel %vm592_vm6, %v2687_v40, %v2688_v13  ;;  %v5467_v25 = vadd.f32 %v2677_v35, %v2603_v50  ;;  %v5469_v7 = vadd.f32 %v2680_v49, %v2604_v36  ;;  %v5471_v32 = vadd.f32 %v2683_v44, %v2605_v63  ;;  %v3600_v63 = vld [vmem:[%s4202_s0 + $0x240] sm:$0xf8]  ;;  %v3611_v42 = vld [vmem:[%s4202_s0 + $0x2c8] sm:$0x1] }
 0x1b9   : > { %v2692_v4 = vsel %vm592_vm6, %v2690_v58, %v2691_v22  ;;  %v5474_v61 = vadd.f32 %v2686_v1, %v2606_v48  ;;  %v5476_v34 = vadd.f32 %v2689_v62, %v2607_v56  ;;  %v5478_v14 = vadd.f32 %v2676_v59, %v2609_v0  ;;  %v3602_v48 = vld [vmem:[%s4202_s0 + $0x250] sm:$0xf8]  ;;  %v3603_v0 = vld [vmem:[%s4202_s0 + $0x258] sm:$0xf8] }
 0x1ba   : > { %v5480_v54 = vadd.f32 %v2692_v4, %v2608_v53  ;;  %v5482_v50 = vadd.f32 %v2679_v41, %v2610_v52  ;;  %v5484_v27 = vadd.f32 %v2682_v33, %v2611_v24  ;;  %v5486_v36 = vadd.f32 %v2685_v23, %v2612_v9  ;;  %v3605_v53 = vld [vmem:[%s4202_s0 + $0x268] sm:$0xf8]  ;;  %v5998_v52 = vld [vmem:[#allocation38_spill] sm:$0xff] }
 0x1bb   : > { %v5491_v43 = vadd.f32 %v2688_v13, %v2613_v47  ;;  %v5493_v56 = vadd.f32 %v2691_v22, %v2614_v20  ;;  %v2732_v24 = vrot.slane %v5994_v31, %v5998_v52  ;;  %v2736_v9 = vrot.slane %v5995_v6, %v5998_v52  ;;  %v6009_v31 = vld [vmem:[#allocation33_spill] sm:$0xff] (%p374_p1) }
 0x1bc   : > { %v2740_v38 = vrot.slane %v5982_v29, %v5998_v52  ;;  %v2744_v47 = vrot.slane %v5983_v5, %v5998_v52  ;;  %v2748_v20 = vrot.slane %v5984_v2, %v5998_v52  ;;  %v2752_v12 = vrot.slane %v5985_v15, %v5998_v52  ;;  %v6008_v5 = vld [vmem:[#allocation32_spill] sm:$0xff] (%p374_p1) }
 0x1bd   : > { %v2753_v17 = vmul.f32 %v3600_v63, %v2732_v24  ;;  %v2754_v8 = vmul.f32 %v3601_v28, %v2736_v9  ;;  %v2759_v19 = vmul.f32 %v5425_v21, %v2732_v24  ;;  %v2760_v16 = vmul.f32 %v5428_v11, %v2736_v9 }
 0x1be   : > { %v2755_v59 = vmul.f32 %v3602_v48, %v2740_v38  ;;  %v2756_v18 = vmul.f32 %v3603_v0, %v2744_v47  ;;  %v2757_v41 = vmul.f32 %v3604_v10, %v2748_v20  ;;  %v2758_v57 = vmul.f32 %v3605_v53, %v2752_v12 }
 0x1bf   : > { %v2761_v33 = vmul.f32 %v5433_v45, %v2740_v38  ;;  %v2762_v37 = vmul.f32 %v5440_v26, %v2744_v47  ;;  %v2763_v23 = vmul.f32 %v5443_v55, %v2748_v20  ;;  %v2764_v35 = vmul.f32 %v5446_v46, %v2752_v12 }
 0x1c0   : > { %v2765_v49 = vmul.f32 %v3606_v51, %v2732_v24  ;;  %v2766_v40 = vmul.f32 %v3607_v60, %v2736_v9  ;;  %v2767_v13 = vmul.f32 %v3608_v3, %v2740_v38  ;;  %v2768_v44 = vmul.f32 %v3609_v39, %v2744_v47 }
 0x1c1   : > { %v2769_v1 = vmul.f32 %v3610_v30, %v2748_v20  ;;  %v2770_v58 = vmul.f32 %v3611_v42, %v2752_v12  ;;  %v2789_v22 = vrot.slane %v2753_v17, 3  ;;  %v2790_v62 = vrot.slane %v2759_v19, 3 }
 0x1c2   : > { %v2792_v4 = vrot.slane %v2754_v8, 3  ;;  %v2793_v63 = vrot.slane %v2760_v16, 3  ;;  %v2795_v28 = vrot.slane %v2755_v59, 3  ;;  %v2796_v48 = vrot.slane %v2761_v33, 3 }
 0x1c3   : > { %v2791_v0 = vsel %vm707_vm7, %v2789_v22, %v2790_v62  ;;  %v2798_v10 = vrot.slane %v2756_v18, 3  ;;  %v2799_v53 = vrot.slane %v2762_v37, 3  ;;  %v2801_v52 = vrot.slane %v2757_v41, 3  ;;  %v3619_v22 = vld [vmem:[%s4202_s0 + $0x2a8] sm:$0x3] }
 0x1c4   : > { %v2794_v2 = vsel %vm707_vm7, %v2792_v4, %v2793_v63  ;;  %v2797_v24 = vsel %vm707_vm7, %v2795_v28, %v2796_v48  ;;  %v2802_v9 = vrot.slane %v2763_v23, 3  ;;  %v2804_v51 = vrot.slane %v2758_v57, 3  ;;  %v3612_v57 = vld [vmem:[%s4202_s0 + $0x240] sm:$0xf0]  ;;  %v6000_v28 = vld [vmem:[#allocation25_spill] sm:$0xff] }
 0x1c5   : > { %v2800_v38 = vsel %vm707_vm7, %v2798_v10, %v2799_v53  ;;  %v2805_v47 = vrot.slane %v2764_v35, 3  ;;  %v2807_v20 = vrot.slane %v2765_v49, 3  ;;  %v2809_v12 = vrot.slane %v2766_v40, 3  ;;  %v3613_v49 = vld [vmem:[%s4202_s0 + $0x248] sm:$0xf0]  ;;  %v5999_v4 = vld [vmem:[#allocation24_spill] sm:$0xff] }
 0x1c6   : > { %v2803_v60 = vsel %vm707_vm7, %v2801_v52, %v2802_v9  ;;  %v2811_v3 = vrot.slane %v2767_v13, 3  ;;  %v2813_v39 = vrot.slane %v2768_v44, 3  ;;  %v2815_v17 = vrot.slane %v2769_v1, 3  ;;  %v3614_v40 = vld [vmem:[%s4202_s0 + $0x250] sm:$0xf0]  ;;  %v6002_v10 = vld [vmem:[#allocation27_spill] sm:$0xff] }
 0x1c7   : > { %v2806_v8 = vsel %vm707_vm7, %v2804_v51, %v2805_v47  ;;  %v2808_v19 = vsel %vm707_vm7, %v2790_v62, %v2807_v20  ;;  %v2810_v16 = vsel %vm707_vm7, %v2793_v63, %v2809_v12  ;;  %v2817_v30 = vrot.slane %v2770_v58, 3  ;;  %v3620_v62 = vld [vmem:[%s4202_s0 + $0x2b0] sm:$0x3]  ;;  %v3623_v52 = vld [vmem:[%s4202_s0 + $0x2c8] sm:$0x3] }
 0x1c8   : > { %v2812_v42 = vsel %vm707_vm7, %v2796_v48, %v2811_v3  ;;  %v2814_v59 = vsel %vm707_vm7, %v2799_v53, %v2813_v39  ;;  %v2816_v18 = vsel %vm707_vm7, %v2802_v9, %v2815_v17  ;;  %v5534_v41 = vadd.f32 %v2791_v0, %v5467_v25  ;;  %v3615_v25 = vld [vmem:[%s4202_s0 + $0x258] sm:$0xf0]  ;;  %v6001_v0 = vld [vmem:[#allocation26_spill] sm:$0xff]  ;;  %v6004_v9 = vld [vmem:[#allocation29_spill] sm:$0xff] }
 0x1c9   : > { %v2818_v33 = vsel %vm707_vm7, %v2805_v47, %v2817_v30  ;;  %v5539_v37 = vadd.f32 %v2794_v2, %v5469_v7  ;;  %v5542_v23 = vadd.f32 %v2797_v24, %v5471_v32  ;;  %v5545_v35 = vadd.f32 %v2800_v38, %v5474_v61  ;;  %v3616_v32 = vld [vmem:[%s4202_s0 + $0x260] sm:$0xf0]  ;;  %v3617_v61 = vld [vmem:[%s4202_s0 + $0x268] sm:$0xf0] }
 0x1ca   : > { %v5551_v13 = vadd.f32 %v2803_v60, %v5476_v34  ;;  %v5554_v44 = vadd.f32 %v2806_v8, %v5480_v54  ;;  %v5557_v2 = vadd.f32 %v2808_v19, %v5478_v14  ;;  %v5560_v7 = vadd.f32 %v2810_v16, %v5482_v50  ;;  %v3618_v14 = vld [vmem:[%s4202_s0 + $0x2a0] sm:$0x3]  ;;  %v3621_v50 = vld [vmem:[%s4202_s0 + $0x2b8] sm:$0x3]  ;;  %v6003_v24 = vld [vmem:[#allocation28_spill] sm:$0xff] }
 0x1cb   : > { %v5565_v1 = vadd.f32 %v2812_v42, %v5484_v27  ;;  %v5568_v58 = vadd.f32 %v2814_v59, %v5486_v36  ;;  %v5571_v34 = vadd.f32 %v2816_v18, %v5491_v43  ;;  %v5574_v54 = vadd.f32 %v2818_v33, %v5493_v56  ;;  %v3622_v36 = vld [vmem:[%s4202_s0 + $0x2c0] sm:$0x3] }
 0x1cc   : > { %v2879_v63 = vmul.f32 %v5999_v4, %v3612_v57  ;;  %v2880_v48 = vmul.f32 %v6000_v28, %v3613_v49  ;;  %v2881_v27 = vmul.f32 %v6001_v0, %v3614_v40  ;;  %v2882_v53 = vmul.f32 %v6002_v10, %v3615_v25 }
 0x1cd   : > { %v2883_v43 = vmul.f32 %v6003_v24, %v3616_v32  ;;  %v2884_v51 = vmul.f32 %v6004_v9, %v3617_v61  ;;  %v2885_v56 = vmul.f32 %v5999_v4, %v5425_v21  ;;  %v2886_v38 = vmul.f32 %v6000_v28, %v5428_v11 }
 0x1ce   : > { %v2887_v47 = vmul.f32 %v6001_v0, %v5433_v45  ;;  %v2888_v20 = vmul.f32 %v6002_v10, %v5440_v26  ;;  %v2889_v12 = vmul.f32 %v6003_v24, %v5443_v55  ;;  %v2890_v60 = vmul.f32 %v6004_v9, %v5446_v46 }
 0x1cf   : > { %v2891_v3 = vmul.f32 %v5999_v4, %v3618_v14  ;;  %v2892_v21 = vmul.f32 %v6000_v28, %v3619_v22  ;;  %v2893_v39 = vmul.f32 %v6001_v0, %v3620_v62  ;;  %v2894_v11 = vmul.f32 %v6002_v10, %v3621_v50  ;;  %v6010_v4 = vld [vmem:[#allocation34_spill] sm:$0xff] (%p374_p1)  ;;  %v6011_v0 = vld [vmem:[#allocation35_spill] sm:$0xff] (%p374_p1) }
 0x1d0   : > { %v2895_v45 = vmul.f32 %v6003_v24, %v3622_v36  ;;  %v2896_v17 = vmul.f32 %v6004_v9, %v3623_v52  ;;  %v2915_v26 = vrot.slane %v2879_v63, 4  ;;  %v2916_v8 = vrot.slane %v2885_v56, 4  ;;  %v6012_v24 = vld [vmem:[#allocation36_spill] sm:$0xff] (%p374_p1) }
 0x1d1   : > { %v2918_v19 = vrot.slane %v2880_v48, 4  ;;  %v2919_v55 = vrot.slane %v2886_v38, 4  ;;  %v2921_v16 = vrot.slane %v2881_v27, 4  ;;  %v2922_v30 = vrot.slane %v2887_v47, 4 }
 0x1d2   : > { %v2917_v46 = vsel %vm834_vm8, %v2915_v26, %v2916_v8  ;;  %v2924_v42 = vrot.slane %v2882_v53, 4  ;;  %v2925_v59 = vrot.slane %v2888_v20, 4  ;;  %v2927_v18 = vrot.slane %v2883_v43, 4 }
 0x1d3   : > { %v2920_v57 = vsel %vm834_vm8, %v2918_v19, %v2919_v55  ;;  %v2923_v33 = vsel %vm834_vm8, %v2921_v16, %v2922_v30  ;;  %v2928_v49 = vrot.slane %v2889_v12, 4  ;;  %v2930_v40 = vrot.slane %v2884_v51, 4 }
 0x1d4   : > { %v2926_v25 = vsel %vm834_vm8, %v2924_v42, %v2925_v59  ;;  %v2931_v32 = vrot.slane %v2890_v60, 4  ;;  %v2933_v61 = vrot.slane %v2891_v3, 4  ;;  %v2935_v14 = vrot.slane %v2892_v21, 4 }
 0x1d5   : > { %v2929_v22 = vsel %vm834_vm8, %v2927_v18, %v2928_v49  ;;  %v2937_v62 = vrot.slane %v2893_v39, 4  ;;  %v2939_v50 = vrot.slane %v2894_v11, 4  ;;  %v2941_v63 = vrot.slane %v2895_v45, 4 }
 0x1d6   : > { %v2932_v48 = vsel %vm834_vm8, %v2930_v40, %v2931_v32  ;;  %v2934_v27 = vsel %vm834_vm8, %v2916_v8, %v2933_v61  ;;  %v2936_v53 = vsel %vm834_vm8, %v2919_v55, %v2935_v14  ;;  %v2943_v36 = vrot.slane %v2896_v17, 4 }
 0x1d7   : > { %v2938_v52 = vsel %vm834_vm8, %v2922_v30, %v2937_v62  ;;  %v2940_v43 = vsel %vm834_vm8, %v2925_v59, %v2939_v50  ;;  %v2942_v51 = vsel %vm834_vm8, %v2928_v49, %v2941_v63  ;;  %v2957_v56 = vadd.f32 %v2917_v46, %v5534_v41 }
 0x1d8   : > { %v2944_v38 = vsel %vm834_vm8, %v2931_v32, %v2943_v36  ;;  %v2958_v47 = vadd.f32 %v2920_v57, %v5539_v37  ;;  %v2959_v20 = vadd.f32 %v2923_v33, %v5542_v23  ;;  %v5628_v12 = vadd.f32 %v2926_v25, %v5545_v35 }
 0x1d9   : > { %v5631_v60 = vadd.f32 %v2929_v22, %v5551_v13  ;;  %v5634_v3 = vadd.f32 %v2932_v48, %v5554_v44  ;;  %v5637_v41 = vadd.f32 %v2934_v27, %v5557_v2  ;;  %v5640_v21 = vadd.f32 %v2936_v53, %v5560_v7  ;;  %2972 = vst [vmem:[%s5618_s22] sm:$0xff] %v2957_v56 }
 0x1da   : > { %v5644_v37 = vadd.f32 %v2938_v52, %v5565_v1  ;;  %v5647_v23 = vadd.f32 %v2940_v43, %v5568_v58  ;;  %v5650_v35 = vadd.f32 %v2942_v51, %v5571_v34  ;;  %v5653_v13 = vadd.f32 %v2944_v38, %v5574_v54  ;;  %2973 = vst [vmem:[%s5618_s22 + $0x8] sm:$0xff] %v2958_v47  ;;  %v6005_v38 = vld [vmem:[#allocation30_spill] sm:$0xff] }
 0x1db   : > { %2974 = vst [vmem:[%s5618_s22 + $0x10] sm:$0xff] %v2959_v20  ;;  %2975 = vst [vmem:[%s5618_s22 + $0x18] sm:$0xff] %v5628_v12  ;;  %v2986_v44 = vsel %vm592_vm6, %v5637_v41, 0.0  ;;  %v2994_v2 = vsel %vm592_vm6, %v5640_v21, 0.0  ;;  %v3026_v7 = vsel %vm52_vm0, %v5634_v3, 0.0  ;;  %v3085_v46 = vmul.f32 %v2957_v56, %v2957_v56 }
 0x1dc   : > { %2976 = vst [vmem:[%s5618_s22 + $0x20] sm:$0xff] %v5631_v60  ;;  %2977 = vst.msk [vmem:[%s5618_s22 + $0x28] sm:$0xff] %vm52_vm0, %v5634_v3  ;;  %v2987_v1 = vadd.f32 %v2986_v44, %v2957_v56  ;;  %v2995_v58 = vadd.f32 %v2994_v2, %v2958_v47  ;;  %v3002_v34 = vsel %vm592_vm6, %v5644_v37, 0.0  ;;  %v3010_v54 = vsel %vm592_vm6, %v5647_v23, 0.0 }
 0x1dd   : > { %2978 = vst [vmem:[%s5618_s22 + $0x30] sm:$0x3f] %v5637_v41  ;;  %2979 = vst [vmem:[%s5618_s22 + $0x38] sm:$0x3f] %v5640_v21  ;;  %v3003_v39 = vadd.f32 %v3002_v34, %v2959_v20  ;;  %v3011_v11 = vadd.f32 %v3010_v54, %v5628_v12  ;;  %v3018_v45 = vsel %vm592_vm6, %v5650_v35, 0.0  ;;  %v3027_v17 = vsel %vm2983_vm9, %v5653_v13, 0.0 }
 0x1de   : > { %2980 = vst [vmem:[%s5618_s22 + $0x40] sm:$0x3f] %v5644_v37  ;;  %2981 = vst [vmem:[%s5618_s22 + $0x48] sm:$0x3f] %v5647_v23  ;;  %v2988_v26 = vrot.slane %v2987_v1, 4  ;;  %v2996_v8 = vrot.slane %v2995_v58, 4  ;;  %v3019_v19 = vadd.f32 %v3018_v45, %v5631_v60  ;;  %v3028_v55 = vadd.f32 %v3027_v17, %v3026_v7 }
 0x1df   : > { %2982 = vst [vmem:[%s5618_s22 + $0x50] sm:$0x3f] %v5650_v35  ;;  %2984 = vst.msk [vmem:[%s5618_s22 + $0x58] sm:$0x3f] %vm2983_vm9, %v5653_v13  ;;  %v3004_v16 = vrot.slane %v3003_v39, 4  ;;  %v3012_v30 = vrot.slane %v3011_v11, 4  ;;  %v3086_v32 = vmul.f32 %v2958_v47, %v2958_v47  ;;  %v3087_v27 = vmul.f32 %v2959_v20, %v2959_v20 }
 0x1e0   : > { %v2989_v42 = vadd.f32 %v2988_v26, %v2987_v1  ;;  %v2997_v59 = vadd.f32 %v2996_v8, %v2995_v58  ;;  %v3020_v18 = vrot.slane %v3019_v19, 4  ;;  %v3029_v57 = vrot.slane %v3028_v55, 4 }
 0x1e1   : > { %v3005_v33 = vadd.f32 %v3004_v16, %v3003_v39  ;;  %v3013_v49 = vadd.f32 %v3012_v30, %v3011_v11  ;;  %v3689_v40 = vmov 1966171168   ;;  %v3088_v47 = vmul.f32 %v5628_v12, %v5628_v12 }
 0x1e2   : > { %v3045_v25 = vunpack.c.l.s4 %v3689_v40  ;;  %v2990_v61 = vrot.slane %v2989_v42, 2  ;;  %v2998_v14 = vrot.slane %v2997_v59, 2  ;;  %v3021_v22 = vadd.f32 %v3020_v18, %v3019_v19 }
 0x1e3   : > { %v3030_v62 = vadd.f32 %v3029_v57, %v3028_v55  ;;  %v3006_v50 = vrot.slane %v3005_v33, 2  ;;  %v3014_v63 = vrot.slane %v3013_v49, 2  ;;  %v3089_v20 = vmul.f32 %v5631_v60, %v5631_v60 }
 0x1e4   : > { %v3046_v48 = vunpack.c.0.s8 %v3045_v25  ;;  %v2991_v53 = vadd.f32 %v2990_v61, %v2989_v42  ;;  %v2999_v36 = vadd.f32 %v2998_v14, %v2997_v59  ;;  %v3022_v52 = vrot.slane %v3021_v22, 2 }
 0x1e5   : > { %v3031_v43 = vrot.slane %v3030_v62, 2  ;;  %v3007_v51 = vadd.f32 %v3006_v50, %v3005_v33  ;;  %v3015_v56 = vadd.f32 %v3014_v63, %v3013_v49  ;;  %v3090_v39 = vmul.f32 %v5634_v3, %v5634_v3 }
 0x1e6   : > { %v5694_v44 = vsub.s32 %v3046_v48, %v6005_v38  ;;  %v2992_v2 = vrot.slane %v2991_v53, 1  ;;  %v3000_v7 = vrot.slane %v2999_v36, 1  ;;  %v3023_v1 = vadd.f32 %v3022_v52, %v3021_v22 }
 0x1e7   : > { %v3032_v58 = vadd.f32 %v3031_v43, %v3030_v62  ;;  %v3008_v34 = vrot.slane %v3007_v51, 1  ;;  %v3016_v54 = vrot.slane %v3015_v56, 1  ;;  %v3091_v12 = vmul.f32 %v5637_v41, %v5637_v41 }
 0x1e8   : > { %v2993_v11 = vadd.f32 %v2992_v2, %v2991_v53  ;;  %v3001_v45 = vadd.f32 %v3000_v7, %v2999_v36  ;;  %v3024_v17 = vrot.slane %v3023_v1, 1  ;;  %v3092_v55 = vmul.f32 %v5640_v21, %v5640_v21 }
 0x1e9   : > { %v3033_v26 = vrot.slane %v3032_v58, 1  ;;  %v3009_v8 = vadd.f32 %v3008_v34, %v3007_v51  ;;  %v3017_v19 = vadd.f32 %v3016_v54, %v3015_v56  ;;  %v3093_v60 = vmul.f32 %v5644_v37, %v5644_v37 }
 0x1ea   : > { %v3025_v16 = vadd.f32 %v3024_v17, %v3023_v1  ;;  %v3041_v42 = vcombine.low %v2993_v11, %v3001_v45  ;;  %v3094_v3 = vmul.f32 %v5647_v23, %v5647_v23  ;;  %v3095_v18 = vmul.f32 %v5650_v35, %v5650_v35 }
 0x1eb   : > { %v3034_v30 = vadd.f32 %v3033_v26, %v3032_v58  ;;  %v3042_v59 = vcombine.low %v3009_v8, %v3017_v19  ;;  %v3096_v57 = vmul.f32 %v5653_v13, %v5653_v13  ;;  %v3097_v21 = vsel %vm592_vm6, %v3091_v12, 0.0 }
 0x1ec   : > { %v3050_v33 = vrot.slane %v3041_v42, %v5694_v44  ;;  %v3105_v49 = vsel %vm592_vm6, %v3092_v55, 0.0  ;;  %v3098_v37 = vadd.f32 %v3097_v21, %v3085_v46  ;;  %v3113_v61 = vsel %vm592_vm6, %v3093_v60, 0.0 }
 0x1ed   : > { %v3043_v41 = vcombine.low %v3025_v16, %v3034_v30  ;;  %v3057_v40 = vrot.slane %v3042_v59, %v5694_v44  ;;  %v3106_v25 = vadd.f32 %v3105_v49, %v3086_v32  ;;  %v3114_v14 = vadd.f32 %v3113_v61, %v3087_v27  ;;  %v2985_v27 = vld [vmem:[#allocation3] sm:$0x3f] }
 0x1ee   : > { %v3121_v35 = vsel %vm592_vm6, %v3094_v3, 0.0  ;;  %v3129_v13 = vsel %vm592_vm6, %v3095_v18, 0.0  ;;  %v3099_v62 = vrot.slane %v3098_v37, 4  ;;  %v3137_v46 = vsel %vm52_vm0, %v3090_v39, 0.0 }
 0x1ef   : > { %v3064_v23 = vrot.slane %v3043_v41, %v5694_v44  ;;  %v3065_v22 = vcombine.low %v3050_v33, %v3057_v40  ;;  %v3107_v50 = vrot.slane %v3106_v25, 4  ;;  %v3122_v63 = vadd.f32 %v3121_v35, %v3088_v47 }
 0x1f0   : > { %v3115_v53 = vrot.slane %v3114_v14, 4  ;;  %v3130_v36 = vadd.f32 %v3129_v13, %v3089_v20  ;;  %v3100_v52 = vadd.f32 %v3099_v62, %v3098_v37  ;;  %v3138_v2 = vsel %vm2983_vm9, %v3096_v57, 0.0 }
 0x1f1   : > { %v3079_v48 = vrot.slane %v3064_v23, %v5694_v44  ;;  %v3072_v32 = vrot.slane %v3065_v22, %v5694_v44  ;;  %v3108_v43 = vadd.f32 %v3107_v50, %v3106_v25  ;;  %v3123_v51 = vrot.slane %v3122_v63, 4 }
 0x1f2   : > { %v3116_v56 = vadd.f32 %v3115_v53, %v3114_v14  ;;  %v3131_v38 = vrot.slane %v3130_v36, 4  ;;  %v3101_v1 = vrot.slane %v3100_v52, 2  ;;  %v3139_v11 = vadd.f32 %v3138_v2, %v3137_v46  ;;  %v3084_v53 = vld [vmem:[#allocation4] sm:$0x3f] }
 0x1f3   : > { %v3080_v7 = vcombine.low %v3072_v32, %v3079_v48  ;;  %v3109_v58 = vrot.slane %v3108_v43, 2  ;;  %v3124_v47 = vadd.f32 %v3123_v51, %v3122_v63 }
 0x1f4   : > { %v3117_v34 = vrot.slane %v3116_v56, 2  ;;  %v3132_v54 = vadd.f32 %v3131_v38, %v3130_v36  ;;  %v3102_v45 = vadd.f32 %v3101_v1, %v3100_v52  ;;  %v3140_v19 = vrot.slane %v3139_v11, 4  ;;  %v3205_v1 = vld [vmem:[%s5827_s3] sm:$0x3f] (%p374_p1) }
 0x1f5   : > { %v3082_v20 = vadd.f32 %v3080_v7, %v2985_v27  ;;  %v3110_v39 = vadd.f32 %v3109_v58, %v3108_v43  ;;  %v3125_v17 = vrot.slane %v3124_v47, 2 }
 0x1f6   : > { %v3118_v26 = vadd.f32 %v3117_v34, %v3116_v56  ;;  %v3133_v8 = vrot.slane %v3132_v54, 2  ;;  %v3103_v55 = vrot.slane %v3102_v45, 1  ;;  %v3141_v59 = vadd.f32 %v3140_v19, %v3139_v11 }
 0x1f7   : > { %3083 = vst.msk [vmem:[#allocation3] sm:$0x3f] %vm4026_vm2, %v3082_v20  ;;  %v3111_v16 = vrot.slane %v3110_v39, 1  ;;  %v3126_v30 = vadd.f32 %v3125_v17, %v3124_v47  ;;  %v6007_v47 = vld [vmem:[#allocation31_spill] sm:$0xff] (%p374_p1) }
 0x1f8   : > { %v3119_v42 = vrot.slane %v3118_v26, 1  ;;  %v3134_v60 = vadd.f32 %v3133_v8, %v3132_v54  ;;  %v3104_v3 = vadd.f32 %v3103_v55, %v3102_v45  ;;  %v3142_v21 = vrot.slane %v3141_v59, 2 }
 0x1f9   : > { %v3112_v18 = vadd.f32 %v3111_v16, %v3110_v39  ;;  %v3127_v57 = vrot.slane %v3126_v30, 1 }
 0x1fa   : > { %v3120_v41 = vadd.f32 %v3119_v42, %v3118_v26  ;;  %v3135_v33 = vrot.slane %v3134_v60, 1  ;;  %v3143_v37 = vadd.f32 %v3142_v21, %v3141_v59 }
 0x1fb   : > { %v3128_v49 = vadd.f32 %v3127_v57, %v3126_v30  ;;  %v3152_v40 = vcombine.low %v3104_v3, %v3112_v18 }
 0x1fc   : > { %v3136_v23 = vadd.f32 %v3135_v33, %v3134_v60  ;;  %v3144_v14 = vrot.slane %v3143_v37, 1 }
 0x1fd   : > { %v3153_v25 = vcombine.low %v3120_v41, %v3128_v49  ;;  %v3161_v61 = vrot.slane %v3152_v40, %v5694_v44 }
 0x1fe   : > { %v3145_v13 = vadd.f32 %v3144_v14, %v3143_v37  ;;  %v3195_v32 = vld [vmem:[#allocation3] sm:$0x3f] (%p374_p1) }
 0x1ff   : > { %v3168_v35 = vrot.slane %v3153_v25, %v5694_v44  ;;  %v3196_v43 = vmul.f32 (%p374_p1), 0.0051020407, %v3195_v32 }
 0x200   : > { %v3154_v62 = vcombine.low %v3136_v23, %v3145_v13 }
 0x201   : > { %v3176_v22 = vcombine.low %v3161_v61, %v3168_v35  ;;  %v3199_v27 = vmul.f32 (%p374_p1), %v3196_v43, %v3196_v43 }
 0x202   : > { %v3175_v50 = vrot.slane %v3154_v62, %v5694_v44 }
 0x203   : > { %v3183_v63 = vrot.slane %v3176_v22, %v5694_v44 }
 0x204   : > { %v3190_v48 = vrot.slane %v3175_v50, %v5694_v44  ;;  %v3203_v44 = vld [vmem:[%s5826_s2] sm:$0x3f] (%p374_p1)  ;;  %s5770_s2 = smov (%p374_p1), 0  }
 0x206   : > { %v3191_v36 = vcombine.low %v3183_v63, %v3190_v48  ;;  %376 = sbr.rel (!%p374_p1) target bundleno = 150 (0x96), region = 79 }
 0x208   : > { %v3193_v46 = vadd.f32 %v3191_v36, %v3084_v53 }
 0x20a   : > { %3194 = vst.msk [vmem:[#allocation4] sm:$0x3f] %vm4026_vm2, %v3193_v46 }
 0x211   :  { %v3197_v52 = vld [vmem:[#allocation4] sm:$0x3f] }
 0x212   :  { %v3198_v51 = vmul.f32 0.0051020407, %v3197_v52 }
 0x214   :  { %v3200_v56 = vsub.f32 %v3198_v51, %v3199_v27 }
 0x216   :  { %v3201_v38 = vadd.f32 1e-05, %v3200_v56 }
 0x218   :  { %3662 = vrsqrt.f32 %v3201_v38 }
 0x225   :  { %v3663_v2 = vpop.eup %3662 }
 0x226   :  { %v3204_v7 = vmul.f32 %v3663_v2, %v3203_v44 }
 0x228   :  { %v3206_v58 = vmul.f32 %v3204_v7, %v3196_v43  ;;  %v5745_v29 = vrot.slane %v3204_v7, %v6007_v47  ;;  %v5748_v15 = vrot.slane %v3204_v7, %v6008_v5  ;;  %v5751_v6 = vrot.slane %v3204_v7, %v6009_v31 }
 0x229   :  { %v5754_v28 = vrot.slane %v3204_v7, %v6010_v4  ;;  %v5757_v10 = vrot.slane %v3204_v7, %v6011_v0  ;;  %v5760_v9 = vrot.slane %v3204_v7, %v6012_v24 }
 0x22a   :  { %v3207_v34 = vsub.f32 %v3205_v1, %v3206_v58 }
 0x22c   :  { %v5763_v54 = vrot.slane %v3207_v34, %v6007_v47  ;;  %v3247_v11 = vrot.slane %v3207_v34, %v6008_v5  ;;  %v3251_v20 = vrot.slane %v3207_v34, %v6009_v31  ;;  %v3255_v45 = vrot.slane %v3207_v34, %v6010_v4 }
 0x22d   :  { %v3259_v39 = vrot.slane %v3207_v34, %v6011_v0  ;;  %v3263_v17 = vrot.slane %v3207_v34, %v6012_v24 }
 0x22e LB: > { %s3635_s3 = smul.u32 96, %s3686_s2  ;;  %s3275_s2 = sadd.s32 1, %s3686_s2   ;;  %s3686_s2 = sphi %s5770_s2, %s3275_s2  }
 0x22f   : > { %p3272_p2 = scmp.ge.s32.totalorder %s3275_s2, 14  }
 0x230   : > { %s5779_s29 = scalar_lea.vmem %s5828_s4, %s3635_s3 }
 0x231   : > { %v3279_v26 = vld [vmem:[%s5779_s29] sm:$0xff]  ;;  %v3280_v8 = vld [vmem:[%s5779_s29 + $0x8] sm:$0xff]  ;;  %v3281_v19 = vld [vmem:[%s5779_s29 + $0x10] sm:$0xff] }
 0x232   : > { %v3291_v12 = vmul.f32 %v3279_v26, %v5745_v29  ;;  %v3292_v55 = vmul.f32 %v3280_v8, %v5748_v15  ;;  %v3293_v16 = vmul.f32 %v3281_v19, %v5751_v6  ;;  %v3282_v30 = vld [vmem:[%s5779_s29 + $0x18] sm:$0xff]  ;;  %v3283_v42 = vld [vmem:[%s5779_s29 + $0x20] sm:$0xff]  ;;  %v3284_v60 = vld [vmem:[%s5779_s29 + $0x28] sm:$0xff] }
 0x233   : > { %v3294_v59 = vmul.f32 %v3282_v30, %v5754_v28  ;;  %v3295_v3 = vmul.f32 %v3283_v42, %v5757_v10  ;;  %v3296_v18 = vmul.f32 %v3284_v60, %v5760_v9  ;;  %v3285_v57 = vld [vmem:[%s5779_s29 + $0x30] sm:$0x3f]  ;;  %v3286_v41 = vld [vmem:[%s5779_s29 + $0x38] sm:$0x3f]  ;;  %v3287_v33 = vld [vmem:[%s5779_s29 + $0x40] sm:$0x3f] }
 0x234   : > { %v3303_v21 = vadd.f32 %v3291_v12, %v5763_v54  ;;  %v3304_v49 = vadd.f32 %v3292_v55, %v3247_v11  ;;  %v3305_v40 = vadd.f32 %v3293_v16, %v3251_v20  ;;  %v3297_v37 = vmul.f32 %v3285_v57, %v5745_v29  ;;  %v3288_v25 = vld [vmem:[%s5779_s29 + $0x48] sm:$0x3f]  ;;  %v3289_v61 = vld [vmem:[%s5779_s29 + $0x50] sm:$0x3f]  ;;  %v3290_v23 = vld [vmem:[%s5779_s29 + $0x58] sm:$0x3f] }
 0x235   : > { %v3306_v14 = vadd.f32 %v3294_v59, %v3255_v45  ;;  %v3307_v35 = vadd.f32 %v3295_v3, %v3259_v39  ;;  %v3308_v13 = vadd.f32 %v3296_v18, %v3263_v17  ;;  %v3298_v22 = vmul.f32 %v3286_v41, %v5748_v15 }
 0x236   : > { %3315 = vst [vmem:[%s5779_s29] sm:$0xff] %v3303_v21  ;;  %3316 = vst [vmem:[%s5779_s29 + $0x8] sm:$0xff] %v3304_v49  ;;  %v3309_v62 = vadd.f32 %v3297_v37, %v5763_v54  ;;  %v3299_v50 = vmul.f32 %v3287_v33, %v5751_v6  ;;  %v3300_v63 = vmul.f32 %v3288_v25, %v5754_v28 }
 0x237   : > { %3317 = vst [vmem:[%s5779_s29 + $0x10] sm:$0xff] %v3305_v40  ;;  %v3301_v48 = vmul.f32 %v3289_v61, %v5757_v10  ;;  %3318 = vst [vmem:[%s5779_s29 + $0x18] sm:$0xff] %v3306_v14  ;;  %v3310_v53 = vadd.f32 %v3298_v22, %v3247_v11  ;;  %v3302_v36 = vmul.f32 %v3290_v23, %v5760_v9 }
 0x238   : > { %3319 = vst [vmem:[%s5779_s29 + $0x20] sm:$0xff] %v3307_v35  ;;  %3320 = vst.msk [vmem:[%s5779_s29 + $0x28] sm:$0xff] %vm52_vm0, %v3308_v13  ;;  %v3311_v46 = vadd.f32 %v3299_v50, %v3251_v20  ;;  %v3312_v32 = vadd.f32 %v3300_v63, %v3255_v45 }
 0x239   : > { %3321 = vst [vmem:[%s5779_s29 + $0x30] sm:$0x3f] %v3309_v62  ;;  %v3313_v52 = vadd.f32 %v3301_v48, %v3259_v39  ;;  %3322 = vst [vmem:[%s5779_s29 + $0x38] sm:$0x3f] %v3310_v53  ;;  %v3314_v43 = vadd.f32 %v3302_v36, %v3263_v17  ;;  %3274 = sbr.rel (!%p3272_p2) target bundleno = 558 (0x22e), region = 90 }
 0x23a   : > { %3323 = vst [vmem:[%s5779_s29 + $0x40] sm:$0x3f] %v3311_v46  ;;  %3324 = vst [vmem:[%s5779_s29 + $0x48] sm:$0x3f] %v3312_v32 }
 0x23b   : > { %3325 = vst [vmem:[%s5779_s29 + $0x50] sm:$0x3f] %v3313_v52  ;;  %3327 = vst.msk [vmem:[%s5779_s29 + $0x58] sm:$0x3f] %vm2983_vm9, %v3314_v43 }

</bundles_post_ra>
